<compile_context>
chip_gen: v6e
topology: v6e:2x2x1
jax: 0.10.0
libtpu: 0.0.40
codegen_flags: <defaults>
</compile_context>

<pallas_src>
import math

import jax
import jax.numpy as jnp
from jax import lax
from jax.experimental import pallas as pl
from jax.experimental.pallas import tpu as pltpu


def _round_up(x, m):
    return (x + m - 1) // m * m


def _arm_kernel(x_ref, w1_ref, s1_ref, b1_ref, w2_ref, s2_ref, b2_ref,
                out_ref, acc_ref):
    """One batch element per grid step.

    x_ref  : (1, H+2, Wp, Cin_p)  bf16 zero-padded NHWC input (Wp % 16 == 0)
    w1_ref : (3, Cin_p, 3*Cp)     bf16 3x3 conv weights, kw stacked along N
    s1,b1  : (1, Cp)              f32 folded BN1 scale / bias
    w2_ref : (Cp, Cp)             bf16 1x1 conv weights (in, out)
    s2,b2  : (1, Cp)              f32 folded BN2 scale / bias
    out_ref: (1, H, W, Cp)        f32 (Cp is a multiple of 128 -> dense stores)
    acc_ref: (H, W, Cp)           f32 VMEM scratch conv accumulator
    """
    _, H, W, Cp = out_ref.shape
    _, _, Wp, Cin_p = x_ref.shape

    # ---- 3x3 conv: one MXU matmul per kernel row (kh) on the un-sliced slab.
    # The three kw taps live in the weight N dimension; their results are
    # combined with W-shifted adds (cheap XLU shifts, no input copies).
    for kh in range(3):
        slab = x_ref[0, kh:kh + H, :, :].reshape(H * Wp, Cin_p)        # bf16
        r = jnp.dot(slab, w1_ref[kh], preferred_element_type=jnp.float32)
        r = r.reshape(H, Wp, 3 * Cp)                                   # f32
        contrib = (r[:, 0:W, 0 * Cp:1 * Cp]
                   + r[:, 1:1 + W, 1 * Cp:2 * Cp]
                   + r[:, 2:2 + W, 2 * Cp:3 * Cp])
        if kh == 0:
            acc_ref[...] = contrib
        else:
            acc_ref[...] += contrib

    # ---- BN1 (folded affine) + ReLU.
    feat = jnp.maximum(acc_ref[...] * s1_ref[...] + b1_ref[...], 0.0)  # (H,W,Cp)

    # ---- Global average pool over spatial positions.
    pooled = jnp.sum(feat.reshape(H * W, Cp), axis=0, keepdims=True)
    pooled = pooled * (1.0 / (H * W))                                  # (1, Cp)

    # ---- 1x1 conv + BN2 + sigmoid (kept in f32; per-image negligible).
    atten = jnp.dot(pooled.astype(w2_ref.dtype), w2_ref[...],
                    preferred_element_type=jnp.float32)
    atten = atten * s2_ref[...] + b2_ref[...]
    atten = 1.0 / (1.0 + jnp.exp(-atten))       # f32 sigmoid (exp on the EUP)

    # ---- Channel re-weighting; single lane-dense store.
    out_ref[...] = (feat * atten).reshape(1, H, W, Cp).astype(out_ref.dtype)


def attention_refinement_module(x_nchw, w1_hwio, scale1, bias1, w2_io,
                                scale2, bias2):
    """Wrapper: NCHW in / NCHW out, matching the PyTorch module."""
    B, Cin, H, W = x_nchw.shape
    Cout = w1_hwio.shape[-1]

    Cin_p = _round_up(Cin, 8)      # sublane-friendly contraction dim
    Cp = _round_up(Cout, 128)      # lane-dense channel dim
    Wp = _round_up(W + 2, 16)      # bf16 sublane tile -> free in-kernel reshapes

    # ---- glue: layout, padding, weight stacking (no hot-path compute) ----
    x = jnp.transpose(x_nchw, (0, 2, 3, 1)).astype(jnp.bfloat16)
    x = jnp.pad(x, ((0, 0), (1, 1), (1, Wp - W - 1), (0, Cin_p - Cin)))

    w1_p = jnp.zeros((3, 3, Cin_p, Cp), jnp.float32)
    w1_p = w1_p.at[:, :, :Cin, :Cout].set(w1_hwio)
    # (kh, kw, ci, co) -> (kh, ci, kw*Cp + co): kw taps stacked along N.
    w1_stk = jnp.transpose(w1_p, (0, 2, 1, 3)).reshape(3, Cin_p, 3 * Cp)
    w1_stk = w1_stk.astype(jnp.bfloat16)

    w2_p = jnp.zeros((Cp, Cp), jnp.float32).at[:Cout, :Cout].set(w2_io)
    w2_p = w2_p.astype(jnp.bfloat16)

    def pad_vec(v):
        return jnp.zeros((1, Cp), jnp.float32).at[0, :Cout].set(v)

    s1, b1 = pad_vec(scale1), pad_vec(bias1)
    s2, b2 = pad_vec(scale2), pad_vec(bias2)

    out_p = pl.pallas_call(
        _arm_kernel,
        out_shape=jax.ShapeDtypeStruct((B, H, W, Cp), jnp.float32),
        grid=(B,),
        in_specs=[
            pl.BlockSpec((1, H + 2, Wp, Cin_p), lambda b: (b, 0, 0, 0)),
            pl.BlockSpec((3, Cin_p, 3 * Cp), lambda b: (0, 0, 0)),
            pl.BlockSpec((1, Cp), lambda b: (0, 0)),
            pl.BlockSpec((1, Cp), lambda b: (0, 0)),
            pl.BlockSpec((Cp, Cp), lambda b: (0, 0)),
            pl.BlockSpec((1, Cp), lambda b: (0, 0)),
            pl.BlockSpec((1, Cp), lambda b: (0, 0)),
        ],
        out_specs=pl.BlockSpec((1, H, W, Cp), lambda b: (b, 0, 0, 0)),
        scratch_shapes=[pltpu.VMEM((H, W, Cp), jnp.float32)],
        compiler_params=pltpu.CompilerParams(
            dimension_semantics=("parallel",),
            vmem_limit_bytes=32 * 1024 * 1024,
        ),
    )(x, w1_stk, s1, b1, w2_p, s2, b2)

    # Drop channel padding, back to NCHW.
    return jnp.transpose(out_p[..., :Cout], (0, 3, 1, 2))


def _reference(x_nchw, w1_hwio, scale1, bias1, w2_io, scale2, bias2):
    """Pure-JAX reference with the same bf16 inputs / f32 accumulation."""
    x = jnp.transpose(x_nchw, (0, 2, 3, 1)).astype(jnp.bfloat16)
    w1 = w1_hwio.astype(jnp.bfloat16)
    feat = lax.conv_general_dilated(
        x, w1, window_strides=(1, 1), padding="SAME",
        dimension_numbers=("NHWC", "HWIO", "NHWC"),
        preferred_element_type=jnp.float32)
    feat = jnp.maximum(feat * scale1 + bias1, 0.0)
    atten = jnp.mean(feat, axis=(1, 2), keepdims=True)
    atten = jnp.einsum("bijc,cd->bijd", atten.astype(jnp.bfloat16),
                       w2_io.astype(jnp.bfloat16),
                       preferred_element_type=jnp.float32)
    atten = jax.nn.sigmoid(atten * scale2 + bias2)
    out = feat * atten
    return jnp.transpose(out, (0, 3, 1, 2))


if __name__ == "__main__":
    B, Cin, Cout, H, W = 2, 4, 8, 16, 16
    key = jax.random.PRNGKey(0)
    kx, kw1, kw2, kg1, kb1, km1, kv1, kg2, kb2, km2, kv2 = jax.random.split(key, 11)

    x = jax.random.normal(kx, (B, Cin, H, W), jnp.float32)            # NCHW

    # Conv weights: kaiming_normal_(a=1) => std = sqrt(1 / fan_in), no bias.
    std1 = math.sqrt(1.0 / (Cin * 3 * 3))
    w1_hwio = jax.random.normal(kw1, (3, 3, Cin, Cout), jnp.float32) * std1
    std2 = math.sqrt(1.0 / Cout)
    w2_io = jax.random.normal(kw2, (Cout, Cout), jnp.float32) * std2  # (in, out)

    # Deterministic eval-mode BatchNorm params, folded into scale/bias.
    eps = 1e-5
    g1 = 1.0 + 0.1 * jax.random.normal(kg1, (Cout,), jnp.float32)
    be1 = 0.1 * jax.random.normal(kb1, (Cout,), jnp.float32)
    rm1 = 0.1 * jax.random.normal(km1, (Cout,), jnp.float32)
    rv1 = 1.0 + 0.1 * jax.random.uniform(kv1, (Cout,), jnp.float32)
    scale1 = g1 / jnp.sqrt(rv1 + eps)
    bias1 = be1 - rm1 * scale1

    g2 = 1.0 + 0.1 * jax.random.normal(kg2, (Cout,), jnp.float32)
    be2 = 0.1 * jax.random.normal(kb2, (Cout,), jnp.float32)
    rm2 = 0.1 * jax.random.normal(km2, (Cout,), jnp.float32)
    rv2 = 1.0 + 0.1 * jax.random.uniform(kv2, (Cout,), jnp.float32)
    scale2 = g2 / jnp.sqrt(rv2 + eps)
    bias2 = be2 - rm2 * scale2

    out = attention_refinement_module(x, w1_hwio, scale1, bias1, w2_io,
                                      scale2, bias2)
    out = jax.block_until_ready(out)

    ref = _reference(x, w1_hwio, scale1, bias1, w2_io, scale2, bias2)
    assert out.shape == (B, Cout, H, W)
    assert jnp.allclose(out, ref, atol=1e-2, rtol=1e-2), \
        float(jnp.max(jnp.abs(out - ref)))

    print("KERNEL_OK")
</pallas_src>

<mosaic_0001>
module attributes {stable_mosaic.version = 11 : i64} {
  func.func @_arm_kernel(%arg0: i32, %arg1: memref<1x18x32x8xbf16, #tpu.memory_space<vmem>>, %arg2: memref<3x8x384xbf16, #tpu.memory_space<vmem>>, %arg3: memref<1x128xf32, #tpu.memory_space<vmem>>, %arg4: memref<1x128xf32, #tpu.memory_space<vmem>>, %arg5: memref<128x128xbf16, #tpu.memory_space<vmem>>, %arg6: memref<1x128xf32, #tpu.memory_space<vmem>>, %arg7: memref<1x128xf32, #tpu.memory_space<vmem>>, %arg8: memref<1x16x16x128xf32, #tpu.memory_space<vmem>>, %arg9: memref<16x16x128xf32, #tpu.memory_space<vmem>>) attributes {dimension_semantics = [#tpu.dimension_semantics<parallel>], iteration_bounds = array<i64: 2>, scalar_prefetch = 0 : i64, scratch_operands = 1 : i64, tpu.core_type = #tpu.core_type<tc>, window_params = [{transform_indices = @transform_0, window_bounds = array<i64: 1, 18, 32, 8>}, {pipeline_mode = #tpu.pipeline_mode<synchronous>, transform_indices = @transform_1, window_bounds = array<i64: 3, 8, 384>}, {pipeline_mode = #tpu.pipeline_mode<synchronous>, transform_indices = @transform_2, window_bounds = array<i64: 1, 128>}, {pipeline_mode = #tpu.pipeline_mode<synchronous>, transform_indices = @transform_3, window_bounds = array<i64: 1, 128>}, {pipeline_mode = #tpu.pipeline_mode<synchronous>, transform_indices = @transform_4, window_bounds = array<i64: 128, 128>}, {pipeline_mode = #tpu.pipeline_mode<synchronous>, transform_indices = @transform_5, window_bounds = array<i64: 1, 128>}, {pipeline_mode = #tpu.pipeline_mode<synchronous>, transform_indices = @transform_6, window_bounds = array<i64: 1, 128>}, {transform_indices = @transform_7, window_bounds = array<i64: 1, 16, 16, 128>}]} {
    %c0 = arith.constant 0 : index
    %c0_0 = arith.constant 0 : index
    %c0_1 = arith.constant 0 : index
    %c0_2 = arith.constant 0 : index
    %0 = vector.load %arg1[%c0, %c0_0, %c0_1, %c0_2] : memref<1x18x32x8xbf16, #tpu.memory_space<vmem>>, vector<1x16x32x8xbf16>
    %1 = vector.shape_cast %0 : vector<1x16x32x8xbf16> to vector<16x32x8xbf16>
    %2 = vector.shape_cast %1 : vector<16x32x8xbf16> to vector<512x8xbf16>
    %c0_3 = arith.constant 0 : index
    %c0_4 = arith.constant 0 : index
    %c0_5 = arith.constant 0 : index
    %3 = vector.load %arg2[%c0_3, %c0_4, %c0_5] : memref<3x8x384xbf16, #tpu.memory_space<vmem>>, vector<1x8x384xbf16>
    %4 = vector.shape_cast %3 : vector<1x8x384xbf16> to vector<8x384xbf16>
    %cst = arith.constant dense<0.000000e+00> : vector<512x384xf32>
    %5 = tpu.matmul %2, %4, %cst {dimension_numbers = #tpu.dot_dimension_numbers<[1], [0], [0], [1], [0, 0, 1, 1], [], []>} : vector<512x8xbf16>, vector<8x384xbf16>, vector<512x384xf32> -> vector<512x384xf32>
    %6 = vector.shape_cast %5 : vector<512x384xf32> to vector<16x32x384xf32>
    %7 = vector.extract_strided_slice %6 {offsets = [0, 0, 0], sizes = [16, 16, 128], strides = [1, 1, 1]} : vector<16x32x384xf32> to vector<16x16x128xf32>
    %8 = vector.extract_strided_slice %6 {offsets = [0, 1, 128], sizes = [16, 16, 128], strides = [1, 1, 1]} : vector<16x32x384xf32> to vector<16x16x128xf32>
    %9 = arith.addf %7, %8 : vector<16x16x128xf32>
    %10 = vector.extract_strided_slice %6 {offsets = [0, 2, 256], sizes = [16, 16, 128], strides = [1, 1, 1]} : vector<16x32x384xf32> to vector<16x16x128xf32>
    %11 = arith.addf %9, %10 : vector<16x16x128xf32>
    %c0_6 = arith.constant 0 : index
    %c0_7 = arith.constant 0 : index
    %c0_8 = arith.constant 0 : index
    %12 = vector.load %arg9[%c0_6, %c0_7, %c0_8] : memref<16x16x128xf32, #tpu.memory_space<vmem>>, vector<16x16x128xf32>
    tpu.vector_store %arg9[%c0_6, %c0_7, %c0_8], %11 {strides = array<i32>} : memref<16x16x128xf32, #tpu.memory_space<vmem>>, vector<16x16x128xf32>,
    %c0_9 = arith.constant 0 : index
    %c1 = arith.constant 1 : index
    %c0_10 = arith.constant 0 : index
    %c0_11 = arith.constant 0 : index
    %13 = vector.load %arg1[%c0_9, %c1, %c0_10, %c0_11] : memref<1x18x32x8xbf16, #tpu.memory_space<vmem>>, vector<1x16x32x8xbf16>
    %14 = vector.shape_cast %13 : vector<1x16x32x8xbf16> to vector<16x32x8xbf16>
    %15 = vector.shape_cast %14 : vector<16x32x8xbf16> to vector<512x8xbf16>
    %c1_12 = arith.constant 1 : index
    %c0_13 = arith.constant 0 : index
    %c0_14 = arith.constant 0 : index
    %16 = vector.load %arg2[%c1_12, %c0_13, %c0_14] : memref<3x8x384xbf16, #tpu.memory_space<vmem>>, vector<1x8x384xbf16>
    %17 = vector.shape_cast %16 : vector<1x8x384xbf16> to vector<8x384xbf16>
    %cst_15 = arith.constant dense<0.000000e+00> : vector<512x384xf32>
    %18 = tpu.matmul %15, %17, %cst_15 {dimension_numbers = #tpu.dot_dimension_numbers<[1], [0], [0], [1], [0, 0, 1, 1], [], []>} : vector<512x8xbf16>, vector<8x384xbf16>, vector<512x384xf32> -> vector<512x384xf32>
    %19 = vector.shape_cast %18 : vector<512x384xf32> to vector<16x32x384xf32>
    %20 = vector.extract_strided_slice %19 {offsets = [0, 0, 0], sizes = [16, 16, 128], strides = [1, 1, 1]} : vector<16x32x384xf32> to vector<16x16x128xf32>
    %21 = vector.extract_strided_slice %19 {offsets = [0, 1, 128], sizes = [16, 16, 128], strides = [1, 1, 1]} : vector<16x32x384xf32> to vector<16x16x128xf32>
    %22 = arith.addf %20, %21 : vector<16x16x128xf32>
    %23 = vector.extract_strided_slice %19 {offsets = [0, 2, 256], sizes = [16, 16, 128], strides = [1, 1, 1]} : vector<16x32x384xf32> to vector<16x16x128xf32>
    %24 = arith.addf %22, %23 : vector<16x16x128xf32>
    %c0_16 = arith.constant 0 : index
    %c0_17 = arith.constant 0 : index
    %c0_18 = arith.constant 0 : index
    %25 = vector.load %arg9[%c0_16, %c0_17, %c0_18] : memref<16x16x128xf32, #tpu.memory_space<vmem>>, vector<16x16x128xf32>
    %26 = arith.addf %25, %24 : vector<16x16x128xf32>
    %c0_19 = arith.constant 0 : index
    %c0_20 = arith.constant 0 : index
    %c0_21 = arith.constant 0 : index
    %27 = vector.load %arg9[%c0_19, %c0_20, %c0_21] : memref<16x16x128xf32, #tpu.memory_space<vmem>>, vector<16x16x128xf32>
    tpu.vector_store %arg9[%c0_19, %c0_20, %c0_21], %26 {strides = array<i32>} : memref<16x16x128xf32, #tpu.memory_space<vmem>>, vector<16x16x128xf32>,
    %c0_22 = arith.constant 0 : index
    %c2 = arith.constant 2 : index
    %c0_23 = arith.constant 0 : index
    %c0_24 = arith.constant 0 : index
    %28 = vector.load %arg1[%c0_22, %c2, %c0_23, %c0_24] : memref<1x18x32x8xbf16, #tpu.memory_space<vmem>>, vector<1x16x32x8xbf16>
    %29 = vector.shape_cast %28 : vector<1x16x32x8xbf16> to vector<16x32x8xbf16>
    %30 = vector.shape_cast %29 : vector<16x32x8xbf16> to vector<512x8xbf16>
    %c2_25 = arith.constant 2 : index
    %c0_26 = arith.constant 0 : index
    %c0_27 = arith.constant 0 : index
    %31 = vector.load %arg2[%c2_25, %c0_26, %c0_27] : memref<3x8x384xbf16, #tpu.memory_space<vmem>>, vector<1x8x384xbf16>
    %32 = vector.shape_cast %31 : vector<1x8x384xbf16> to vector<8x384xbf16>
    %cst_28 = arith.constant dense<0.000000e+00> : vector<512x384xf32>
    %33 = tpu.matmul %30, %32, %cst_28 {dimension_numbers = #tpu.dot_dimension_numbers<[1], [0], [0], [1], [0, 0, 1, 1], [], []>} : vector<512x8xbf16>, vector<8x384xbf16>, vector<512x384xf32> -> vector<512x384xf32>
    %34 = vector.shape_cast %33 : vector<512x384xf32> to vector<16x32x384xf32>
    %35 = vector.extract_strided_slice %34 {offsets = [0, 0, 0], sizes = [16, 16, 128], strides = [1, 1, 1]} : vector<16x32x384xf32> to vector<16x16x128xf32>
    %36 = vector.extract_strided_slice %34 {offsets = [0, 1, 128], sizes = [16, 16, 128], strides = [1, 1, 1]} : vector<16x32x384xf32> to vector<16x16x128xf32>
    %37 = arith.addf %35, %36 : vector<16x16x128xf32>
    %38 = vector.extract_strided_slice %34 {offsets = [0, 2, 256], sizes = [16, 16, 128], strides = [1, 1, 1]} : vector<16x32x384xf32> to vector<16x16x128xf32>
    %39 = arith.addf %37, %38 : vector<16x16x128xf32>
    %c0_29 = arith.constant 0 : index
    %c0_30 = arith.constant 0 : index
    %c0_31 = arith.constant 0 : index
    %40 = vector.load %arg9[%c0_29, %c0_30, %c0_31] : memref<16x16x128xf32, #tpu.memory_space<vmem>>, vector<16x16x128xf32>
    %41 = arith.addf %40, %39 : vector<16x16x128xf32>
    %c0_32 = arith.constant 0 : index
    %c0_33 = arith.constant 0 : index
    %c0_34 = arith.constant 0 : index
    %42 = vector.load %arg9[%c0_32, %c0_33, %c0_34] : memref<16x16x128xf32, #tpu.memory_space<vmem>>, vector<16x16x128xf32>
    tpu.vector_store %arg9[%c0_32, %c0_33, %c0_34], %41 {strides = array<i32>} : memref<16x16x128xf32, #tpu.memory_space<vmem>>, vector<16x16x128xf32>,
    %c0_35 = arith.constant 0 : index
    %c0_36 = arith.constant 0 : index
    %c0_37 = arith.constant 0 : index
    %43 = vector.load %arg9[%c0_35, %c0_36, %c0_37] : memref<16x16x128xf32, #tpu.memory_space<vmem>>, vector<16x16x128xf32>
    %c0_38 = arith.constant 0 : index
    %c0_39 = arith.constant 0 : index
    %44 = vector.load %arg3[%c0_38, %c0_39] : memref<1x128xf32, #tpu.memory_space<vmem>>, vector<1x128xf32>
    %45 = vector.shape_cast %44 : vector<1x128xf32> to vector<1x1x128xf32>
    %46 = vector.broadcast %45 : vector<1x1x128xf32> to vector<16x16x128xf32>
    %47 = arith.mulf %43, %46 : vector<16x16x128xf32>
    %c0_40 = arith.constant 0 : index
    %c0_41 = arith.constant 0 : index
    %48 = vector.load %arg4[%c0_40, %c0_41] : memref<1x128xf32, #tpu.memory_space<vmem>>, vector<1x128xf32>
    %49 = vector.shape_cast %48 : vector<1x128xf32> to vector<1x1x128xf32>
    %50 = vector.broadcast %49 : vector<1x1x128xf32> to vector<16x16x128xf32>
    %51 = arith.addf %47, %50 : vector<16x16x128xf32>
    %cst_42 = arith.constant 0.000000e+00 : f32
    %52 = vector.broadcast %cst_42 : f32 to vector<16x16x128xf32>
    %53 = arith.maximumf %51, %52 : vector<16x16x128xf32>
    %54 = vector.shape_cast %53 : vector<16x16x128xf32> to vector<256x128xf32>
    %cst_43 = arith.constant dense<0.000000e+00> : vector<128xf32>
    %55 = vector.multi_reduction <add>, %54, %cst_43 [0] : vector<256x128xf32> to vector<128xf32>
    %56 = vector.shape_cast %55 : vector<128xf32> to vector<1x128xf32>
    %cst_44 = arith.constant 3.906250e-03 : f32
    %57 = vector.broadcast %cst_44 : f32 to vector<1x128xf32>
    %58 = arith.mulf %56, %57 : vector<1x128xf32>
    %59 = arith.truncf %58 : vector<1x128xf32> to vector<1x128xbf16>
    %c0_45 = arith.constant 0 : index
    %c0_46 = arith.constant 0 : index
    %60 = vector.load %arg5[%c0_45, %c0_46] : memref<128x128xbf16, #tpu.memory_space<vmem>>, vector<128x128xbf16>
    %cst_47 = arith.constant dense<0.000000e+00> : vector<1x128xf32>
    %61 = tpu.matmul %59, %60, %cst_47 {dimension_numbers = #tpu.dot_dimension_numbers<[1], [0], [0], [1], [0, 0, 1, 1], [], []>} : vector<1x128xbf16>, vector<128x128xbf16>, vector<1x128xf32> -> vector<1x128xf32>
    %c0_48 = arith.constant 0 : index
    %c0_49 = arith.constant 0 : index
    %62 = vector.load %arg6[%c0_48, %c0_49] : memref<1x128xf32, #tpu.memory_space<vmem>>, vector<1x128xf32>
    %63 = arith.mulf %61, %62 : vector<1x128xf32>
    %c0_50 = arith.constant 0 : index
    %c0_51 = arith.constant 0 : index
    %64 = vector.load %arg7[%c0_50, %c0_51] : memref<1x128xf32, #tpu.memory_space<vmem>>, vector<1x128xf32>
    %65 = arith.addf %63, %64 : vector<1x128xf32>
    %cst_52 = arith.constant 0.000000e+00 : f32
    %66 = vector.broadcast %cst_52 : f32 to vector<1x128xf32>
    %67 = arith.subf %66, %65 : vector<1x128xf32>
    %68 = math.exp %67 : vector<1x128xf32>
    %cst_53 = arith.constant 1.000000e+00 : f32
    %69 = vector.broadcast %cst_53 : f32 to vector<1x128xf32>
    %70 = arith.addf %69, %68 : vector<1x128xf32>
    %cst_54 = arith.constant 1.000000e+00 : f32
    %71 = vector.broadcast %cst_54 : f32 to vector<1x128xf32>
    %72 = arith.divf %71, %70 : vector<1x128xf32>
    %73 = vector.shape_cast %72 : vector<1x128xf32> to vector<1x1x128xf32>
    %74 = vector.broadcast %73 : vector<1x1x128xf32> to vector<16x16x128xf32>
    %75 = arith.mulf %53, %74 : vector<16x16x128xf32>
    %76 = vector.shape_cast %75 : vector<16x16x128xf32> to vector<1x16x16x128xf32>
    %c0_55 = arith.constant 0 : index
    %c0_56 = arith.constant 0 : index
    %c0_57 = arith.constant 0 : index
    %c0_58 = arith.constant 0 : index
    %77 = vector.load %arg8[%c0_55, %c0_56, %c0_57, %c0_58] : memref<1x16x16x128xf32, #tpu.memory_space<vmem>>, vector<1x16x16x128xf32>
    tpu.vector_store %arg8[%c0_55, %c0_56, %c0_57, %c0_58], %76 {strides = array<i32>} : memref<1x16x16x128xf32, #tpu.memory_space<vmem>>, vector<1x16x16x128xf32>,
    return
  }
  func.func @transform_0(%arg0: i32) -> (i32, i32, i32, i32) {
    %c0_i32 = arith.constant 0 : i32
    %c0_i32_0 = arith.constant 0 : i32
    %c0_i32_1 = arith.constant 0 : i32
    %c0_i32_2 = arith.constant 0 : i32
    return %arg0, %c0_i32, %c0_i32_0, %c0_i32_1 : i32, i32, i32, i32
  }
  func.func @transform_1(%arg0: i32) -> (i32, i32, i32) {
    %c0_i32 = arith.constant 0 : i32
    %c0_i32_0 = arith.constant 0 : i32
    %c0_i32_1 = arith.constant 0 : i32
    %c0_i32_2 = arith.constant 0 : i32
    return %c0_i32, %c0_i32_0, %c0_i32_1 : i32, i32, i32
  }
  func.func @transform_2(%arg0: i32) -> (i32, i32) {
    %c0_i32 = arith.constant 0 : i32
    %c0_i32_0 = arith.constant 0 : i32
    %c0_i32_1 = arith.constant 0 : i32
    return %c0_i32, %c0_i32_0 : i32, i32
  }
  func.func @transform_3(%arg0: i32) -> (i32, i32) {
    %c0_i32 = arith.constant 0 : i32
    %c0_i32_0 = arith.constant 0 : i32
    %c0_i32_1 = arith.constant 0 : i32
    return %c0_i32, %c0_i32_0 : i32, i32
  }
  func.func @transform_4(%arg0: i32) -> (i32, i32) {
    %c0_i32 = arith.constant 0 : i32
    %c0_i32_0 = arith.constant 0 : i32
    %c0_i32_1 = arith.constant 0 : i32
    return %c0_i32, %c0_i32_0 : i32, i32
  }
  func.func @transform_5(%arg0: i32) -> (i32, i32) {
    %c0_i32 = arith.constant 0 : i32
    %c0_i32_0 = arith.constant 0 : i32
    %c0_i32_1 = arith.constant 0 : i32
    return %c0_i32, %c0_i32_0 : i32, i32
  }
  func.func @transform_6(%arg0: i32) -> (i32, i32) {
    %c0_i32 = arith.constant 0 : i32
    %c0_i32_0 = arith.constant 0 : i32
    %c0_i32_1 = arith.constant 0 : i32
    return %c0_i32, %c0_i32_0 : i32, i32
  }
  func.func @transform_7(%arg0: i32) -> (i32, i32, i32, i32) {
    %c0_i32 = arith.constant 0 : i32
    %c0_i32_0 = arith.constant 0 : i32
    %c0_i32_1 = arith.constant 0 : i32
    %c0_i32_2 = arith.constant 0 : i32
    return %arg0, %c0_i32, %c0_i32_0, %c0_i32_1 : i32, i32, i32, i32
  }
}

</mosaic_0001>

<bundles_post_ra>
// kernel: tpu_custom_call.1
= control target key start
LH: loop header
LB: loop body
LE: loop exit
PB: predicated region body
PF: predicated region fallthrough
CT: control target
= control target key end

     0   :  { %12 = vsyncpa [#allocation4], 0  ;;  %s7746_s0 = inlined_call_operand.vmem [shape: bf16[2,18,32,8], index: 0, kind: input, shape index: {}]   ;;  %s7747_s1 = inlined_call_operand.vmem [shape: bf16[3,8,384], index: 1, kind: input, shape index: {}]   ;;  %s7748_s2 = inlined_call_operand.vmem [shape: f32[1,128], index: 2, kind: input, shape index: {}]   ;;  %s7749_s3 = inlined_call_operand.vmem [shape: f32[1,128], index: 3, kind: input, shape index: {}]   ;;  %s7750_s4 = inlined_call_operand.vmem [shape: bf16[128,128], index: 4, kind: input, shape index: {}]   ;;  %s7751_s5 = inlined_call_operand.vmem [shape: f32[1,128], index: 5, kind: input, shape index: {}]   ;;  %s7752_s6 = inlined_call_operand.vmem [shape: f32[1,128], index: 6, kind: input, shape index: {}]   ;;  %s7753_s7 = inlined_call_operand.hbm [shape: f32[2,16,16,128], index: 7, kind: output, shape index: {}]  }
   0x1   :  { %14 = vsyncpa [#allocation4 + $0x1], 0  ;;  %s5907_s24 = smov 0   ;;  %s5909_s25 = smov 0  }
   0x2   :  { %s5911_s26 = smov 0   ;;  %s5913_s27 = smov 0  }
   0x3 LB: > { %s5928_s28 = sadd.s32 4294967295, %s5859_s27   ;;  %s4852_s29 = sadd.s32 4294967294, %s5859_s27   ;;  %s5859_s27 = sphi %s5913_s27, %s7840_s27   ;;  %s5855_s26 = sphi %s5911_s26, %s7839_s26   ;;  %s5851_s25 = sphi %s5909_s25, %s7838_s25   ;;  %s5847_s24 = sphi %s5907_s24, %s7837_s24  }
   0x4   : > { %s5932_s30 = sadd.s32 1, %s5859_s27   ;;  %s179_s8 = sadd.s32 1, %s5855_s26 }
   0x5   : > { %s176_s9 = ssub.s32 %s5859_s27, %s5932_s30  ;;  %p189_p0 = scmp.ne.s32.totalorder %s5855_s26, %s5851_s25 }
   0x6   : > { %p177_p1 = scmp.eq.s32.totalorder %s176_s9, 0  ;;  %p190_p2 = scmp.eq.s32.totalorder %s5928_s28, 1 }
   0x7   : > { %p195_p3 = scmp.ne.s32.totalorder %s5851_s25, %s5847_s24  ;;  %p196_p4 = scmp.eq.s32.totalorder %s4852_s29, 1 }
   0x8   : > { %s5943_s10 = scalar_select %p177_p1, %s5855_s26, %s179_s8  }
   0x9   : > { %p5945_p5 = por %p190_p2, %p189_p0  ;;  %p5949_p6 = por %p196_p4, %p195_p3 }
   0xa   : > { %p4855_p7 = scmp.ge.s32.totalorder %s5859_s27, 1  ;;  %p240_p8 = scmp.lt.s32.totalorder %s5859_s27, 3 }
   0xc   : > { %p241_p9 = pnand %p4855_p7, %p240_p8 }
   0xe   : > { %244 = sbr.rel (%p241_p9) target bundleno = 1096 (0x448), region = 48 }
  0x13   : > { %v342_v0 = vld [vmem:[%s7747_s1] sm:$0xff]  ;;  %vm609_vm0 = vcmask 1043456   ;;  %p272_p10 = scmp.lt.s32.totalorder %s5928_s28, 1  ;;  %v7754_v3 = vmov 0   ;;  %v5684_v4 = vld [vmem:[%s7747_s1 + $0x14] ss:$0 sps:$4 sm:$0xff]  }
  0x14   : > { %v4891_v1 = vcombine.high %v342_v0, %v342_v0  ;;  %v4890_v2 = vcombine.low %v342_v0, %v342_v0  ;;  %651 = vmatprep.mubr.bf16.mxu0 %v7754_v3  ;;  %865 = vmatprep.mubr.bf16.mxu1 %v7754_v3  ;;  %v5689_v5 = vld [vmem:[%s7747_s1 + $0x8] ss:$0 sps:$4 sm:$0xff]   ;;  %vm512_vm1 = vcmask 64512   ;;  %v5022_v7 = vld [vmem:[%s7747_s1 + $0xc] sm:$0xff]  ;;  %v1954_v9 = vsel %vm609_vm0, %v5684_v4, 0  ;;  %v6074_v32 = vld [vmem:[%s7747_s1 + $0x18] sm:$0xff] }
  0x15   : > { %s273_s17 = scalar_select %p272_p10, %s5928_s28, 1  ;;  %v617_v11 = vsel %vm609_vm0, %v5689_v5, 0  ;;  %v5057_v12 = vcombine.high %v5022_v7, %v5022_v7  ;;  %v5056_v26 = vcombine.low %v5022_v7, %v5022_v7  ;;  %v6062_v30 = vld [vmem:[%s7747_s1 + $0x20] ss:$0 sps:$4 sm:$0xff]   ;;  %v5223_v33 = vcombine.high %v6074_v32, %v6074_v32 }
  0x16   : > { %4893 = vmatprep.subr.msk.bf16.mxu0 %vm609_vm0, %v4891_v1  ;;  %5632 = vmatprep.subr.msk.bf16.mxu1 %vm609_vm0, %v4891_v1  ;;  %v611_v6 = vsel %vm609_vm0, %v4890_v2, 0  ;;  %v3353_v49 = vsel %vm609_vm0, %v6062_v30, 0  ;;  %v5222_v54 = vcombine.low %v6074_v32, %v6074_v32  ;;  %vm1245_vm2 = vcmask 1046528   ;;  %s269_s9 = sand.u32 1, %s5851_s25   ;;  %s5305_s15 = sshll.u32 %s5928_s28, 12 }
  0x17   : > { %634 = vmatpush1.bf16.msra.mxu0 %v611_v6  ;;  %5633 = vmatpush1.bf16.msra.mxu1 %v611_v6  ;;  %s5637_s20 = smul.u32 288, %s273_s17  ;;  %v1948_v27 = vsel %vm609_vm0, %v5056_v26, 0  ;;  %vm1438_vm3 = vcmask 1045504   ;;  %vm5863_vm4 = vmmov 0   ;;  %s4856_s13 = sshll.u32 %s269_s9, 8 }
  0x18   : > { %5635 = vmatprep.subr.msk.bf16.mxu0 %vm609_vm0, %v5684_v4  ;;  %5634 = vmatprep.subr.msk.bf16.mxu1 %vm609_vm0, %v5689_v5  ;;  %v3347_v60 = vsel %vm609_vm0, %v5222_v54, 0  ;;  %s7621_s14 = scalar_lea.vmem [#allocation3], %s4856_s13  ;;  %s7680_s18 = scalar_lea.hbm %s7753_s7, %s5305_s15 }
  0x19   : > { %s5979_s8 = scalar_lea.vmem %s7746_s0, %s5637_s20  ;;  %s4790_s16 = sshll.u32 %s7621_s14, 4  ;;  %s7682_s16 = int_to_ptr.vmem [resolvable:$true] %s4790_s16 }
  0x1a   : > { %v5685_v8 = vld [vmem:[%s5979_s8] sm:$0xff]   ;;  %v5984_v10 = vld [vmem:[%s5979_s8 + $0xc8] sm:$0xff]   ;;  %v5995_v14 = vld [vmem:[%s5979_s8 + $0xd0] sm:$0xff]   ;;  %s7706_s19 = scalar_lea.sflag [#allocation4], %s269_s9  ;;  %s5799_s20 = scalar_lea.vmem %s7682_s16, 4096 }
  0x1b   : > { %4894 = vmatmul.mubr.msk.bf16.vlgmr.msra.gmra.mxu0 %vm512_vm1, %v5685_v8  ;;  %4919 = vmatmul.mubr.msk.bf16.vlgmr.msra.gmra.mxu1 %vm512_vm1, %v5984_v10  ;;  %v5687_v13 = vld [vmem:[%s5979_s8 + $0x8] sm:$0xff]   ;;  %v5690_v15 = vld [vmem:[%s5979_s8 + $0x10] sm:$0xff]   ;;  %v6004_v16 = vld [vmem:[%s5979_s8 + $0xd8] sm:$0xff]   ;;  %p5800_p11 = scmp.ne.s32.totalorder %s7682_s16, %s5799_s20  ;;  %s5864_s21 = smov [#allocation3]  }
  0x1c   : > { %5481 = vmatpush3.bf16.msra.mxu0 %v1954_v9  ;;  %661 = vmatprep.mubr.bf16.mxu0 %v7754_v3  ;;  %v5692_v17 = vld [vmem:[%s5979_s8 + $0x18] sm:$0xff]   ;;  %v6013_v18 = vld [vmem:[%s5979_s8 + $0xe0] sm:$0xff]   ;;  %v6022_v20 = vld [vmem:[%s5979_s8 + $0xe8] sm:$0xff]   ;;  %s5803_s22 = sshll.u32 %s5864_s21, 4  ;;  %s5804_s22 = int_to_ptr.vmem [resolvable:$false] %s5803_s22 }
  0x1d   : > { %872 = vmatprep.mubr.bf16.mxu1 %v7754_v3  ;;  %5415 = vmatpush3.bf16.msra.mxu1 %v617_v11  ;;  %v5694_v19 = vld [vmem:[%s5979_s8 + $0x20] sm:$0xff]   ;;  %v5696_v21 = vld [vmem:[%s5979_s8 + $0x28] sm:$0xff]   ;;  %v6031_v22 = vld [vmem:[%s5979_s8 + $0xf0] sm:$0xff]   ;;  %p5801_p12 = pnand %p5800_p11, %p5945_p5  ;;  %s5805_s23 = scalar_lea.vmem %s5804_s22, 8192 }
  0x1e   : > { %5059 = vmatprep.subr.msk.bf16.mxu1 %vm609_vm0, %v5057_v12  ;;  %v5698_v23 = vld [vmem:[%s5979_s8 + $0x30] sm:$0xff]   ;;  %v6040_v24 = vld [vmem:[%s5979_s8 + $0xf8] sm:$0xff]   ;;  %v5701_v28 = vld [vmem:[%s5979_s8 + $0x40] sm:$0xff]   ;;  %5225 = vmatprep.subr.msk.bf16.mxu0 %vm609_vm0, %v5223_v33  ;;  %p5806_p0 = scmp.lt.s32.totalorder %s7682_s16, %s5804_s22  ;;  %p5807_p1 = scmp.lt.s32.totalorder %s5805_s23, %s5799_s20 }
  0x1f   : > { %v5700_v25 = vld [vmem:[%s5979_s8 + $0x38] sm:$0xff]   ;;  %v5704_v29 = vld [vmem:[%s5979_s8 + $0x48] sm:$0xff]   ;;  %v5705_v31 = vld [vmem:[%s5979_s8 + $0x50] sm:$0xff]   ;;  %p5802_p13 = pneg %p5801_p12 }
  0x20   : > { %v5706_v34 = vld [vmem:[%s5979_s8 + $0x58] sm:$0xff]   ;;  %v5707_v35 = vld [vmem:[%s5979_s8 + $0x60] sm:$0xff]   ;;  %v5708_v36 = vld [vmem:[%s5979_s8 + $0x68] sm:$0xff]   ;;  %p5808_p2 = por %p5807_p1, %p5806_p0 }
  0x21   : > { %v5709_v37 = vld [vmem:[%s5979_s8 + $0x70] sm:$0xff]   ;;  %v5710_v38 = vld [vmem:[%s5979_s8 + $0x78] sm:$0xff]   ;;  %v5711_v39 = vld [vmem:[%s5979_s8 + $0x80] sm:$0xff]  }
  0x22   : > { %v5712_v40 = vld [vmem:[%s5979_s8 + $0x88] sm:$0xff]   ;;  %v5713_v41 = vld [vmem:[%s5979_s8 + $0x90] sm:$0xff]   ;;  %v5714_v42 = vld [vmem:[%s5979_s8 + $0x98] sm:$0xff]   ;;  %p5809_p3 = pnand %p5808_p2, %p5802_p13 }
  0x23   : > { %4895 = vmatmul.mubr.msk.bf16.gmra.mxu0 %vm512_vm1, %v5687_v13  ;;  %4920 = vmatmul.mubr.msk.bf16.gmra.mxu1 %vm512_vm1, %v5995_v14  ;;  %v5715_v43 = vld [vmem:[%s5979_s8 + $0xa0] sm:$0xff]   ;;  %v5716_v44 = vld [vmem:[%s5979_s8 + $0xa8] sm:$0xff]   ;;  %v5717_v45 = vld [vmem:[%s5979_s8 + $0xb0] sm:$0xff]  }
  0x24   : > { %668 = vmatprep.mubr.bf16.mxu0 %v7754_v3  ;;  %882 = vmatprep.mubr.bf16.mxu1 %v7754_v3  ;;  %v5718_v46 = vld [vmem:[%s5979_s8 + $0xb8] sm:$0xff]   ;;  %v5719_v47 = vld [vmem:[%s5979_s8 + $0xc0] sm:$0xff]   ;;  %v5720_v48 = vld [vmem:[%s5979_s8 + $0x10] sm:$0xff]  }
  0x25   : > { %v5721_v50 = vld [vmem:[%s5979_s8 + $0x18] sm:$0xff]   ;;  %v5724_v58 = vld [vmem:[%s5979_s8 + $0x20] sm:$0xff]   ;;  %v5726_v9 = vld [vmem:[%s5979_s8 + $0x28] sm:$0xff]  }
  0x26   : > { %v5727_v12 = vld [vmem:[%s5979_s8 + $0x30] sm:$0xff]   ;;  %v5728_v26 = vld [vmem:[%s5979_s8 + $0x38] sm:$0xff]  }
  0x2b   : > { %4896 = vmatmul.mubr.msk.bf16.gmra.mxu0 %vm512_vm1, %v5690_v15  ;;  %4921 = vmatmul.mubr.msk.bf16.gmra.mxu1 %vm512_vm1, %v6004_v16 }
  0x2c   : > { %678 = vmatprep.mubr.bf16.mxu0 %v7754_v3  ;;  %889 = vmatprep.mubr.bf16.mxu1 %v7754_v3 }
  0x33   : > { %4897 = vmatmul.mubr.msk.bf16.gmra.mxu0 %vm512_vm1, %v5692_v17  ;;  %4922 = vmatmul.mubr.msk.bf16.gmra.mxu1 %vm512_vm1, %v6013_v18 }
  0x34   : > { %685 = vmatprep.mubr.bf16.mxu0 %v7754_v3  ;;  %899 = vmatprep.mubr.bf16.mxu1 %v7754_v3 }
  0x3b   : > { %4898 = vmatmul.mubr.msk.bf16.gmra.mxu0 %vm512_vm1, %v5694_v19  ;;  %4923 = vmatmul.mubr.msk.bf16.gmra.mxu1 %vm512_vm1, %v6022_v20 }
  0x3c   : > { %695 = vmatprep.mubr.bf16.mxu0 %v7754_v3  ;;  %906 = vmatprep.mubr.bf16.mxu1 %v7754_v3 }
  0x43   : > { %4899 = vmatmul.mubr.msk.bf16.gmra.mxu0 %vm512_vm1, %v5696_v21  ;;  %4924 = vmatmul.mubr.msk.bf16.gmra.mxu1 %vm512_vm1, %v6031_v22 }
  0x44   : > { %702 = vmatprep.mubr.bf16.mxu0 %v7754_v3  ;;  %916 = vmatprep.mubr.bf16.mxu1 %v7754_v3 }
  0x4b   : > { %4900 = vmatmul.mubr.msk.bf16.gmra.mxu0 %vm512_vm1, %v5698_v23  ;;  %4925 = vmatmul.mubr.msk.bf16.gmra.mxu1 %vm512_vm1, %v6040_v24 }
  0x4c   : > { %712 = vmatprep.mubr.bf16.mxu0 %v7754_v3  ;;  %5416 = vmatprep.mubr.msk.bf16.mxu1 %vm512_vm1, %v5685_v8 }
  0x53   : > { %4901 = vmatmul.mubr.msk.bf16.gmra.mxu0 %vm512_vm1, %v5700_v25  ;;  %5417 = vmatmul.mubr.msk.bf16.vlgmr.msra.gmra.mxu1 %vm512_vm1, %v5687_v13 }
  0x54   : > { %719 = vmatprep.mubr.bf16.mxu0 %v7754_v3  ;;  %5420 = vmatprep.mubr.msk.bf16.mxu1 %vm512_vm1, %v5690_v15 }
  0x55   : > { %1971 = vmatpush1.bf16.msra.mxu1 %v1948_v27 }
  0x56   : > { %5636 = vmatprep.subr.msk.bf16.mxu1 %vm609_vm0, %v6062_v30 }
  0x5b   : > { %4902 = vmatmul.mubr.msk.bf16.gmra.mxu0 %vm512_vm1, %v5701_v28  ;;  %5421 = vmatmul.mubr.msk.bf16.gmra.mxu1 %vm512_vm1, %v5692_v17 }
  0x5c   : > { %729 = vmatprep.mubr.bf16.mxu0 %v7754_v3  ;;  %5424 = vmatprep.mubr.msk.bf16.mxu1 %vm512_vm1, %v5694_v19 }
  0x63   : > { %4903 = vmatmul.mubr.msk.bf16.gmra.mxu0 %vm512_vm1, %v5704_v29  ;;  %5425 = vmatmul.mubr.msk.bf16.gmra.mxu1 %vm512_vm1, %v5696_v21 }
  0x64   : > { %736 = vmatprep.mubr.bf16.mxu0 %v7754_v3  ;;  %5428 = vmatprep.mubr.msk.bf16.mxu1 %vm512_vm1, %v5698_v23 }
  0x6b   : > { %4904 = vmatmul.mubr.msk.bf16.gmra.mxu0 %vm512_vm1, %v5705_v31  ;;  %5429 = vmatmul.mubr.msk.bf16.gmra.mxu1 %vm512_vm1, %v5700_v25 }
  0x6c   : > { %746 = vmatprep.mubr.bf16.mxu0 %v7754_v3  ;;  %5432 = vmatprep.mubr.msk.bf16.mxu1 %vm512_vm1, %v5701_v28  ;;  %v5729_v28 = vld [vmem:[%s5979_s8 + $0x40] sm:$0xff]  }
  0x73   : > { %4905 = vmatmul.mubr.msk.bf16.gmra.mxu0 %vm512_vm1, %v5706_v34  ;;  %5433 = vmatmul.mubr.msk.bf16.gmra.mxu1 %vm512_vm1, %v5704_v29 }
  0x74   : > { %753 = vmatprep.mubr.bf16.mxu0 %v7754_v3  ;;  %5436 = vmatprep.mubr.msk.bf16.mxu1 %vm512_vm1, %v5705_v31 }
  0x7b   : > { %4906 = vmatmul.mubr.msk.bf16.gmra.mxu0 %vm512_vm1, %v5707_v35  ;;  %5437 = vmatmul.mubr.msk.bf16.gmra.mxu1 %vm512_vm1, %v5706_v34 }
  0x7c   : > { %763 = vmatprep.mubr.bf16.mxu0 %v7754_v3  ;;  %5440 = vmatprep.mubr.msk.bf16.mxu1 %vm512_vm1, %v5707_v35 }
  0x83   : > { %4907 = vmatmul.mubr.msk.bf16.gmra.mxu0 %vm512_vm1, %v5708_v36  ;;  %5441 = vmatmul.mubr.msk.bf16.gmra.mxu1 %vm512_vm1, %v5708_v36 }
  0x84   : > { %770 = vmatprep.mubr.bf16.mxu0 %v7754_v3  ;;  %5444 = vmatprep.mubr.msk.bf16.mxu1 %vm512_vm1, %v5709_v37 }
  0x8b   : > { %4908 = vmatmul.mubr.msk.bf16.gmra.mxu0 %vm512_vm1, %v5709_v37  ;;  %5445 = vmatmul.mubr.msk.bf16.gmra.mxu1 %vm512_vm1, %v5710_v38 }
  0x8c   : > { %780 = vmatprep.mubr.bf16.mxu0 %v7754_v3  ;;  %5448 = vmatprep.mubr.msk.bf16.mxu1 %vm512_vm1, %v5711_v39 }
  0x93   : > { %4909 = vmatmul.mubr.msk.bf16.gmra.mxu0 %vm512_vm1, %v5710_v38  ;;  %5449 = vmatmul.mubr.msk.bf16.gmra.mxu1 %vm512_vm1, %v5712_v40 }
  0x94   : > { %787 = vmatprep.mubr.bf16.mxu0 %v7754_v3  ;;  %5452 = vmatprep.mubr.msk.bf16.mxu1 %vm512_vm1, %v5713_v41 }
  0x9b   : > { %4910 = vmatmul.mubr.msk.bf16.gmra.mxu0 %vm512_vm1, %v5711_v39  ;;  %5453 = vmatmul.mubr.msk.bf16.gmra.mxu1 %vm512_vm1, %v5714_v42 }
  0x9c   : > { %797 = vmatprep.mubr.bf16.mxu0 %v7754_v3  ;;  %5456 = vmatprep.mubr.msk.bf16.mxu1 %vm512_vm1, %v5715_v43 }
  0xa3   : > { %4911 = vmatmul.mubr.msk.bf16.gmra.mxu0 %vm512_vm1, %v5712_v40  ;;  %5457 = vmatmul.mubr.msk.bf16.gmra.mxu1 %vm512_vm1, %v5716_v44 }
  0xa4   : > { %804 = vmatprep.mubr.bf16.mxu0 %v7754_v3  ;;  %5460 = vmatprep.mubr.msk.bf16.mxu1 %vm512_vm1, %v5717_v45 }
  0xab   : > { %4912 = vmatmul.mubr.msk.bf16.gmra.mxu0 %vm512_vm1, %v5713_v41  ;;  %5461 = vmatmul.mubr.msk.bf16.gmra.mxu1 %vm512_vm1, %v5718_v46 }
  0xac   : > { %814 = vmatprep.mubr.bf16.mxu0 %v7754_v3  ;;  %5464 = vmatprep.mubr.msk.bf16.mxu1 %vm512_vm1, %v5719_v47 }
  0xb3   : > { %4913 = vmatmul.mubr.msk.bf16.gmra.mxu0 %vm512_vm1, %v5714_v42  ;;  %5465 = vmatmul.mubr.msk.bf16.gmra.mxu1 %vm512_vm1, %v5984_v10 }
  0xb4   : > { %821 = vmatprep.mubr.bf16.mxu0 %v7754_v3  ;;  %5468 = vmatprep.mubr.msk.bf16.mxu1 %vm512_vm1, %v5995_v14 }
  0xbb   : > { %4914 = vmatmul.mubr.msk.bf16.gmra.mxu0 %vm512_vm1, %v5715_v43  ;;  %5469 = vmatmul.mubr.msk.bf16.gmra.mxu1 %vm512_vm1, %v6004_v16  ;;  %v5730_v43 = vld [vmem:[%s5979_s8 + $0x48] sm:$0xff]  }
  0xbc   : > { %831 = vmatprep.mubr.bf16.mxu0 %v7754_v3  ;;  %5472 = vmatprep.mubr.msk.bf16.mxu1 %vm512_vm1, %v6013_v18 }
  0xc3   : > { %4915 = vmatmul.mubr.msk.bf16.gmra.mxu0 %vm512_vm1, %v5716_v44  ;;  %5473 = vmatmul.mubr.msk.bf16.gmra.mxu1 %vm512_vm1, %v6022_v20 }
  0xc4   : > { %838 = vmatprep.mubr.bf16.mxu0 %v7754_v3  ;;  %5476 = vmatprep.mubr.msk.bf16.mxu1 %vm512_vm1, %v6031_v22 }
  0xcb   : > { %4916 = vmatmul.mubr.msk.bf16.gmra.mxu0 %vm512_vm1, %v5717_v45  ;;  %5477 = vmatmul.mubr.msk.bf16.gmra.mxu1 %vm512_vm1, %v6040_v24 }
  0xcc   : > { %848 = vmatprep.mubr.bf16.mxu0 %v7754_v3  ;;  %1988 = vmatprep.mubr.bf16.mxu1 %v7754_v3 }
  0xd3   : > { %4917 = vmatmul.mubr.msk.bf16.gmra.mxu0 %vm512_vm1, %v5718_v46  ;;  %5060 = vmatmul.mubr.msk.bf16.vlgmr.msra.gmra.mxu1 %vm512_vm1, %v5720_v48  ;;  %v6204_v46 = vld [vmem:[%s5979_s8 + $0x50] sm:$0xff]  }
  0xd4   : > { %855 = vmatprep.mubr.bf16.mxu0 %v7754_v3  ;;  %1998 = vmatprep.mubr.bf16.mxu1 %v7754_v3 }
  0xd5   : > { %5547 = vmatpush3.bf16.msra.mxu1 %v3353_v49 }
  0xdb   : > { %v653_v51 = vpop.f32.mrf.mxu0  ;;  %4918 = vmatmul.mubr.msk.bf16.gmra.mxu0 %vm512_vm1, %v5719_v47  ;;  %v867_v52 = vpop.f32.mrf.mxu1  ;;  %5061 = vmatmul.mubr.msk.bf16.gmra.mxu1 %vm512_vm1, %v5721_v50 }
  0xdc   : > { %5482 = vmatprep.mubr.msk.bf16.mxu0 %vm512_vm1, %v5720_v48  ;;  %2005 = vmatprep.mubr.bf16.mxu1 %v7754_v3 }
  0xdd   : > { %v655_v53 = vpop.f32.mrf.mxu0  ;;  %v6166_v55 = vpop.f32.mrf.mxu1 }
  0xde   : > { %v1246_v61 = vrot.slane %v655_v53, 1 }
  0xdf   : > { %v657_v56 = vpop.f32.mrf.mxu0  ;;  %v870_v57 = vpop.f32.mrf.mxu1 }
  0xe1   : > { %v659_v59 = vpop.f32.mrf.mxu0  ;;  %v871_v63 = vpop.f32.mrf.mxu1 }
  0xe2   : > { %v1247_v62 = vrot.slane %v659_v59, 1  ;;  %v6220_v63 = vld [vmem:[%s5979_s8 + $0x60] sm:$0xff]  }
  0xe3   : > { %v663_v0 = vpop.f32.mrf.mxu0  ;;  %5483 = vmatmul.mubr.msk.bf16.vlgmr.msra.gmra.mxu0 %vm512_vm1, %v5721_v50  ;;  %v874_v2 = vpop.f32.mrf.mxu1  ;;  %5062 = vmatmul.mubr.msk.bf16.gmra.mxu1 %vm512_vm1, %v5724_v58 }
  0xe4   : > { %v1248_v1 = vsel %vm1245_vm2, %v1246_v61, %v1247_v62  ;;  %3370 = vmatpush1.bf16.msra.mxu0 %v3347_v60  ;;  %2015 = vmatprep.mubr.bf16.mxu1 %v7754_v3  ;;  %v6217_v61 = vld [vmem:[%s5979_s8 + $0x58] sm:$0xff]  }
  0xe5   : > { %v6173_v4 = vadd.f32 %v1248_v1, %v653_v51  ;;  %v664_v5 = vpop.f32.mrf.mxu0  ;;  %5486 = vmatprep.mubr.msk.bf16.mxu0 %vm512_vm1, %v5724_v58  ;;  %v876_v7 = vpop.f32.mrf.mxu1 }
  0xe6   : > { %v1249_v6 = vrot.slane %v664_v5, 1  ;;  %v1311_v14 = vrot.slane %v876_v7, 1 }
  0xe7   : > { %v666_v8 = vpop.f32.mrf.mxu0  ;;  %v878_v11 = vpop.f32.mrf.mxu1 }
  0xe8   : > { %v1250_v10 = vsel %vm1245_vm2, %v1247_v62, %v1249_v6 }
  0xe9   : > { %v6180_v13 = vadd.f32 %v1250_v10, %v657_v56  ;;  %v667_v15 = vpop.f32.mrf.mxu0  ;;  %v880_v16 = vpop.f32.mrf.mxu1 }
  0xea   : > { %v1312_v17 = vrot.slane %v880_v16, 1 }
  0xeb   : > { %v670_v18 = vpop.f32.mrf.mxu0  ;;  %5487 = vmatmul.mubr.msk.bf16.gmra.mxu0 %vm512_vm1, %v5726_v9  ;;  %v884_v19 = vpop.f32.mrf.mxu1  ;;  %5063 = vmatmul.mubr.msk.bf16.gmra.mxu1 %vm512_vm1, %v5726_v9 }
  0xec   : > { %5490 = vmatprep.mubr.msk.bf16.mxu0 %vm512_vm1, %v5727_v12  ;;  %v1313_v20 = vsel %vm1245_vm2, %v1311_v14, %v1312_v17  ;;  %2022 = vmatprep.mubr.bf16.mxu1 %v7754_v3 }
  0xed   : > { %v672_v21 = vpop.f32.mrf.mxu0  ;;  %v6187_v22 = vadd.f32 %v1313_v20, %v874_v2  ;;  %v885_v23 = vpop.f32.mrf.mxu1  ;;  %v6239_v20 = vld [vmem:[%s5979_s8 + $0x70] sm:$0xff]  }
  0xee   : > { %v1314_v24 = vrot.slane %v885_v23, 1  ;;  %v1251_v31 = vrot.slane %v672_v21, 1 }
  0xef   : > { %v674_v25 = vpop.f32.mrf.mxu0  ;;  %v887_v27 = vpop.f32.mrf.mxu1 }
  0xf0   : > { %v1315_v29 = vsel %vm1245_vm2, %v1312_v17, %v1314_v24  ;;  %v6235_v17 = vld [vmem:[%s5979_s8 + $0x68] sm:$0xff]  }
  0xf1   : > { %v676_v30 = vpop.f32.mrf.mxu0  ;;  %v6192_v32 = vadd.f32 %v1315_v29, %v878_v11  ;;  %v888_v34 = vpop.f32.mrf.mxu1 }
  0xf2   : > { %v1252_v33 = vrot.slane %v676_v30, 1 }
  0xf3   : > { %v680_v35 = vpop.f32.mrf.mxu0  ;;  %5491 = vmatmul.mubr.msk.bf16.gmra.mxu0 %vm512_vm1, %v5728_v26  ;;  %v891_v37 = vpop.f32.mrf.mxu1  ;;  %5064 = vmatmul.mubr.msk.bf16.gmra.mxu1 %vm512_vm1, %v5727_v12 }
  0xf4   : > { %v1253_v36 = vsel %vm1245_vm2, %v1251_v31, %v1252_v33  ;;  %5494 = vmatprep.mubr.msk.bf16.mxu0 %vm512_vm1, %v5729_v28  ;;  %2032 = vmatprep.mubr.bf16.mxu1 %v7754_v3 }
  0xf5   : > { %v6198_v38 = vadd.f32 %v1253_v36, %v670_v18  ;;  %v681_v39 = vpop.f32.mrf.mxu0  ;;  %v893_v41 = vpop.f32.mrf.mxu1  ;;  %v6253_v36 = vld [vmem:[%s5979_s8 + $0x78] sm:$0xff]  }
  0xf6   : > { %v1254_v40 = vrot.slane %v681_v39, 1  ;;  %v1316_v48 = vrot.slane %v893_v41, 1  ;;  %v6256_v39 = vld [vmem:[%s5979_s8 + $0x80] sm:$0xff]  }
  0xf7   : > { %v683_v42 = vpop.f32.mrf.mxu0  ;;  %v895_v45 = vpop.f32.mrf.mxu1 }
  0xf8   : > { %v1255_v44 = vsel %vm1245_vm2, %v1252_v33, %v1254_v40 }
  0xf9   : > { %v6206_v47 = vadd.f32 %v1255_v44, %v674_v25  ;;  %v684_v49 = vpop.f32.mrf.mxu0  ;;  %v897_v50 = vpop.f32.mrf.mxu1 }
  0xfa   : > { %v1317_v51 = vrot.slane %v897_v50, 1 }
  0xfb   : > { %v687_v52 = vpop.f32.mrf.mxu0  ;;  %5495 = vmatmul.mubr.msk.bf16.gmra.mxu0 %vm512_vm1, %v5730_v43  ;;  %v901_v53 = vpop.f32.mrf.mxu1  ;;  %5065 = vmatmul.mubr.msk.bf16.gmra.mxu1 %vm512_vm1, %v5728_v26 }
  0xfc   : > { %5498 = vmatprep.mubr.msk.bf16.mxu0 %vm512_vm1, %v6204_v46  ;;  %v1318_v54 = vsel %vm1245_vm2, %v1316_v48, %v1317_v51  ;;  %2039 = vmatprep.mubr.bf16.mxu1 %v7754_v3 }
  0xfd   : > { %v689_v56 = vpop.f32.mrf.mxu0  ;;  %v6214_v57 = vadd.f32 %v1318_v54, %v891_v37  ;;  %v902_v58 = vpop.f32.mrf.mxu1 }
  0xfe   : > { %v1319_v59 = vrot.slane %v902_v58, 1  ;;  %v1256_v2 = vrot.slane %v689_v56, 1  ;;  %v6272_v58 = vld [vmem:[%s5979_s8 + $0x88] sm:$0xff]  }
  0xff   : > { %v691_v60 = vpop.f32.mrf.mxu0  ;;  %v904_v62 = vpop.f32.mrf.mxu1 }
 0x100   : > { %v1320_v0 = vsel %vm1245_vm2, %v1317_v51, %v1319_v59  ;;  %v6276_v62 = vld [vmem:[%s5979_s8 + $0x90] sm:$0xff]  }
 0x101   : > { %v693_v1 = vpop.f32.mrf.mxu0  ;;  %v6223_v5 = vadd.f32 %v1320_v0, %v895_v45  ;;  %v905_v7 = vpop.f32.mrf.mxu1 }
 0x102   : > { %v1257_v6 = vrot.slane %v693_v1, 1 }
 0x103   : > { %v697_v8 = vpop.f32.mrf.mxu0  ;;  %5499 = vmatmul.mubr.msk.bf16.gmra.mxu0 %vm512_vm1, %v6217_v61  ;;  %v908_v10 = vpop.f32.mrf.mxu1  ;;  %5066 = vmatmul.mubr.msk.bf16.gmra.mxu1 %vm512_vm1, %v5729_v28 }
 0x104   : > { %v1258_v9 = vsel %vm1245_vm2, %v1256_v2, %v1257_v6  ;;  %5502 = vmatprep.mubr.msk.bf16.mxu0 %vm512_vm1, %v6220_v63  ;;  %2049 = vmatprep.mubr.bf16.mxu1 %v7754_v3 }
 0x105   : > { %v6231_v11 = vadd.f32 %v1258_v9, %v687_v52  ;;  %v698_v12 = vpop.f32.mrf.mxu0  ;;  %v910_v15 = vpop.f32.mrf.mxu1 }
 0x106   : > { %v1259_v14 = vrot.slane %v698_v12, 1  ;;  %v1321_v23 = vrot.slane %v910_v15, 1 }
 0x107   : > { %v700_v16 = vpop.f32.mrf.mxu0  ;;  %v912_v19 = vpop.f32.mrf.mxu1 }
 0x108   : > { %v1260_v18 = vsel %vm1245_vm2, %v1257_v6, %v1259_v14 }
 0x109   : > { %v6241_v21 = vadd.f32 %v1260_v18, %v691_v60  ;;  %v701_v24 = vpop.f32.mrf.mxu0  ;;  %v914_v25 = vpop.f32.mrf.mxu1 }
 0x10a   : > { %v1322_v26 = vrot.slane %v914_v25, 1  ;;  %v6299_v24 = vld [vmem:[%s5979_s8 + $0xa0] sm:$0xff]  }
 0x10b   : > { %v704_v27 = vpop.f32.mrf.mxu0  ;;  %5503 = vmatmul.mubr.msk.bf16.gmra.mxu0 %vm512_vm1, %v6235_v17  ;;  %v918_v28 = vpop.f32.mrf.mxu1  ;;  %5067 = vmatmul.mubr.msk.bf16.gmra.mxu1 %vm512_vm1, %v5730_v43 }
 0x10c   : > { %5506 = vmatprep.mubr.msk.bf16.mxu0 %vm512_vm1, %v6239_v20  ;;  %v1323_v29 = vsel %vm1245_vm2, %v1321_v23, %v1322_v26  ;;  %2056 = vmatprep.mubr.bf16.mxu1 %v7754_v3  ;;  %v6296_v23 = vld [vmem:[%s5979_s8 + $0x98] sm:$0xff]  }
 0x10d   : > { %v706_v30 = vpop.f32.mrf.mxu0  ;;  %v6250_v31 = vadd.f32 %v1323_v29, %v908_v10  ;;  %v919_v33 = vpop.f32.mrf.mxu1 }
 0x10e   : > { %v1324_v34 = vrot.slane %v919_v33, 1  ;;  %v1261_v42 = vrot.slane %v706_v30, 1 }
 0x10f   : > { %v708_v35 = vpop.f32.mrf.mxu0  ;;  %v921_v37 = vpop.f32.mrf.mxu1 }
 0x110   : > { %v1325_v40 = vsel %vm1245_vm2, %v1322_v26, %v1324_v34 }
 0x111   : > { %v710_v41 = vpop.f32.mrf.mxu0  ;;  %v6259_v43 = vadd.f32 %v1325_v40, %v912_v19  ;;  %v922_v45 = vpop.f32.mrf.mxu1 }
 0x112   : > { %v1262_v44 = vrot.slane %v710_v41, 1 }
 0x113   : > { %v714_v48 = vpop.f32.mrf.mxu0  ;;  %5507 = vmatmul.mubr.msk.bf16.gmra.mxu0 %vm512_vm1, %v6253_v36  ;;  %v5418_v50 = vpop.f32.mrf.mxu1  ;;  %5068 = vmatmul.mubr.msk.bf16.gmra.mxu1 %vm512_vm1, %v6204_v46 }
 0x114   : > { %v1263_v49 = vsel %vm1245_vm2, %v1261_v42, %v1262_v44  ;;  %5510 = vmatprep.mubr.msk.bf16.mxu0 %vm512_vm1, %v6256_v39  ;;  %2066 = vmatprep.mubr.bf16.mxu1 %v7754_v3  ;;  %v1442_v0 = vrot.slane %v5418_v50, 2 }
 0x115   : > { %v6268_v51 = vadd.f32 %v1263_v49, %v704_v27  ;;  %v715_v52 = vpop.f32.mrf.mxu0  ;;  %v958_v54 = vpop.f32.mrf.mxu1  ;;  %v6320_v49 = vld [vmem:[%s5979_s8 + $0xa8] sm:$0xff]  }
 0x116   : > { %v1264_v53 = vrot.slane %v715_v52, 1  ;;  %v1439_v1 = vrot.slane %v958_v54, 2 }
 0x117   : > { %v717_v56 = vpop.f32.mrf.mxu0  ;;  %v5419_v60 = vpop.f32.mrf.mxu1 }
 0x118   : > { %v1265_v59 = vsel %vm1245_vm2, %v1262_v44, %v1264_v53  ;;  %v6324_v53 = vld [vmem:[%s5979_s8 + $0xb0] sm:$0xff]  }
 0x119   : > { %v6278_v46 = vadd.f32 %v1265_v59, %v708_v35  ;;  %v718_v2 = vpop.f32.mrf.mxu0  ;;  %v961_v6 = vpop.f32.mrf.mxu1 }
 0x11a   : > { %v1440_v7 = vrot.slane %v961_v6, 2 }
 0x11b   : > { %v721_v8 = vpop.f32.mrf.mxu0  ;;  %5511 = vmatmul.mubr.msk.bf16.gmra.mxu0 %vm512_vm1, %v6272_v58  ;;  %v5422_v9 = vpop.f32.mrf.mxu1  ;;  %5069 = vmatmul.mubr.msk.bf16.gmra.mxu1 %vm512_vm1, %v6217_v61 }
 0x11c   : > { %5514 = vmatprep.mubr.msk.bf16.mxu0 %vm512_vm1, %v6276_v62  ;;  %v1441_v10 = vsel %vm1438_vm3, %v1439_v1, %v1440_v7  ;;  %v1443_v12 = vsel %vm1438_vm3, %v1440_v7, %v1442_v0  ;;  %2073 = vmatprep.mubr.bf16.mxu1 %v7754_v3  ;;  %v1447_v25 = vrot.slane %v5422_v9, 2 }
 0x11d   : > { %v723_v14 = vpop.f32.mrf.mxu0  ;;  %v6290_v15 = vadd.f32 %v1441_v10, %v6173_v4  ;;  %v6293_v16 = vadd.f32 %v1443_v12, %v6180_v13  ;;  %v973_v18 = vpop.f32.mrf.mxu1 }
 0x11e   : > { %v1444_v26 = vrot.slane %v973_v18, 2  ;;  %v1266_v28 = vrot.slane %v723_v14, 1  ;;  %v6344_v14 = vld [vmem:[%s5979_s8 + $0xb8] sm:$0xff]   ;;  %v6347_v18 = vld [vmem:[%s5979_s8 + $0xc0] sm:$0xff]  }
 0x11f   : > { %v725_v19 = vpop.f32.mrf.mxu0  ;;  %v5423_v61 = vpop.f32.mrf.mxu1 }
 0x121   : > { %v727_v27 = vpop.f32.mrf.mxu0  ;;  %v976_v30 = vpop.f32.mrf.mxu1 }
 0x122   : > { %v1267_v29 = vrot.slane %v727_v27, 1  ;;  %v1445_v33 = vrot.slane %v976_v30, 2 }
 0x123   : > { %v731_v34 = vpop.f32.mrf.mxu0  ;;  %5515 = vmatmul.mubr.msk.bf16.gmra.mxu0 %vm512_vm1, %v6296_v23  ;;  %v5426_v13 = vpop.f32.mrf.mxu1  ;;  %5070 = vmatmul.mubr.msk.bf16.gmra.mxu1 %vm512_vm1, %v6220_v63 }
 0x124   : > { %v1268_v4 = vsel %vm1245_vm2, %v1266_v28, %v1267_v29  ;;  %5518 = vmatprep.mubr.msk.bf16.mxu0 %vm512_vm1, %v6299_v24  ;;  %v1446_v37 = vsel %vm1438_vm3, %v1444_v26, %v1445_v33  ;;  %v1448_v40 = vsel %vm1438_vm3, %v1445_v33, %v1447_v25  ;;  %2083 = vmatprep.mubr.bf16.mxu1 %v7754_v3  ;;  %v1452_v54 = vrot.slane %v5426_v13, 2 }
 0x125   : > { %v6308_v35 = vadd.f32 %v1268_v4, %v721_v8  ;;  %v732_v41 = vpop.f32.mrf.mxu0  ;;  %v6314_v42 = vadd.f32 %v1446_v37, %v6198_v38  ;;  %v6317_v44 = vadd.f32 %v1448_v40, %v6206_v47  ;;  %v988_v63 = vpop.f32.mrf.mxu1 }
 0x126   : > { %v1269_v45 = vrot.slane %v732_v41, 1  ;;  %v1449_v59 = vrot.slane %v988_v63, 2  ;;  %v6366_v63 = vld [vmem:[%s5979_s8 + $0xc8] sm:$0xff]  }
 0x127   : > { %v734_v48 = vpop.f32.mrf.mxu0  ;;  %v5427_v52 = vpop.f32.mrf.mxu1 }
 0x128   : > { %v1270_v50 = vsel %vm1245_vm2, %v1267_v29, %v1269_v45  ;;  %v6370_v52 = vld [vmem:[%s5979_s8 + $0xd0] sm:$0xff]  }
 0x129   : > { %v6326_v56 = vadd.f32 %v1270_v50, %v725_v19  ;;  %v735_v60 = vpop.f32.mrf.mxu0  ;;  %v991_v38 = vpop.f32.mrf.mxu1 }
 0x12a   : > { %v1450_v0 = vrot.slane %v991_v38, 2 }
 0x12b   : > { %v738_v47 = vpop.f32.mrf.mxu0  ;;  %5519 = vmatmul.mubr.msk.bf16.gmra.mxu0 %vm512_vm1, %v6320_v49  ;;  %v5430_v1 = vpop.f32.mrf.mxu1  ;;  %5071 = vmatmul.mubr.msk.bf16.gmra.mxu1 %vm512_vm1, %v6235_v17 }
 0x12c   : > { %5522 = vmatprep.mubr.msk.bf16.mxu0 %vm512_vm1, %v6324_v53  ;;  %v1451_v2 = vsel %vm1438_vm3, %v1449_v59, %v1450_v0  ;;  %v1453_v6 = vsel %vm1438_vm3, %v1450_v0, %v1452_v54  ;;  %2090 = vmatprep.mubr.bf16.mxu1 %v7754_v3  ;;  %v1457_v19 = vrot.slane %v5430_v1, 2 }
 0x12d   : > { %v740_v7 = vpop.f32.mrf.mxu0  ;;  %v6338_v8 = vadd.f32 %v1451_v2, %v6231_v11  ;;  %v6341_v9 = vadd.f32 %v1453_v6, %v6241_v21  ;;  %v1003_v10 = vpop.f32.mrf.mxu1 }
 0x12e   : > { %v1454_v61 = vrot.slane %v1003_v10, 2  ;;  %v1271_v26 = vrot.slane %v740_v7, 1 }
 0x12f   : > { %v742_v12 = vpop.f32.mrf.mxu0  ;;  %v5431_v17 = vpop.f32.mrf.mxu1 }
 0x131   : > { %v744_v25 = vpop.f32.mrf.mxu0  ;;  %v1006_v28 = vpop.f32.mrf.mxu1 }
 0x132   : > { %v1272_v27 = vrot.slane %v744_v25, 1  ;;  %v1455_v29 = vrot.slane %v1006_v28, 2 }
 0x133   : > { %v748_v30 = vpop.f32.mrf.mxu0  ;;  %5523 = vmatmul.mubr.msk.bf16.gmra.mxu0 %vm512_vm1, %v6344_v14  ;;  %v5434_v21 = vpop.f32.mrf.mxu1  ;;  %5072 = vmatmul.mubr.msk.bf16.gmra.mxu1 %vm512_vm1, %v6239_v20 }
 0x134   : > { %v1273_v11 = vsel %vm1245_vm2, %v1271_v26, %v1272_v27  ;;  %5526 = vmatprep.mubr.msk.bf16.mxu0 %vm512_vm1, %v6347_v18  ;;  %v1456_v34 = vsel %vm1438_vm3, %v1454_v61, %v1455_v29  ;;  %v1458_v4 = vsel %vm1438_vm3, %v1455_v29, %v1457_v19  ;;  %2100 = vmatprep.mubr.bf16.mxu1 %v7754_v3  ;;  %v1462_v54 = vrot.slane %v5434_v21, 2  ;;  %v6388_v19 = vld [vmem:[%s5979_s8 + $0xd8] sm:$0xff]   ;;  %v6391_v61 = vld [vmem:[%s5979_s8 + $0xe0] sm:$0xff]  }
 0x135   : > { %v1368_v33 = vadd.f32 %v1273_v11, %v738_v47  ;;  %v749_v13 = vpop.f32.mrf.mxu0  ;;  %v6360_v37 = vadd.f32 %v1456_v34, %v6268_v51  ;;  %v6363_v40 = vadd.f32 %v1458_v4, %v6278_v46  ;;  %v1018_v45 = vpop.f32.mrf.mxu1 }
 0x136   : > { %v1274_v41 = vrot.slane %v749_v13, 1  ;;  %v1459_v60 = vrot.slane %v1018_v45, 2 }
 0x137   : > { %v751_v20 = vpop.f32.mrf.mxu0  ;;  %v5435_v50 = vpop.f32.mrf.mxu1 }
 0x138   : > { %v1275_v48 = vsel %vm1245_vm2, %v1272_v27, %v1274_v41 }
 0x139   : > { %v1369_v59 = vadd.f32 %v1275_v48, %v742_v12  ;;  %v752_v38 = vpop.f32.mrf.mxu0  ;;  %v1021_v51 = vpop.f32.mrf.mxu1 }
 0x13a   : > { %v1460_v0 = vrot.slane %v1021_v51, 2  ;;  %v6412_v51 = vld [vmem:[%s5979_s8 + $0xf0] sm:$0xff]  }
 0x13b   : > { %v755_v46 = vpop.f32.mrf.mxu0  ;;  %5527 = vmatmul.mubr.msk.bf16.gmra.mxu0 %vm512_vm1, %v6366_v63  ;;  %v5438_v47 = vpop.f32.mrf.mxu1  ;;  %5073 = vmatmul.mubr.msk.bf16.gmra.mxu1 %vm512_vm1, %v6253_v36 }
 0x13c   : > { %5530 = vmatprep.mubr.msk.bf16.mxu0 %vm512_vm1, %v6370_v52  ;;  %v1461_v1 = vsel %vm1438_vm3, %v1459_v60, %v1460_v0  ;;  %v1463_v2 = vsel %vm1438_vm3, %v1460_v0, %v1462_v54  ;;  %2107 = vmatprep.mubr.bf16.mxu1 %v7754_v3  ;;  %v1467_v25 = vrot.slane %v5438_v47, 2  ;;  %v6408_v60 = vld [vmem:[%s5979_s8 + $0xe8] sm:$0xff]  }
 0x13d   : > { %v757_v6 = vpop.f32.mrf.mxu0  ;;  %v6382_v7 = vadd.f32 %v1461_v1, %v6308_v35  ;;  %v6385_v10 = vadd.f32 %v1463_v2, %v6326_v56  ;;  %v1033_v12 = vpop.f32.mrf.mxu1 }
 0x13e   : > { %v1464_v26 = vrot.slane %v1033_v12, 2  ;;  %v1276_v28 = vrot.slane %v757_v6, 1 }
 0x13f   : > { %v759_v17 = vpop.f32.mrf.mxu0  ;;  %v5439_v36 = vpop.f32.mrf.mxu1 }
 0x141   : > { %v761_v27 = vpop.f32.mrf.mxu0  ;;  %v1036_v30 = vpop.f32.mrf.mxu1 }
 0x142   : > { %v1277_v29 = vrot.slane %v761_v27, 1  ;;  %v1465_v11 = vrot.slane %v1036_v30, 2 }
 0x143   : > { %v765_v21 = vpop.f32.mrf.mxu0  ;;  %5531 = vmatmul.mubr.msk.bf16.gmra.mxu0 %vm512_vm1, %v6388_v19  ;;  %v5442_v56 = vpop.f32.mrf.mxu1  ;;  %5074 = vmatmul.mubr.msk.bf16.gmra.mxu1 %vm512_vm1, %v6256_v39 }
 0x144   : > { %v1278_v35 = vsel %vm1245_vm2, %v1276_v28, %v1277_v29  ;;  %5534 = vmatprep.mubr.msk.bf16.mxu0 %vm512_vm1, %v6391_v61  ;;  %v1466_v4 = vsel %vm1438_vm3, %v1464_v26, %v1465_v11  ;;  %v1468_v13 = vsel %vm1438_vm3, %v1465_v11, %v1467_v25  ;;  %2117 = vmatprep.mubr.bf16.mxu1 %v7754_v3  ;;  %v1472_v0 = vrot.slane %v5442_v56, 2 }
 0x145   : > { %v1370_v34 = vadd.f32 %v1278_v35, %v755_v46  ;;  %v766_v41 = vpop.f32.mrf.mxu0  ;;  %v6403_v45 = vadd.f32 %v1466_v4, %v1368_v33  ;;  %v6405_v20 = vadd.f32 %v1468_v13, %v1369_v59  ;;  %v1048_v50 = vpop.f32.mrf.mxu1 }
 0x146   : > { %v1279_v48 = vrot.slane %v766_v41, 1  ;;  %v1469_v47 = vrot.slane %v1048_v50, 2 }
 0x147   : > { %v768_v54 = vpop.f32.mrf.mxu0  ;;  %v5443_v38 = vpop.f32.mrf.mxu1 }
 0x148   : > { %v1280_v39 = vsel %vm1245_vm2, %v1277_v29, %v1279_v48  ;;  %v6428_v29 = vld [vmem:[%s5979_s8 + $0xf8] sm:$0xff]  }
 0x149   : > { %v1371_v46 = vadd.f32 %v1280_v39, %v759_v17  ;;  %v769_v1 = vpop.f32.mrf.mxu0  ;;  %v1051_v2 = vpop.f32.mrf.mxu1 }
 0x14a   : > { %v1470_v33 = vrot.slane %v1051_v2, 2 }
 0x14b   : > { %v772_v59 = vpop.f32.mrf.mxu0  ;;  %5535 = vmatmul.mubr.msk.bf16.gmra.mxu0 %vm512_vm1, %v6408_v60  ;;  %v5446_v6 = vpop.f32.mrf.mxu1  ;;  %5075 = vmatmul.mubr.msk.bf16.gmra.mxu1 %vm512_vm1, %v6272_v58  ;;  %v6431_v58 = vld [vmem:[%s5979_s8 + $0x100] sm:$0xff]  }
 0x14c   : > { %5538 = vmatprep.mubr.msk.bf16.mxu0 %vm512_vm1, %v6412_v51  ;;  %v1471_v12 = vsel %vm1438_vm3, %v1469_v47, %v1470_v33  ;;  %v1473_v17 = vsel %vm1438_vm3, %v1470_v33, %v1472_v0  ;;  %2124 = vmatprep.mubr.bf16.mxu1 %v7754_v3  ;;  %v1477_v11 = vrot.slane %v5446_v6, 2  ;;  %v6446_v33 = vld [vmem:[%s5979_s8 + $0x108] sm:$0xff]  }
 0x14d   : > { %v774_v36 = vpop.f32.mrf.mxu0  ;;  %v6423_v25 = vadd.f32 %v1471_v12, %v1370_v34  ;;  %v6425_v26 = vadd.f32 %v1473_v17, %v1371_v46  ;;  %v1063_v27 = vpop.f32.mrf.mxu1 }
 0x14e   : > { %v1474_v21 = vrot.slane %v1063_v27, 2  ;;  %v1281_v56 = vrot.slane %v774_v36, 1 }
 0x14f   : > { %v776_v28 = vpop.f32.mrf.mxu0  ;;  %v5447_v30 = vpop.f32.mrf.mxu1 }
 0x151   : > { %v778_v35 = vpop.f32.mrf.mxu0  ;;  %v1066_v13 = vpop.f32.mrf.mxu1 }
 0x152   : > { %v1282_v4 = vrot.slane %v778_v35, 1  ;;  %v1475_v41 = vrot.slane %v1066_v13, 2 }
 0x153   : > { %v782_v48 = vpop.f32.mrf.mxu0  ;;  %5539 = vmatmul.mubr.msk.bf16.gmra.mxu0 %vm512_vm1, %v6428_v29  ;;  %v5450_v50 = vpop.f32.mrf.mxu1  ;;  %5076 = vmatmul.mubr.msk.bf16.gmra.mxu1 %vm512_vm1, %v6276_v62 }
 0x154   : > { %v1283_v34 = vsel %vm1245_vm2, %v1281_v56, %v1282_v4  ;;  %5542 = vmatprep.mubr.msk.bf16.mxu0 %vm512_vm1, %v6431_v58  ;;  %v1476_v39 = vsel %vm1438_vm3, %v1474_v21, %v1475_v41  ;;  %v1478_v38 = vsel %vm1438_vm3, %v1475_v41, %v1477_v11  ;;  %2134 = vmatprep.mubr.bf16.mxu1 %v7754_v3  ;;  %v1482_v12 = vrot.slane %v5450_v50, 2  ;;  %v6460_v48 = vld [vmem:[%s5979_s8 + $0x20] sm:$0xff]  }
 0x155   : > { %v1372_v54 = vadd.f32 %v1283_v34, %v772_v59  ;;  %v783_v0 = vpop.f32.mrf.mxu0  ;;  %v1078_v47 = vpop.f32.mrf.mxu1 }
 0x156   : > { %v1284_v46 = vrot.slane %v783_v0, 1  ;;  %v1479_v59 = vrot.slane %v1078_v47, 2 }
 0x157   : > { %v6443_v1 = vadd.f32 %v1476_v39, %v1372_v54  ;;  %v785_v2 = vpop.f32.mrf.mxu0  ;;  %v5451_v6 = vpop.f32.mrf.mxu1 }
 0x158   : > { %v1285_v62 = vsel %vm1245_vm2, %v1282_v4, %v1284_v46 }
 0x159   : > { %v1373_v17 = vadd.f32 %v1285_v62, %v776_v28  ;;  %v786_v36 = vpop.f32.mrf.mxu0  ;;  %v1081_v27 = vpop.f32.mrf.mxu1 }
 0x15a   : > { %v1480_v11 = vrot.slane %v1081_v27, 2 }
 0x15b   : > { %v6449_v30 = vadd.f32 %v1478_v38, %v1373_v17  ;;  %v789_v21 = vpop.f32.mrf.mxu0  ;;  %5543 = vmatmul.mubr.msk.bf16.gmra.mxu0 %vm512_vm1, %v6446_v33  ;;  %v5454_v35 = vpop.f32.mrf.mxu1  ;;  %5077 = vmatmul.mubr.msk.bf16.gmra.mxu1 %vm512_vm1, %v6296_v23 }
 0x15c   : > { %3387 = vmatprep.mubr.bf16.mxu0 %v7754_v3  ;;  %v1481_v56 = vsel %vm1438_vm3, %v1479_v59, %v1480_v11  ;;  %v1483_v28 = vsel %vm1438_vm3, %v1480_v11, %v1482_v12  ;;  %2141 = vmatprep.mubr.bf16.mxu1 %v7754_v3  ;;  %v1487_v50 = vrot.slane %v5454_v35, 2 }
 0x15d   : > { %v791_v4 = vpop.f32.mrf.mxu0  ;;  %v1093_v13 = vpop.f32.mrf.mxu1 }
 0x15e   : > { %v1484_v54 = vrot.slane %v1093_v13, 2  ;;  %v1286_v38 = vrot.slane %v791_v4, 1  ;;  %v6474_v4 = vld [vmem:[%s5979_s8 + $0x28] sm:$0xff]  }
 0x15f   : > { %v793_v41 = vpop.f32.mrf.mxu0  ;;  %v5455_v34 = vpop.f32.mrf.mxu1 }
 0x161   : > { %v795_v39 = vpop.f32.mrf.mxu0  ;;  %v1096_v23 = vpop.f32.mrf.mxu1 }
 0x162   : > { %v1287_v0 = vrot.slane %v795_v39, 1  ;;  %v1485_v46 = vrot.slane %v1096_v23, 2 }
 0x163   : > { %v799_v47 = vpop.f32.mrf.mxu0  ;;  %5226 = vmatmul.mubr.msk.bf16.vlgmr.msra.gmra.mxu0 %vm512_vm1, %v6460_v48  ;;  %v5458_v62 = vpop.f32.mrf.mxu1  ;;  %5078 = vmatmul.mubr.msk.bf16.gmra.mxu1 %vm512_vm1, %v6299_v24 }
 0x164   : > { %v1288_v2 = vsel %vm1245_vm2, %v1286_v38, %v1287_v0  ;;  %3397 = vmatprep.mubr.bf16.mxu0 %v7754_v3  ;;  %v1486_v12 = vsel %vm1438_vm3, %v1484_v54, %v1485_v46  ;;  %v1488_v17 = vsel %vm1438_vm3, %v1485_v46, %v1487_v50  ;;  %2151 = vmatprep.mubr.bf16.mxu1 %v7754_v3  ;;  %v1492_v34 = vrot.slane %v5458_v62, 2  ;;  %v6492_v62 = vld [vmem:[%s5979_s8 + $0x30] sm:$0xff]  }
 0x165   : > { %v1374_v6 = vadd.f32 %v1288_v2, %v789_v21  ;;  %v800_v59 = vpop.f32.mrf.mxu0  ;;  %v1108_v27 = vpop.f32.mrf.mxu1 }
 0x166   : > { %v1289_v36 = vrot.slane %v800_v59, 1  ;;  %v1489_v21 = vrot.slane %v1108_v27, 2 }
 0x167   : > { %v6471_v11 = vadd.f32 %v1481_v56, %v1374_v6  ;;  %v802_v35 = vpop.f32.mrf.mxu0  ;;  %v5459_v24 = vpop.f32.mrf.mxu1 }
 0x168   : > { %v1290_v13 = vsel %vm1245_vm2, %v1287_v0, %v1289_v36 }
 0x169   : > { %7781 = vst [vmem:[#allocation6_spill] sm:$0xff] %v6471_v11  ;;  %v1375_v39 = vadd.f32 %v1290_v13, %v793_v41  ;;  %v803_v54 = vpop.f32.mrf.mxu0  ;;  %v1111_v38 = vpop.f32.mrf.mxu1 }
 0x16a   : > { %v1490_v23 = vrot.slane %v1111_v38, 2 }
 0x16b   : > { %v6477_v50 = vadd.f32 %v1483_v28, %v1375_v39  ;;  %v806_v46 = vpop.f32.mrf.mxu0  ;;  %5227 = vmatmul.mubr.msk.bf16.gmra.mxu0 %vm512_vm1, %v6474_v4  ;;  %v5462_v56 = vpop.f32.mrf.mxu1  ;;  %5079 = vmatmul.mubr.msk.bf16.gmra.mxu1 %vm512_vm1, %v6320_v49 }
 0x16c   : > { %3404 = vmatprep.mubr.bf16.mxu0 %v7754_v3  ;;  %v6485_v0 = vsel %vm1438_vm3, %v1489_v21, %v1490_v23  ;;  %v6488_v41 = vsel %vm1438_vm3, %v1490_v23, %v1492_v34  ;;  %2158 = vmatprep.mubr.bf16.mxu1 %v7754_v3  ;;  %v1497_v59 = vrot.slane %v5462_v56, 2 }
 0x16d   : > { %7782 = vst [vmem:[#allocation7_spill] sm:$0xff] %v6477_v50  ;;  %v808_v47 = vpop.f32.mrf.mxu0  ;;  %v1123_v28 = vpop.f32.mrf.mxu1 }
 0x16e   : > { %v1494_v36 = vrot.slane %v1123_v28, 2  ;;  %v1291_v49 = vrot.slane %v808_v47, 1 }
 0x16f   : > { %v810_v2 = vpop.f32.mrf.mxu0  ;;  %v5463_v6 = vpop.f32.mrf.mxu1 }
 0x171   : > { %v812_v27 = vpop.f32.mrf.mxu0  ;;  %v1126_v13 = vpop.f32.mrf.mxu1 }
 0x172   : > { %v1292_v35 = vrot.slane %v812_v27, 1  ;;  %v1495_v24 = vrot.slane %v1126_v13, 2 }
 0x173   : > { %v816_v39 = vpop.f32.mrf.mxu0  ;;  %5228 = vmatmul.mubr.msk.bf16.gmra.mxu0 %vm512_vm1, %v6492_v62  ;;  %v5466_v21 = vpop.f32.mrf.mxu1  ;;  %5080 = vmatmul.mubr.msk.bf16.gmra.mxu1 %vm512_vm1, %v6324_v53 }
 0x174   : > { %v1293_v34 = vsel %vm1245_vm2, %v1291_v49, %v1292_v35  ;;  %3414 = vmatprep.mubr.bf16.mxu0 %v7754_v3  ;;  %v6501_v38 = vsel %vm1438_vm3, %v1494_v36, %v1495_v24  ;;  %v6504_v23 = vsel %vm1438_vm3, %v1495_v24, %v1497_v59  ;;  %2168 = vmatprep.mubr.bf16.mxu1 %v7754_v3  ;;  %v6510_v49 = vld [vmem:[%s5979_s8 + $0x38] sm:$0xff]  }
 0x175   : > { %v1376_v54 = vadd.f32 %v1293_v34, %v806_v46  ;;  %v817_v56 = vpop.f32.mrf.mxu0  ;;  %v1138_v28 = vpop.f32.mrf.mxu1  ;;  %v1502_v46 = vrot.slane %v5466_v21, 2 }
 0x176   : > { %v1294_v47 = vrot.slane %v817_v56, 1  ;;  %v1499_v36 = vrot.slane %v1138_v28, 2 }
 0x177   : > { %v6507_v6 = vadd.f32 %v1486_v12, %v1376_v54  ;;  %v819_v27 = vpop.f32.mrf.mxu0  ;;  %v5467_v13 = vpop.f32.mrf.mxu1  ;;  %v7785_v54 = vmov 0  }
 0x178   : > { %v1295_v53 = vsel %vm1245_vm2, %v1292_v35, %v1294_v47  ;;  %v6528_v47 = vld [vmem:[%s5979_s8 + $0x40] sm:$0xff]  }
 0x179   : > { %7783 = vst [vmem:[#allocation8_spill] sm:$0xff] %v6507_v6  ;;  %v1377_v39 = vadd.f32 %v1295_v53, %v810_v2  ;;  %v820_v34 = vpop.f32.mrf.mxu0  ;;  %v1141_v59 = vpop.f32.mrf.mxu1 }
 0x17a   : > { %v1500_v50 = vrot.slane %v1141_v59, 2 }
 0x17b   : > { %v6513_v24 = vadd.f32 %v1488_v17, %v1377_v39  ;;  %v823_v3 = vpop.f32.mrf.mxu0  ;;  %5229 = vmatmul.mubr.msk.bf16.gmra.mxu0 %vm512_vm1, %v6510_v49  ;;  %v5470_v12 = vpop.f32.mrf.mxu1  ;;  %5081 = vmatmul.mubr.msk.bf16.gmra.mxu1 %vm512_vm1, %v6344_v14 }
 0x17c   : > { %3421 = vmatprep.mubr.bf16.mxu0 %v7785_v54  ;;  %v6521_v35 = vsel %vm1438_vm3, %v1499_v36, %v1500_v50  ;;  %v6524_v2 = vsel %vm1438_vm3, %v1500_v50, %v1502_v46  ;;  %2175 = vmatprep.mubr.bf16.mxu1 %v7785_v54  ;;  %v1507_v27 = vrot.slane %v5470_v12, 2 }
 0x17d   : > { %7784 = vst [vmem:[#allocation9_spill] sm:$0xff] %v6513_v24  ;;  %v825_v21 = vpop.f32.mrf.mxu0  ;;  %v1153_v17 = vpop.f32.mrf.mxu1 }
 0x17e   : > { %v1504_v53 = vrot.slane %v1153_v17, 2  ;;  %v1296_v14 = vrot.slane %v825_v21, 1 }
 0x17f   : > { %v827_v56 = vpop.f32.mrf.mxu0  ;;  %v5471_v28 = vpop.f32.mrf.mxu1 }
 0x181   : > { %v829_v13 = vpop.f32.mrf.mxu0  ;;  %v1156_v34 = vpop.f32.mrf.mxu1 }
 0x182   : > { %v1297_v39 = vrot.slane %v829_v13, 1  ;;  %v1505_v59 = vrot.slane %v1156_v34, 2 }
 0x183   : > { %v833_v36 = vpop.f32.mrf.mxu0  ;;  %5230 = vmatmul.mubr.msk.bf16.gmra.mxu0 %vm512_vm1, %v6528_v47  ;;  %v5474_v46 = vpop.f32.mrf.mxu1  ;;  %5082 = vmatmul.mubr.msk.bf16.gmra.mxu1 %vm512_vm1, %v6347_v18 }
 0x184   : > { %v1298_v50 = vsel %vm1245_vm2, %v1296_v14, %v1297_v39  ;;  %3431 = vmatprep.mubr.bf16.mxu0 %v7785_v54  ;;  %v1506_v17 = vsel %vm1438_vm3, %v1504_v53, %v1505_v59  ;;  %v1508_v21 = vsel %vm1438_vm3, %v1505_v59, %v1507_v27  ;;  %2185 = vmatprep.mubr.bf16.mxu1 %v7785_v54  ;;  %v1512_v59 = vrot.slane %v5474_v46, 2 }
 0x185   : > { %v1378_v12 = vadd.f32 %v1298_v50, %v823_v3  ;;  %v834_v28 = vpop.f32.mrf.mxu0  ;;  %v6540_v13 = vadd.f32 %v1506_v17, %v6187_v22  ;;  %v6543_v34 = vadd.f32 %v1508_v21, %v6192_v32  ;;  %v1168_v36 = vpop.f32.mrf.mxu1  ;;  %v6549_v3 = vld [vmem:[%s5979_s8 + $0x48] sm:$0xff]  }
 0x186   : > { %v1299_v14 = vrot.slane %v834_v28, 1  ;;  %v1509_v6 = vrot.slane %v1168_v36, 2  ;;  %v6570_v28 = vld [vmem:[%s5979_s8 + $0x50] sm:$0xff]  }
 0x187   : > { %v6546_v18 = vadd.f32 %v6485_v0, %v1378_v12  ;;  %v836_v24 = vpop.f32.mrf.mxu0  ;;  %v5475_v27 = vpop.f32.mrf.mxu1 }
 0x188   : > { %v1300_v53 = vsel %vm1245_vm2, %v1297_v39, %v1299_v14 }
 0x189   : > { %v1379_v50 = vadd.f32 %v1300_v53, %v827_v56  ;;  %v837_v11 = vpop.f32.mrf.mxu0  ;;  %v1171_v22 = vpop.f32.mrf.mxu1 }
 0x18a   : > { %v1510_v17 = vrot.slane %v1171_v22, 2 }
 0x18b   : > { %v6553_v32 = vadd.f32 %v6488_v41, %v1379_v50  ;;  %v840_v21 = vpop.f32.mrf.mxu0  ;;  %5231 = vmatmul.mubr.msk.bf16.gmra.mxu0 %vm512_vm1, %v6549_v3  ;;  %v5478_v0 = vpop.f32.mrf.mxu1  ;;  %5083 = vmatmul.mubr.msk.bf16.gmra.mxu1 %vm512_vm1, %v6366_v63 }
 0x18c   : > { %3438 = vmatprep.mubr.bf16.mxu0 %v7785_v54  ;;  %v1511_v24 = vsel %vm1438_vm3, %v1509_v6, %v1510_v17  ;;  %v1513_v11 = vsel %vm1438_vm3, %v1510_v17, %v1512_v59  ;;  %2192 = vmatprep.mubr.bf16.mxu1 %v7785_v54  ;;  %v1517_v14 = vrot.slane %v5478_v0, 2 }
 0x18d   : > { %v842_v56 = vpop.f32.mrf.mxu0  ;;  %v6564_v41 = vadd.f32 %v1511_v24, %v6214_v57  ;;  %v6567_v39 = vadd.f32 %v1513_v11, %v6223_v5  ;;  %v1183_v46 = vpop.f32.mrf.mxu1 }
 0x18e   : > { %v1514_v36 = vrot.slane %v1183_v46, 2  ;;  %v1301_v6 = vrot.slane %v842_v56, 1 }
 0x18f   : > { %v844_v12 = vpop.f32.mrf.mxu0  ;;  %v5479_v63 = vpop.f32.mrf.mxu1 }
 0x191   : > { %v846_v53 = vpop.f32.mrf.mxu0  ;;  %v1186_v59 = vpop.f32.mrf.mxu1 }
 0x192   : > { %v1302_v27 = vrot.slane %v846_v53, 1  ;;  %v1515_v50 = vrot.slane %v1186_v59, 2 }
 0x193   : > { %v850_v22 = vpop.f32.mrf.mxu0  ;;  %5232 = vmatmul.mubr.msk.bf16.gmra.mxu0 %vm512_vm1, %v6570_v28  ;;  %v1990_v5 = vpop.f32.mrf.mxu1  ;;  %5084 = vmatmul.mubr.msk.bf16.gmra.mxu1 %vm512_vm1, %v6370_v52 }
 0x194   : > { %v1303_v57 = vsel %vm1245_vm2, %v1301_v6, %v1302_v27  ;;  %3448 = vmatprep.mubr.bf16.mxu0 %v7785_v54  ;;  %v1516_v0 = vsel %vm1438_vm3, %v1514_v36, %v1515_v50  ;;  %v1518_v24 = vsel %vm1438_vm3, %v1515_v50, %v1517_v14  ;;  %2202 = vmatprep.mubr.bf16.mxu1 %v7785_v54 }
 0x195   : > { %v1380_v17 = vadd.f32 %v1303_v57, %v840_v21  ;;  %v851_v11 = vpop.f32.mrf.mxu0  ;;  %v6582_v56 = vadd.f32 %v1516_v0, %v6250_v31  ;;  %v6585_v46 = vadd.f32 %v1518_v24, %v6259_v43  ;;  %v1992_v53 = vpop.f32.mrf.mxu1  ;;  %v6591_v21 = vld [vmem:[%s5979_s8 + $0x58] sm:$0xff]  }
 0x196   : > { %v1304_v63 = vrot.slane %v851_v11, 1  ;;  %v2582_v50 = vrot.slane %v1992_v53, 1 }
 0x197   : > { %7786 = vst [vmem:[#allocation10_spill] sm:$0xff] %v6585_v46  ;;  %v6588_v52 = vadd.f32 %v6501_v38, %v1380_v17  ;;  %v853_v6 = vpop.f32.mrf.mxu0  ;;  %v1994_v14 = vpop.f32.mrf.mxu1 }
 0x198   : > { %v1305_v36 = vsel %vm1245_vm2, %v1302_v27, %v1304_v63  ;;  %v6605_v63 = vld [vmem:[%s5979_s8 + $0x60] sm:$0xff]  }
 0x199   : > { %v1381_v59 = vadd.f32 %v1305_v36, %v844_v12  ;;  %v854_v22 = vpop.f32.mrf.mxu0  ;;  %v1996_v31 = vpop.f32.mrf.mxu1 }
 0x19a   : > { %v2583_v43 = vrot.slane %v1996_v31, 1 }
 0x19b   : > { %v6595_v57 = vadd.f32 %v6504_v23, %v1381_v59  ;;  %v857_v0 = vpop.f32.mrf.mxu0  ;;  %5233 = vmatmul.mubr.msk.bf16.gmra.mxu0 %vm512_vm1, %v6591_v21  ;;  %v2000_v38 = vpop.f32.mrf.mxu1  ;;  %5085 = vmatmul.mubr.msk.bf16.gmra.mxu1 %vm512_vm1, %v6388_v19  ;;  %v1309_v59 = vrot.slane %v6166_v55, 1 }
 0x19c   : > { %3455 = vmatprep.mubr.bf16.mxu0 %v7785_v54  ;;  %v2584_v12 = vsel %vm1245_vm2, %v2582_v50, %v2583_v43  ;;  %2209 = vmatprep.mubr.bf16.mxu1 %v7785_v54 }
 0x19d   : > { %v859_v27 = vpop.f32.mrf.mxu0  ;;  %v2694_v17 = vadd.f32 %v2584_v12, %v1990_v5  ;;  %v2001_v24 = vpop.f32.mrf.mxu1 }
 0x19e   : > { %v2585_v23 = vrot.slane %v2001_v24, 1  ;;  %v1306_v19 = vrot.slane %v859_v27, 1 }
 0x19f   : > { %v861_v11 = vpop.f32.mrf.mxu0  ;;  %v2003_v53 = vpop.f32.mrf.mxu1 }
 0x1a0   : > { %v2586_v6 = vsel %vm1245_vm2, %v2583_v43, %v2585_v23 }
 0x1a1   : > { %v863_v36 = vpop.f32.mrf.mxu0  ;;  %v2695_v22 = vadd.f32 %v2586_v6, %v1994_v14  ;;  %v2004_v38 = vpop.f32.mrf.mxu1 }
 0x1a2   : > { %v1307_v31 = vrot.slane %v863_v36, 1  ;;  %v6624_v36 = vld [vmem:[%s5979_s8 + $0x68] sm:$0xff]  }
 0x1a3   : > { %v5484_v50 = vpop.f32.mrf.mxu0  ;;  %5234 = vmatmul.mubr.msk.bf16.gmra.mxu0 %vm512_vm1, %v6605_v63  ;;  %v2007_v24 = vpop.f32.mrf.mxu1  ;;  %5086 = vmatmul.mubr.msk.bf16.gmra.mxu1 %vm512_vm1, %v6391_v61 }
 0x1a4   : > { %v1308_v5 = vsel %vm1245_vm2, %v1306_v19, %v1307_v31  ;;  %v1310_v12 = vsel %vm1245_vm2, %v1307_v31, %v1309_v59  ;;  %3465 = vmatprep.mubr.bf16.mxu0 %v7785_v54  ;;  %2219 = vmatprep.mubr.bf16.mxu1 %v7785_v54  ;;  %v2777_v31 = vrot.slane %v5484_v50, 2 }
 0x1a5   : > { %v1382_v55 = vadd.f32 %v1308_v5, %v857_v0  ;;  %v1383_v43 = vadd.f32 %v1310_v12, %v861_v11  ;;  %v2295_v14 = vpop.f32.mrf.mxu0  ;;  %v2009_v27 = vpop.f32.mrf.mxu1 }
 0x1a6   : > { %v2587_v19 = vrot.slane %v2009_v27, 1  ;;  %v2774_v38 = vrot.slane %v2295_v14, 2 }
 0x1a7   : > { %v6618_v23 = vadd.f32 %v6521_v35, %v1382_v55  ;;  %v6621_v53 = vadd.f32 %v6524_v2, %v1383_v43  ;;  %v5485_v6 = vpop.f32.mrf.mxu0  ;;  %v2011_v59 = vpop.f32.mrf.mxu1 }
 0x1a9   : > { %v2298_v61 = vpop.f32.mrf.mxu0  ;;  %v2013_v0 = vpop.f32.mrf.mxu1 }
 0x1aa   : > { %v2775_v11 = vrot.slane %v2298_v61, 2  ;;  %v2588_v5 = vrot.slane %v2013_v0, 1 }
 0x1ab   : > { %v5488_v12 = vpop.f32.mrf.mxu0  ;;  %5235 = vmatmul.mubr.msk.bf16.gmra.mxu0 %vm512_vm1, %v6624_v36  ;;  %v2017_v55 = vpop.f32.mrf.mxu1  ;;  %5087 = vmatmul.mubr.msk.bf16.gmra.mxu1 %vm512_vm1, %v6408_v60  ;;  %v6642_v60 = vld [vmem:[%s5979_s8 + $0x70] sm:$0xff]  }
 0x1ac   : > { %v2776_v35 = vsel %vm1438_vm3, %v2774_v38, %v2775_v11  ;;  %v2778_v2 = vsel %vm1438_vm3, %v2775_v11, %v2777_v31  ;;  %3472 = vmatprep.mubr.bf16.mxu0 %v7785_v54  ;;  %v2589_v50 = vsel %vm1245_vm2, %v2587_v19, %v2588_v5  ;;  %2226 = vmatprep.mubr.bf16.mxu1 %v7785_v54 }
 0x1ad   : > { %v2886_v43 = vadd.f32 %v2776_v35, %v2694_v17  ;;  %v2887_v14 = vadd.f32 %v2778_v2, %v2695_v22  ;;  %v2310_v27 = vpop.f32.mrf.mxu0  ;;  %v2696_v6 = vadd.f32 %v2589_v50, %v2007_v24  ;;  %v2018_v61 = vpop.f32.mrf.mxu1  ;;  %v2782_v22 = vrot.slane %v5488_v12, 2 }
 0x1ae   : > { %v2590_v0 = vrot.slane %v2018_v61, 1  ;;  %v2779_v2 = vrot.slane %v2310_v27, 2 }
 0x1af   : > { %v6636_v38 = vadd.f32 %v2886_v43, %v6290_v15  ;;  %v6639_v31 = vadd.f32 %v2887_v14, %v6293_v16  ;;  %v5489_v11 = vpop.f32.mrf.mxu0  ;;  %v2020_v55 = vpop.f32.mrf.mxu1 }
 0x1b0   : > { %v2591_v19 = vsel %vm1245_vm2, %v2588_v5, %v2590_v0  ;;  %v6660_v0 = vld [vmem:[%s5979_s8 + $0x78] sm:$0xff]  }
 0x1b1   : > { %v2313_v17 = vpop.f32.mrf.mxu0  ;;  %v2697_v35 = vadd.f32 %v2591_v19, %v2011_v59  ;;  %v2021_v46 = vpop.f32.mrf.mxu1 }
 0x1b2   : > { %v2780_v24 = vrot.slane %v2313_v17, 2 }
 0x1b3   : > { %v5492_v50 = vpop.f32.mrf.mxu0  ;;  %5236 = vmatmul.mubr.msk.bf16.gmra.mxu0 %vm512_vm1, %v6642_v60  ;;  %v2024_v43 = vpop.f32.mrf.mxu1  ;;  %5088 = vmatmul.mubr.msk.bf16.gmra.mxu1 %vm512_vm1, %v6412_v51 }
 0x1b4   : > { %v2781_v15 = vsel %vm1438_vm3, %v2779_v2, %v2780_v24  ;;  %v2783_v16 = vsel %vm1438_vm3, %v2780_v24, %v2782_v22  ;;  %3482 = vmatprep.mubr.bf16.mxu0 %v7785_v54  ;;  %2236 = vmatprep.mubr.bf16.mxu1 %v7785_v54  ;;  %v2787_v19 = vrot.slane %v5492_v50, 2 }
 0x1b5   : > { %v2888_v5 = vadd.f32 %v2781_v15, %v2696_v6  ;;  %v2889_v59 = vadd.f32 %v2783_v16, %v2697_v35  ;;  %v2325_v12 = vpop.f32.mrf.mxu0  ;;  %v2026_v46 = vpop.f32.mrf.mxu1 }
 0x1b6   : > { %v2592_v55 = vrot.slane %v2026_v46, 1  ;;  %v2784_v17 = vrot.slane %v2325_v12, 2  ;;  %v6672_v46 = vld [vmem:[%s5979_s8 + $0x80] sm:$0xff]  }
 0x1b7   : > { %v6654_v14 = vadd.f32 %v2888_v5, %v6314_v42  ;;  %v6657_v27 = vadd.f32 %v2889_v59, %v6317_v44  ;;  %v5493_v61 = vpop.f32.mrf.mxu0  ;;  %v2028_v11 = vpop.f32.mrf.mxu1 }
 0x1b9   : > { %7787 = vst [vmem:[#allocation11_spill] sm:$0xff] %v6657_v27  ;;  %v2328_v51 = vpop.f32.mrf.mxu0  ;;  %v2030_v6 = vpop.f32.mrf.mxu1 }
 0x1ba   : > { %v2785_v22 = vrot.slane %v2328_v51, 2  ;;  %v2593_v35 = vrot.slane %v2030_v6, 1 }
 0x1bb   : > { %v5496_v2 = vpop.f32.mrf.mxu0  ;;  %5237 = vmatmul.mubr.msk.bf16.gmra.mxu0 %vm512_vm1, %v6660_v0  ;;  %v2034_v24 = vpop.f32.mrf.mxu1  ;;  %5089 = vmatmul.mubr.msk.bf16.gmra.mxu1 %vm512_vm1, %v6428_v29 }
 0x1bc   : > { %v2786_v42 = vsel %vm1438_vm3, %v2784_v17, %v2785_v22  ;;  %v2788_v44 = vsel %vm1438_vm3, %v2785_v22, %v2787_v19  ;;  %3489 = vmatprep.mubr.bf16.mxu0 %v7785_v54  ;;  %v2594_v50 = vsel %vm1245_vm2, %v2592_v55, %v2593_v35  ;;  %2243 = vmatprep.mubr.bf16.mxu1 %v7785_v54  ;;  %v2792_v19 = vrot.slane %v5496_v2, 2 }
 0x1bd   : > { %v2340_v15 = vpop.f32.mrf.mxu0  ;;  %v2698_v16 = vadd.f32 %v2594_v50, %v2024_v43  ;;  %v2035_v5 = vpop.f32.mrf.mxu1 }
 0x1be   : > { %v2595_v59 = vrot.slane %v2035_v5, 1  ;;  %v2789_v55 = vrot.slane %v2340_v15, 2  ;;  %v6690_v5 = vld [vmem:[%s5979_s8 + $0x88] sm:$0xff]  }
 0x1bf   : > { %v5497_v12 = vpop.f32.mrf.mxu0  ;;  %v2890_v61 = vadd.f32 %v2786_v42, %v2698_v16  ;;  %v2037_v51 = vpop.f32.mrf.mxu1 }
 0x1c0   : > { %v2596_v17 = vsel %vm1245_vm2, %v2593_v35, %v2595_v59 }
 0x1c1   : > { %v2343_v6 = vpop.f32.mrf.mxu0  ;;  %v6676_v29 = vadd.f32 %v2890_v61, %v6338_v8  ;;  %v2699_v22 = vadd.f32 %v2596_v17, %v2028_v11  ;;  %v2038_v24 = vpop.f32.mrf.mxu1 }
 0x1c2   : > { %v2790_v27 = vrot.slane %v2343_v6, 2 }
 0x1c3   : > { %7788 = vst [vmem:[#allocation12_spill] sm:$0xff] %v6676_v29  ;;  %v5500_v43 = vpop.f32.mrf.mxu0  ;;  %5238 = vmatmul.mubr.msk.bf16.gmra.mxu0 %vm512_vm1, %v6672_v46  ;;  %v2891_v50 = vadd.f32 %v2788_v44, %v2699_v22  ;;  %v2041_v16 = vpop.f32.mrf.mxu1  ;;  %5090 = vmatmul.mubr.msk.bf16.gmra.mxu1 %vm512_vm1, %v6431_v58 }
 0x1c4   : > { %v2791_v42 = vsel %vm1438_vm3, %v2789_v55, %v2790_v27  ;;  %v2793_v2 = vsel %vm1438_vm3, %v2790_v27, %v2792_v19  ;;  %3499 = vmatprep.mubr.bf16.mxu0 %v7785_v54  ;;  %2253 = vmatprep.mubr.bf16.mxu1 %v7785_v54  ;;  %v2797_v27 = vrot.slane %v5500_v43, 2 }
 0x1c5   : > { %v2355_v8 = vpop.f32.mrf.mxu0  ;;  %v2043_v11 = vpop.f32.mrf.mxu1  ;;  %v6687_v35 = vadd.f32 %v2891_v50, %v6341_v9 }
 0x1c6   : > { %v2597_v59 = vrot.slane %v2043_v11, 1  ;;  %v2794_v61 = vrot.slane %v2355_v8, 2 }
 0x1c7   : > { %7789 = vst [vmem:[#allocation13_spill] sm:$0xff] %v6687_v35  ;;  %v5501_v15 = vpop.f32.mrf.mxu0  ;;  %v2045_v44 = vpop.f32.mrf.mxu1 }
 0x1c8   : > { %v6705_v15 = vld [vmem:[%s5979_s8 + $0x90] sm:$0xff]  }
 0x1c9   : > { %v2358_v12 = vpop.f32.mrf.mxu0  ;;  %v2047_v51 = vpop.f32.mrf.mxu1 }
 0x1ca   : > { %v2795_v19 = vrot.slane %v2358_v12, 2  ;;  %v2598_v58 = vrot.slane %v2047_v51, 1 }
 0x1cb   : > { %v5504_v17 = vpop.f32.mrf.mxu0  ;;  %5239 = vmatmul.mubr.msk.bf16.gmra.mxu0 %vm512_vm1, %v6690_v5  ;;  %v2051_v22 = vpop.f32.mrf.mxu1  ;;  %5091 = vmatmul.mubr.msk.bf16.gmra.mxu1 %vm512_vm1, %v6446_v33 }
 0x1cc   : > { %v2796_v6 = vsel %vm1438_vm3, %v2794_v61, %v2795_v19  ;;  %v6696_v9 = vsel %vm1438_vm3, %v2795_v19, %v2797_v27  ;;  %3506 = vmatprep.mubr.bf16.mxu0 %v7785_v54  ;;  %v2599_v55 = vsel %vm1245_vm2, %v2597_v59, %v2598_v58  ;;  %5548 = vmatprep.mubr.msk.bf16.mxu1 %vm512_vm1, %v6460_v48  ;;  %v2802_v61 = vrot.slane %v5504_v17, 2 }
 0x1cd   : > { %v2370_v24 = vpop.f32.mrf.mxu0  ;;  %v2700_v43 = vadd.f32 %v2599_v55, %v2041_v16  ;;  %v2052_v50 = vpop.f32.mrf.mxu1  ;;  %v6728_v55 = vld [vmem:[%s5979_s8 + $0x98] sm:$0xff]  }
 0x1ce   : > { %v2600_v8 = vrot.slane %v2052_v50, 1  ;;  %v2799_v22 = vrot.slane %v2370_v24, 2 }
 0x1cf   : > { %v5505_v11 = vpop.f32.mrf.mxu0  ;;  %v2892_v12 = vadd.f32 %v2791_v42, %v2700_v43  ;;  %v2054_v27 = vpop.f32.mrf.mxu1 }
 0x1d0   : > { %v2601_v51 = vsel %vm1245_vm2, %v2598_v58, %v2600_v8 }
 0x1d1   : > { %v2373_v33 = vpop.f32.mrf.mxu0  ;;  %v2701_v19 = vadd.f32 %v2601_v51, %v2045_v44  ;;  %v2055_v35 = vpop.f32.mrf.mxu1  ;;  %v6709_v29 = vadd.f32 %v2892_v12, %v6360_v37 }
 0x1d2   : > { %v2800_v59 = vrot.slane %v2373_v33, 2 }
 0x1d3   : > { %v5508_v48 = vpop.f32.mrf.mxu0  ;;  %5240 = vmatmul.mubr.msk.bf16.gmra.mxu0 %vm512_vm1, %v6705_v15  ;;  %v2893_v16 = vadd.f32 %v2793_v2, %v2701_v19  ;;  %v2058_v58 = vpop.f32.mrf.mxu1  ;;  %5549 = vmatmul.mubr.msk.bf16.vlgmr.msra.gmra.mxu1 %vm512_vm1, %v6474_v4 }
 0x1d4   : > { %v6714_v42 = vsel %vm1438_vm3, %v2799_v22, %v2800_v59  ;;  %v6717_v17 = vsel %vm1438_vm3, %v2800_v59, %v2802_v61  ;;  %3516 = vmatprep.mubr.bf16.mxu0 %v7785_v54  ;;  %5552 = vmatprep.mubr.msk.bf16.mxu1 %vm512_vm1, %v6492_v62  ;;  %v2807_v8 = vrot.slane %v5508_v48, 2 }
 0x1d5   : > { %v2385_v35 = vpop.f32.mrf.mxu0  ;;  %v2060_v37 = vpop.f32.mrf.mxu1  ;;  %v6725_v44 = vadd.f32 %v2893_v16, %v6363_v40 }
 0x1d6   : > { %v2602_v43 = vrot.slane %v2060_v37, 1  ;;  %v2804_v11 = vrot.slane %v2385_v35, 2  ;;  %v6745_v35 = vld [vmem:[%s5979_s8 + $0xa0] sm:$0xff]  }
 0x1d7   : > { %v5509_v2 = vpop.f32.mrf.mxu0  ;;  %v2062_v24 = vpop.f32.mrf.mxu1 }
 0x1d9   : > { %v2388_v50 = vpop.f32.mrf.mxu0  ;;  %v2064_v12 = vpop.f32.mrf.mxu1 }
 0x1da   : > { %v2805_v4 = vrot.slane %v2388_v50, 2  ;;  %v2603_v27 = vrot.slane %v2064_v12, 1 }
 0x1db   : > { %v5512_v61 = vpop.f32.mrf.mxu0  ;;  %5241 = vmatmul.mubr.msk.bf16.gmra.mxu0 %vm512_vm1, %v6728_v55  ;;  %v2068_v51 = vpop.f32.mrf.mxu1  ;;  %5553 = vmatmul.mubr.msk.bf16.gmra.mxu1 %vm512_vm1, %v6510_v49 }
 0x1dc   : > { %v6733_v62 = vsel %vm1438_vm3, %v2804_v11, %v2805_v4  ;;  %v6736_v40 = vsel %vm1438_vm3, %v2805_v4, %v2807_v8  ;;  %3523 = vmatprep.mubr.bf16.mxu0 %v7785_v54  ;;  %v2604_v33 = vsel %vm1245_vm2, %v2602_v43, %v2603_v27  ;;  %5556 = vmatprep.mubr.msk.bf16.mxu1 %vm512_vm1, %v6528_v47  ;;  %v2812_v50 = vrot.slane %v5512_v61, 2 }
 0x1dd   : > { %v2400_v19 = vpop.f32.mrf.mxu0  ;;  %v2702_v22 = vadd.f32 %v2604_v33, %v2058_v58  ;;  %v2069_v59 = vpop.f32.mrf.mxu1 }
 0x1de   : > { %v2605_v48 = vrot.slane %v2069_v59, 1  ;;  %v2809_v12 = vrot.slane %v2400_v19, 2  ;;  %v6769_v19 = vld [vmem:[%s5979_s8 + $0xa8] sm:$0xff]  }
 0x1df   : > { %v5513_v16 = vpop.f32.mrf.mxu0  ;;  %v2894_v37 = vadd.f32 %v2796_v6, %v2702_v22  ;;  %v2071_v2 = vpop.f32.mrf.mxu1 }
 0x1e0   : > { %v2606_v8 = vsel %vm1245_vm2, %v2603_v27, %v2605_v48 }
 0x1e1   : > { %v2403_v49 = vpop.f32.mrf.mxu0  ;;  %v2703_v11 = vadd.f32 %v2606_v8, %v2062_v24  ;;  %v2072_v4 = vpop.f32.mrf.mxu1  ;;  %v6749_v51 = vadd.f32 %v2894_v37, %v6382_v7 }
 0x1e2   : > { %v2810_v43 = vrot.slane %v2403_v49, 2 }
 0x1e3   : > { %v5516_v47 = vpop.f32.mrf.mxu0  ;;  %5242 = vmatmul.mubr.msk.bf16.gmra.mxu0 %vm512_vm1, %v6745_v35  ;;  %v2895_v58 = vadd.f32 %v6696_v9, %v2703_v11  ;;  %v2075_v24 = vpop.f32.mrf.mxu1  ;;  %5557 = vmatmul.mubr.msk.bf16.gmra.mxu1 %vm512_vm1, %v6549_v3 }
 0x1e4   : > { %v6755_v6 = vsel %vm1438_vm3, %v2809_v12, %v2810_v43  ;;  %v6758_v27 = vsel %vm1438_vm3, %v2810_v43, %v2812_v50  ;;  %3533 = vmatprep.mubr.bf16.mxu0 %v7785_v54  ;;  %5560 = vmatprep.mubr.msk.bf16.mxu1 %vm512_vm1, %v6570_v28  ;;  %v2817_v16 = vrot.slane %v5516_v47, 2 }
 0x1e5   : > { %v2415_v7 = vpop.f32.mrf.mxu0  ;;  %v2077_v61 = vpop.f32.mrf.mxu1  ;;  %v6766_v33 = vadd.f32 %v2895_v58, %v6385_v10 }
 0x1e6   : > { %v2607_v59 = vrot.slane %v2077_v61, 1  ;;  %v2814_v37 = vrot.slane %v2415_v7, 2  ;;  %v6786_v7 = vld [vmem:[%s5979_s8 + $0xb0] sm:$0xff]  }
 0x1e7   : > { %v5517_v9 = vpop.f32.mrf.mxu0  ;;  %v2079_v22 = vpop.f32.mrf.mxu1 }
 0x1e9   : > { %v2418_v48 = vpop.f32.mrf.mxu0  ;;  %v2081_v2 = vpop.f32.mrf.mxu1 }
 0x1ea   : > { %v2815_v3 = vrot.slane %v2418_v48, 2  ;;  %v2608_v50 = vrot.slane %v2081_v2, 1 }
 0x1eb   : > { %v5520_v8 = vpop.f32.mrf.mxu0  ;;  %5243 = vmatmul.mubr.msk.bf16.gmra.mxu0 %vm512_vm1, %v6769_v19  ;;  %v2085_v49 = vpop.f32.mrf.mxu1  ;;  %5561 = vmatmul.mubr.msk.bf16.gmra.mxu1 %vm512_vm1, %v6591_v21 }
 0x1ec   : > { %v6774_v28 = vsel %vm1438_vm3, %v2814_v37, %v2815_v3  ;;  %v6777_v10 = vsel %vm1438_vm3, %v2815_v3, %v2817_v16  ;;  %3540 = vmatprep.mubr.bf16.mxu0 %v7785_v54  ;;  %v2609_v11 = vsel %vm1245_vm2, %v2607_v59, %v2608_v50  ;;  %5564 = vmatprep.mubr.msk.bf16.mxu1 %vm512_vm1, %v6605_v63  ;;  %v2822_v48 = vrot.slane %v5520_v8, 2 }
 0x1ed   : > { %v2430_v12 = vpop.f32.mrf.mxu0  ;;  %v2704_v4 = vadd.f32 %v2609_v11, %v2075_v24  ;;  %v2086_v43 = vpop.f32.mrf.mxu1 }
 0x1ee   : > { %v2610_v47 = vrot.slane %v2086_v43, 1  ;;  %v2819_v2 = vrot.slane %v2430_v12, 2  ;;  %v6811_v12 = vld [vmem:[%s5979_s8 + $0xb8] sm:$0xff]  }
 0x1ef   : > { %v5521_v58 = vpop.f32.mrf.mxu0  ;;  %v2896_v61 = vadd.f32 %v6714_v42, %v2704_v4  ;;  %v2088_v9 = vpop.f32.mrf.mxu1 }
 0x1f0   : > { %v2611_v21 = vsel %vm1245_vm2, %v2608_v50, %v2610_v47 }
 0x1f1   : > { %v2433_v16 = vpop.f32.mrf.mxu0  ;;  %v2705_v37 = vadd.f32 %v2611_v21, %v2079_v22  ;;  %v2089_v59 = vpop.f32.mrf.mxu1  ;;  %v6791_v63 = vadd.f32 %v2896_v61, %v6403_v45 }
 0x1f2   : > { %v2820_v3 = vrot.slane %v2433_v16, 2 }
 0x1f3   : > { %v5524_v24 = vpop.f32.mrf.mxu0  ;;  %5244 = vmatmul.mubr.msk.bf16.gmra.mxu0 %vm512_vm1, %v6786_v7  ;;  %v2897_v49 = vadd.f32 %v6717_v17, %v2705_v37  ;;  %v2092_v22 = vpop.f32.mrf.mxu1  ;;  %5565 = vmatmul.mubr.msk.bf16.gmra.mxu1 %vm512_vm1, %v6624_v36 }
 0x1f4   : > { %v6797_v42 = vsel %vm1438_vm3, %v2819_v2, %v2820_v3  ;;  %v6800_v50 = vsel %vm1438_vm3, %v2820_v3, %v2822_v48  ;;  %3550 = vmatprep.mubr.bf16.mxu0 %v7785_v54  ;;  %5568 = vmatprep.mubr.msk.bf16.mxu1 %vm512_vm1, %v6642_v60  ;;  %v2827_v58 = vrot.slane %v5524_v24, 2 }
 0x1f5   : > { %v2445_v45 = vpop.f32.mrf.mxu0  ;;  %v2094_v8 = vpop.f32.mrf.mxu1  ;;  %v6808_v11 = vadd.f32 %v2897_v49, %v6405_v20 }
 0x1f6   : > { %v2612_v43 = vrot.slane %v2094_v8, 1  ;;  %v2824_v61 = vrot.slane %v2445_v45, 2  ;;  %v6828_v45 = vld [vmem:[%s5979_s8 + $0xc0] sm:$0xff]  }
 0x1f7   : > { %v5525_v17 = vpop.f32.mrf.mxu0  ;;  %v2096_v4 = vpop.f32.mrf.mxu1 }
 0x1f9   : > { %v2448_v47 = vpop.f32.mrf.mxu0  ;;  %v2098_v9 = vpop.f32.mrf.mxu1 }
 0x1fa   : > { %v2825_v36 = vrot.slane %v2448_v47, 2  ;;  %v2613_v48 = vrot.slane %v2098_v9, 1 }
 0x1fb   : > { %v5528_v21 = vpop.f32.mrf.mxu0  ;;  %5245 = vmatmul.mubr.msk.bf16.gmra.mxu0 %vm512_vm1, %v6811_v12  ;;  %v2102_v16 = vpop.f32.mrf.mxu1  ;;  %5569 = vmatmul.mubr.msk.bf16.gmra.mxu1 %vm512_vm1, %v6660_v0 }
 0x1fc   : > { %v6816_v60 = vsel %vm1438_vm3, %v2824_v61, %v2825_v36  ;;  %v6819_v20 = vsel %vm1438_vm3, %v2825_v36, %v2827_v58  ;;  %3557 = vmatprep.mubr.bf16.mxu0 %v7785_v54  ;;  %v2614_v37 = vsel %vm1245_vm2, %v2612_v43, %v2613_v48  ;;  %5572 = vmatprep.mubr.msk.bf16.mxu1 %vm512_vm1, %v6672_v46  ;;  %v2832_v47 = vrot.slane %v5528_v21, 2 }
 0x1fd   : > { %v2460_v2 = vpop.f32.mrf.mxu0  ;;  %v2706_v59 = vadd.f32 %v2614_v37, %v2092_v22  ;;  %v2103_v3 = vpop.f32.mrf.mxu1 }
 0x1fe   : > { %v2615_v24 = vrot.slane %v2103_v3, 1  ;;  %v2829_v9 = vrot.slane %v2460_v2, 2  ;;  %v6853_v2 = vld [vmem:[%s5979_s8 + $0xc8] sm:$0xff]  }
 0x1ff   : > { %v5529_v49 = vpop.f32.mrf.mxu0  ;;  %v2898_v8 = vadd.f32 %v6733_v62, %v2706_v59  ;;  %v2105_v17 = vpop.f32.mrf.mxu1 }
 0x200   : > { %v2616_v0 = vsel %vm1245_vm2, %v2613_v48, %v2615_v24 }
 0x201   : > { %v2463_v58 = vpop.f32.mrf.mxu0  ;;  %v2707_v61 = vadd.f32 %v2616_v0, %v2096_v4  ;;  %v2106_v43 = vpop.f32.mrf.mxu1  ;;  %v6833_v46 = vadd.f32 %v2898_v8, %v6423_v25 }
 0x202   : > { %v2830_v36 = vrot.slane %v2463_v58, 2 }
 0x203   : > { %v5532_v22 = vpop.f32.mrf.mxu0  ;;  %5246 = vmatmul.mubr.msk.bf16.gmra.mxu0 %vm512_vm1, %v6828_v45  ;;  %v2899_v16 = vadd.f32 %v6736_v40, %v2707_v61  ;;  %v2109_v4 = vpop.f32.mrf.mxu1  ;;  %5573 = vmatmul.mubr.msk.bf16.gmra.mxu1 %vm512_vm1, %v6690_v5 }
 0x204   : > { %v6839_v62 = vsel %vm1438_vm3, %v2829_v9, %v2830_v36  ;;  %v6842_v48 = vsel %vm1438_vm3, %v2830_v36, %v2832_v47  ;;  %3567 = vmatprep.mubr.bf16.mxu0 %v7785_v54  ;;  %5576 = vmatprep.mubr.msk.bf16.mxu1 %vm512_vm1, %v6705_v15  ;;  %v2837_v49 = vrot.slane %v5532_v22, 2 }
 0x205   : > { %v2475_v25 = vpop.f32.mrf.mxu0  ;;  %v2111_v21 = vpop.f32.mrf.mxu1  ;;  %v6850_v37 = vadd.f32 %v2899_v16, %v6425_v26 }
 0x206   : > { %v2617_v3 = vrot.slane %v2111_v21, 1  ;;  %v2834_v8 = vrot.slane %v2475_v25, 2  ;;  %v6870_v25 = vld [vmem:[%s5979_s8 + $0xd0] sm:$0xff]  }
 0x207   : > { %v5533_v40 = vpop.f32.mrf.mxu0  ;;  %v2113_v59 = vpop.f32.mrf.mxu1 }
 0x209   : > { %v2478_v24 = vpop.f32.mrf.mxu0  ;;  %v2115_v17 = vpop.f32.mrf.mxu1 }
 0x20a   : > { %v2835_v5 = vrot.slane %v2478_v24, 2  ;;  %v2618_v47 = vrot.slane %v2115_v17, 1 }
 0x20b   : > { %v5536_v0 = vpop.f32.mrf.mxu0  ;;  %5247 = vmatmul.mubr.msk.bf16.gmra.mxu0 %vm512_vm1, %v6853_v2  ;;  %v2119_v58 = vpop.f32.mrf.mxu1  ;;  %5577 = vmatmul.mubr.msk.bf16.gmra.mxu1 %vm512_vm1, %v6728_v55 }
 0x20c   : > { %v6858_v15 = vsel %vm1438_vm3, %v2834_v8, %v2835_v5  ;;  %v6861_v26 = vsel %vm1438_vm3, %v2835_v5, %v2837_v49  ;;  %3574 = vmatprep.mubr.bf16.mxu0 %v7785_v54  ;;  %v2619_v61 = vsel %vm1245_vm2, %v2617_v3, %v2618_v47  ;;  %5580 = vmatprep.mubr.msk.bf16.mxu1 %vm512_vm1, %v6745_v35  ;;  %v2842_v24 = vrot.slane %v5536_v0, 2 }
 0x20d   : > { %v2490_v9 = vpop.f32.mrf.mxu0  ;;  %v2708_v43 = vadd.f32 %v2619_v61, %v2109_v4  ;;  %v2120_v36 = vpop.f32.mrf.mxu1 }
 0x20e   : > { %v2620_v22 = vrot.slane %v2120_v36, 1  ;;  %v2839_v17 = vrot.slane %v2490_v9, 2  ;;  %v5778_v9 = vld [vmem:[%s5979_s8 + $0xd8] sm:$0xff]  }
 0x20f   : > { %v5537_v16 = vpop.f32.mrf.mxu0  ;;  %v2900_v21 = vadd.f32 %v6755_v6, %v2708_v43  ;;  %v2122_v40 = vpop.f32.mrf.mxu1 }
 0x210   : > { %v2621_v55 = vsel %vm1245_vm2, %v2618_v47, %v2620_v22 }
 0x211   : > { %v2493_v49 = vpop.f32.mrf.mxu0  ;;  %v2709_v8 = vadd.f32 %v2621_v55, %v2113_v59  ;;  %v2123_v3 = vpop.f32.mrf.mxu1  ;;  %v6875_v35 = vadd.f32 %v2900_v21, %v6443_v1 }
 0x212   : > { %v2840_v5 = vrot.slane %v2493_v49, 2 }
 0x213   : > { %v5540_v4 = vpop.f32.mrf.mxu0  ;;  %5248 = vmatmul.mubr.msk.bf16.gmra.mxu0 %vm512_vm1, %v6870_v25  ;;  %v2901_v58 = vadd.f32 %v6758_v27, %v2709_v8  ;;  %v2126_v59 = vpop.f32.mrf.mxu1  ;;  %5581 = vmatmul.mubr.msk.bf16.gmra.mxu1 %vm512_vm1, %v6769_v19 }
 0x214   : > { %v6881_v6 = vsel %vm1438_vm3, %v2839_v17, %v2840_v5  ;;  %v6884_v47 = vsel %vm1438_vm3, %v2840_v5, %v2842_v24  ;;  %3584 = vmatprep.mubr.bf16.mxu0 %v7785_v54  ;;  %5584 = vmatprep.mubr.msk.bf16.mxu1 %vm512_vm1, %v6786_v7  ;;  %v2847_v16 = vrot.slane %v5540_v4, 2 }
 0x215   : > { %v2505_v1 = vpop.f32.mrf.mxu0  ;;  %v2128_v0 = vpop.f32.mrf.mxu1  ;;  %v6892_v61 = vadd.f32 %v2901_v58, %v6449_v30 }
 0x216   : > { %v2622_v36 = vrot.slane %v2128_v0, 1  ;;  %v2844_v21 = vrot.slane %v2505_v1, 2  ;;  %v5779_v1 = vld [vmem:[%s5979_s8 + $0xe0] sm:$0xff]  }
 0x217   : > { %7790 = vst [vmem:[#allocation14_spill] sm:$0xff] %v6892_v61  ;;  %v5541_v27 = vpop.f32.mrf.mxu0  ;;  %v2130_v43 = vpop.f32.mrf.mxu1 }
 0x219   : > { %v2508_v22 = vpop.f32.mrf.mxu0  ;;  %v2132_v40 = vpop.f32.mrf.mxu1 }
 0x21a   : > { %v2845_v24 = vrot.slane %v2508_v22, 2  ;;  %v2623_v19 = vrot.slane %v2132_v40, 1 }
 0x21b   : > { %v5544_v55 = vpop.f32.mrf.mxu0  ;;  %5249 = vmatmul.mubr.msk.bf16.gmra.mxu0 %vm512_vm1, %v5778_v9  ;;  %v2136_v49 = vpop.f32.mrf.mxu1  ;;  %5585 = vmatmul.mubr.msk.bf16.gmra.mxu1 %vm512_vm1, %v6811_v12 }
 0x21c   : > { %v6897_v7 = vsel %vm1438_vm3, %v2844_v21, %v2845_v24  ;;  %v6900_v30 = vsel %vm1438_vm3, %v2845_v24, %v2847_v16  ;;  %3591 = vmatprep.mubr.bf16.mxu0 %v7785_v54  ;;  %v2624_v8 = vsel %vm1245_vm2, %v2622_v36, %v2623_v19  ;;  %5588 = vmatprep.mubr.msk.bf16.mxu1 %vm512_vm1, %v6828_v45  ;;  %v2852_v22 = vrot.slane %v5544_v55, 2  ;;  %v7791_v49 = vld [vmem:[#allocation6_spill] sm:$0xff] }
 0x21d   : > { %v2520_v17 = vpop.f32.mrf.mxu0  ;;  %v2710_v3 = vadd.f32 %v2624_v8, %v2126_v59  ;;  %v2137_v5 = vpop.f32.mrf.mxu1 }
 0x21e   : > { %v2625_v4 = vrot.slane %v2137_v5, 1  ;;  %v2849_v40 = vrot.slane %v2520_v17, 2  ;;  %v7792_v17 = vld [vmem:[#allocation7_spill] sm:$0xff] }
 0x21f   : > { %v5545_v58 = vpop.f32.mrf.mxu0  ;;  %v2902_v0 = vadd.f32 %v6774_v28, %v2710_v3  ;;  %v2139_v27 = vpop.f32.mrf.mxu1  ;;  %v5780_v5 = vld [vmem:[%s5979_s8 + $0xe8] sm:$0xff]  }
 0x220   : > { %v2626_v16 = vsel %vm1245_vm2, %v2623_v19, %v2625_v4 }
 0x221   : > { %v2523_v12 = vpop.f32.mrf.mxu0  ;;  %v2711_v21 = vadd.f32 %v2626_v16, %v2130_v43  ;;  %v2140_v24 = vpop.f32.mrf.mxu1  ;;  %v6912_v61 = vadd.f32 %v2902_v0, %v7791_v49 }
 0x222   : > { %v2850_v36 = vrot.slane %v2523_v12, 2 }
 0x223   : > { %v3389_v45 = vpop.f32.mrf.mxu0  ;;  %5250 = vmatmul.mubr.msk.bf16.gmra.mxu0 %vm512_vm1, %v5779_v1  ;;  %v2903_v59 = vadd.f32 %v6777_v10, %v2711_v21  ;;  %v2143_v19 = vpop.f32.mrf.mxu1  ;;  %5589 = vmatmul.mubr.msk.bf16.gmra.mxu1 %vm512_vm1, %v6853_v2 }
 0x224   : > { %v6917_v28 = vsel %vm1438_vm3, %v2849_v40, %v2850_v36  ;;  %v6920_v55 = vsel %vm1438_vm3, %v2850_v36, %v2852_v22  ;;  %3601 = vmatprep.mubr.bf16.mxu0 %v7785_v54  ;;  %5592 = vmatprep.mubr.msk.bf16.mxu1 %vm512_vm1, %v6870_v25 }
 0x225   : > { %v3391_v43 = vpop.f32.mrf.mxu0  ;;  %v2145_v8 = vpop.f32.mrf.mxu1  ;;  %v6928_v3 = vadd.f32 %v2903_v59, %v7792_v17 }
 0x226   : > { %v2627_v58 = vrot.slane %v2145_v8, 1  ;;  %v3981_v27 = vrot.slane %v3391_v43, 1 }
 0x227   : > { %v3393_v10 = vpop.f32.mrf.mxu0  ;;  %v2147_v4 = vpop.f32.mrf.mxu1 }
 0x229   : > { %v3395_v0 = vpop.f32.mrf.mxu0  ;;  %v2149_v22 = vpop.f32.mrf.mxu1 }
 0x22a   : > { %v3982_v16 = vrot.slane %v3395_v0, 1  ;;  %v2628_v12 = vrot.slane %v2149_v22, 1  ;;  %v5781_v0 = vld [vmem:[%s5979_s8 + $0xf0] sm:$0xff]  }
 0x22b   : > { %v3399_v2 = vpop.f32.mrf.mxu0  ;;  %5251 = vmatmul.mubr.msk.bf16.gmra.mxu0 %vm512_vm1, %v5780_v5  ;;  %v2153_v25 = vpop.f32.mrf.mxu1  ;;  %5593 = vmatmul.mubr.msk.bf16.gmra.mxu1 %vm512_vm1, %v5778_v9 }
 0x22c   : > { %v3983_v21 = vsel %vm1245_vm2, %v3981_v27, %v3982_v16  ;;  %3608 = vmatprep.mubr.bf16.mxu0 %v7785_v54  ;;  %v2629_v40 = vsel %vm1245_vm2, %v2627_v58, %v2628_v12  ;;  %5596 = vmatprep.mubr.msk.bf16.mxu1 %vm512_vm1, %v5779_v1  ;;  %v7793_v1 = vld [vmem:[#allocation8_spill] sm:$0xff] }
 0x22d   : > { %v6936_v24 = vadd.f32 %v3983_v21, %v3389_v45  ;;  %v3400_v36 = vpop.f32.mrf.mxu0  ;;  %v2712_v49 = vadd.f32 %v2629_v40, %v2143_v19  ;;  %v2154_v59 = vpop.f32.mrf.mxu1 }
 0x22e   : > { %v3984_v43 = vrot.slane %v3400_v36, 1  ;;  %v2630_v8 = vrot.slane %v2154_v59, 1  ;;  %v5782_v59 = vld [vmem:[%s5979_s8 + $0xf8] sm:$0xff]  }
 0x22f   : > { %v3402_v17 = vpop.f32.mrf.mxu0  ;;  %v2904_v27 = vadd.f32 %v6797_v42, %v2712_v49  ;;  %v2156_v9 = vpop.f32.mrf.mxu1 }
 0x230   : > { %v3985_v22 = vsel %vm1245_vm2, %v3982_v16, %v3984_v43  ;;  %v2631_v2 = vsel %vm1245_vm2, %v2628_v12, %v2630_v8 }
 0x231   : > { %v6943_v25 = vadd.f32 %v3985_v22, %v3393_v10  ;;  %v3403_v45 = vpop.f32.mrf.mxu0  ;;  %v2713_v58 = vadd.f32 %v2631_v2, %v2147_v4  ;;  %v2157_v21 = vpop.f32.mrf.mxu1  ;;  %v6946_v19 = vadd.f32 %v2904_v27, %v7793_v1  ;;  %v7795_v4 = vld [vmem:[#allocation9_spill] sm:$0xff]  ;;  %v5783_v27 = vld [vmem:[%s5979_s8 + $0x100] sm:$0xff]  }
 0x233   : > { %7794 = vst [vmem:[#allocation6_spill] sm:$0xff] %v6946_v19  ;;  %v3406_v40 = vpop.f32.mrf.mxu0  ;;  %5252 = vmatmul.mubr.msk.bf16.gmra.mxu0 %vm512_vm1, %v5781_v0  ;;  %v2905_v42 = vadd.f32 %v6800_v50, %v2713_v58  ;;  %v2160_v36 = vpop.f32.mrf.mxu1  ;;  %5597 = vmatmul.mubr.msk.bf16.gmra.mxu1 %vm512_vm1, %v5780_v5 }
 0x234   : > { %3618 = vmatprep.mubr.bf16.mxu0 %v7785_v54  ;;  %5600 = vmatprep.mubr.msk.bf16.mxu1 %vm512_vm1, %v5781_v0 }
 0x235   : > { %v3408_v10 = vpop.f32.mrf.mxu0  ;;  %v2162_v16 = vpop.f32.mrf.mxu1  ;;  %v6954_v12 = vadd.f32 %v2905_v42, %v7795_v4 }
 0x236   : > { %v2632_v8 = vrot.slane %v2162_v16, 1  ;;  %v3986_v22 = vrot.slane %v3408_v10, 1 }
 0x237   : > { %7796 = vst [vmem:[#allocation7_spill] sm:$0xff] %v6954_v12  ;;  %v3410_v49 = vpop.f32.mrf.mxu0  ;;  %v2164_v43 = vpop.f32.mrf.mxu1 }
 0x239   : > { %v3412_v17 = vpop.f32.mrf.mxu0  ;;  %v2166_v50 = vpop.f32.mrf.mxu1 }
 0x23a   : > { %v3987_v9 = vrot.slane %v3412_v17, 1  ;;  %v2633_v2 = vrot.slane %v2166_v50, 1 }
 0x23b   : > { %v3416_v5 = vpop.f32.mrf.mxu0  ;;  %5253 = vmatmul.mubr.msk.bf16.gmra.mxu0 %vm512_vm1, %v5782_v59  ;;  %v2170_v0 = vpop.f32.mrf.mxu1  ;;  %5601 = vmatmul.mubr.msk.bf16.gmra.mxu1 %vm512_vm1, %v5782_v59 }
 0x23c   : > { %v3988_v45 = vsel %vm1245_vm2, %v3986_v22, %v3987_v9  ;;  %3625 = vmatprep.mubr.bf16.mxu0 %v7785_v54  ;;  %v2634_v58 = vsel %vm1245_vm2, %v2632_v8, %v2633_v2  ;;  %5604 = vmatprep.mubr.msk.bf16.mxu1 %vm512_vm1, %v5783_v27  ;;  %v5784_v5 = vld [vmem:[%s5979_s8 + $0x108] sm:$0xff]  }
 0x23d   : > { %v6963_v21 = vadd.f32 %v3988_v45, %v3406_v40  ;;  %v3417_v1 = vpop.f32.mrf.mxu0  ;;  %v2714_v42 = vadd.f32 %v2634_v58, %v2160_v36  ;;  %v2171_v10 = vpop.f32.mrf.mxu1  ;;  %v5785_v45 = vld [vmem:[%s5979_s8 + $0x110] sm:$0xff]  }
 0x23e   : > { %v3989_v16 = vrot.slane %v3417_v1, 1  ;;  %v2635_v4 = vrot.slane %v2171_v10, 1  ;;  %v5786_v1 = vld [vmem:[%s5979_s8 + $0x118] sm:$0xff]  }
 0x23f   : > { %v3419_v17 = vpop.f32.mrf.mxu0  ;;  %v2906_v22 = vadd.f32 %v6816_v60, %v2714_v42  ;;  %v2173_v59 = vpop.f32.mrf.mxu1 }
 0x240   : > { %v3990_v50 = vsel %vm1245_vm2, %v3987_v9, %v3989_v16  ;;  %v2636_v0 = vsel %vm1245_vm2, %v2633_v2, %v2635_v4 }
 0x241   : > { %v6970_v8 = vadd.f32 %v3990_v50, %v3410_v49  ;;  %v3420_v40 = vpop.f32.mrf.mxu0  ;;  %v2715_v12 = vadd.f32 %v2636_v0, %v2164_v43  ;;  %v2174_v19 = vpop.f32.mrf.mxu1  ;;  %v6974_v36 = vadd.f32 %v2906_v22, %v6546_v18  ;;  %v5862_v22 = vmov 0.0  }
 0x242   : > { %5612 = vmatprep.subr.bf16.mxu1 %v5862_v22 }
 0x243   : > { %v3423_v58 = vpop.f32.mrf.mxu0  ;;  %5254 = vmatmul.mubr.msk.bf16.gmra.mxu0 %vm512_vm1, %v5783_v27  ;;  %v2907_v60 = vadd.f32 %v6819_v20, %v2715_v12  ;;  %v2177_v9 = vpop.f32.mrf.mxu1  ;;  %5605 = vmatmul.mubr.msk.bf16.gmra.mxu1 %vm512_vm1, %v5784_v5  ;;  %v5787_v12 = vld [vmem:[%s7750_s4 + $0x38] sm:$0xff]  }
 0x244   : > { %3635 = vmatprep.mubr.bf16.mxu0 %v7785_v54  ;;  %5608 = vmatprep.mubr.msk.bf16.mxu1 %vm512_vm1, %v5785_v45 }
 0x245   : > { %v3425_v49 = vpop.f32.mrf.mxu0  ;;  %v2179_v2 = vpop.f32.mrf.mxu1  ;;  %v6982_v43 = vadd.f32 %v2907_v60, %v6553_v32  ;;  %5613 = vmatpush3.bf16.msra.mxu1 %v5787_v12 }
 0x246   : > { %v2637_v42 = vrot.slane %v2179_v2, 1  ;;  %v3991_v27 = vrot.slane %v3425_v49, 1  ;;  %5614 = vmatprep.subr.bf16.mxu1 %v5862_v22 }
 0x247   : > { %7797 = vst [vmem:[#allocation8_spill] sm:$0xff] %v6982_v43  ;;  %v3427_v19 = vpop.f32.mrf.mxu0  ;;  %v2181_v18 = vpop.f32.mrf.mxu1 }
 0x249   : > { %v3429_v10 = vpop.f32.mrf.mxu0  ;;  %v2183_v16 = vpop.f32.mrf.mxu1 }
 0x24a   : > { %v3992_v20 = vrot.slane %v3429_v10, 1  ;;  %v2638_v4 = vrot.slane %v2183_v16, 1 }
 0x24b   : > { %v3433_v17 = vpop.f32.mrf.mxu0  ;;  %5255 = vmatmul.mubr.msk.bf16.gmra.mxu0 %vm512_vm1, %v5784_v5  ;;  %v2187_v50 = vpop.f32.mrf.mxu1  ;;  %5609 = vmatmul.mubr.msk.bf16.gmra.mxu1 %vm512_vm1, %v5786_v1 }
 0x24c   : > { %v3993_v32 = vsel %vm1245_vm2, %v3991_v27, %v3992_v20  ;;  %3642 = vmatprep.mubr.bf16.mxu0 %v7785_v54  ;;  %v2639_v59 = vsel %vm1245_vm2, %v2637_v42, %v2638_v4  ;;  %5628 = vmatprep.mubr.msk.bf16.mxu1 %vm5863_vm4, %v5862_v22 }
 0x24d   : > { %v6994_v0 = vadd.f32 %v3993_v32, %v3423_v58  ;;  %v3434_v40 = vpop.f32.mrf.mxu0  ;;  %v2716_v60 = vadd.f32 %v2639_v59, %v2177_v9  ;;  %v2188_v49 = vpop.f32.mrf.mxu1 }
 0x24e   : > { %v3994_v2 = vrot.slane %v3434_v40, 1  ;;  %v2640_v5 = vrot.slane %v2188_v49, 1 }
 0x24f   : > { %v3436_v10 = vpop.f32.mrf.mxu0  ;;  %v2908_v27 = vadd.f32 %v6839_v62, %v2716_v60  ;;  %v2190_v17 = vpop.f32.mrf.mxu1 }
 0x250   : > { %v3995_v16 = vsel %vm1245_vm2, %v3992_v20, %v3994_v2  ;;  %v2641_v50 = vsel %vm1245_vm2, %v2638_v4, %v2640_v5 }
 0x251   : > { %v7000_v43 = vadd.f32 %v3995_v16, %v3427_v19  ;;  %v3437_v58 = vpop.f32.mrf.mxu0  ;;  %v2717_v42 = vadd.f32 %v2641_v50, %v2181_v18  ;;  %v2191_v32 = vpop.f32.mrf.mxu1  ;;  %v7003_v9 = vadd.f32 %v2908_v27, %v6588_v52 }
 0x253   : > { %v3440_v12 = vpop.f32.mrf.mxu0  ;;  %5256 = vmatmul.mubr.msk.bf16.gmra.mxu0 %vm512_vm1, %v5785_v45  ;;  %v2909_v59 = vadd.f32 %v6842_v48, %v2717_v42  ;;  %v2194_v40 = vpop.f32.mrf.mxu1  ;;  %v5788_v45 = vld [vmem:[%s7750_s4 + $0x30] sm:$0xff]  }
 0x254   : > { %3652 = vmatprep.mubr.bf16.mxu0 %v7785_v54  ;;  %5615 = vmatpush3.bf16.msra.mxu1 %v5788_v45 }
 0x255   : > { %v3442_v62 = vpop.f32.mrf.mxu0  ;;  %v2196_v20 = vpop.f32.mrf.mxu1  ;;  %v7009_v4 = vadd.f32 %v2909_v59, %v6595_v57  ;;  %5616 = vmatprep.subr.bf16.mxu1 %v5862_v22 }
 0x256   : > { %v2642_v18 = vrot.slane %v2196_v20, 1  ;;  %v3996_v2 = vrot.slane %v3442_v62, 1 }
 0x257   : > { %v3444_v19 = vpop.f32.mrf.mxu0  ;;  %v2198_v60 = vpop.f32.mrf.mxu1 }
 0x259   : > { %v3446_v49 = vpop.f32.mrf.mxu0  ;;  %v2200_v52 = vpop.f32.mrf.mxu1 }
 0x25a   : > { %v3997_v5 = vrot.slane %v3446_v49, 1  ;;  %v2643_v48 = vrot.slane %v2200_v52, 1 }
 0x25b   : > { %v3450_v10 = vpop.f32.mrf.mxu0  ;;  %5257 = vmatmul.mubr.msk.bf16.gmra.mxu0 %vm512_vm1, %v5786_v1  ;;  %v2204_v27 = vpop.f32.mrf.mxu1 }
 0x25c   : > { %v3998_v54 = vsel %vm1245_vm2, %v3996_v2, %v3997_v5  ;;  %v2644_v57 = vsel %vm1245_vm2, %v2642_v18, %v2643_v48 }
 0x25d   : > { %v7017_v16 = vadd.f32 %v3998_v54, %v3440_v12  ;;  %v3451_v17 = vpop.f32.mrf.mxu0  ;;  %v2718_v50 = vadd.f32 %v2644_v57, %v2194_v40  ;;  %v2205_v58 = vpop.f32.mrf.mxu1 }
 0x25e   : > { %v3999_v42 = vrot.slane %v3451_v17, 1  ;;  %v2645_v32 = vrot.slane %v2205_v58, 1 }
 0x25f   : > { %v3453_v59 = vpop.f32.mrf.mxu0  ;;  %v2910_v62 = vadd.f32 %v6858_v15, %v2718_v50  ;;  %v2207_v20 = vpop.f32.mrf.mxu1 }
 0x260   : > { %v4000_v1 = vsel %vm1245_vm2, %v3997_v5, %v3999_v42  ;;  %v2646_v49 = vsel %vm1245_vm2, %v2643_v48, %v2645_v32 }
 0x261   : > { %v7023_v2 = vadd.f32 %v4000_v1, %v3444_v19  ;;  %v3454_v18 = vpop.f32.mrf.mxu0  ;;  %v2719_v12 = vadd.f32 %v2646_v49, %v2198_v60  ;;  %v2208_v52 = vpop.f32.mrf.mxu1  ;;  %v7026_v45 = vadd.f32 %v2910_v62, %v6618_v23  ;;  %v5789_v23 = vld [vmem:[%s7750_s4 + $0x28] sm:$0xff]  }
 0x262   : > { %5617 = vmatpush3.bf16.msra.mxu1 %v5789_v23 }
 0x263   : > { %v3457_v40 = vpop.f32.mrf.mxu0  ;;  %v2911_v10 = vadd.f32 %v6861_v26, %v2719_v12  ;;  %v2211_v54 = vpop.f32.mrf.mxu1  ;;  %5618 = vmatprep.subr.bf16.mxu1 %v5862_v22 }
 0x265   : > { %v3459_v27 = vpop.f32.mrf.mxu0  ;;  %v2213_v57 = vpop.f32.mrf.mxu1  ;;  %v7030_v15 = vadd.f32 %v2911_v10, %v6621_v53 }
 0x266   : > { %v2647_v48 = vrot.slane %v2213_v57, 1  ;;  %v4001_v50 = vrot.slane %v3459_v27, 1 }
 0x267   : > { %v3461_v5 = vpop.f32.mrf.mxu0  ;;  %v2215_v17 = vpop.f32.mrf.mxu1 }
 0x269   : > { %v3463_v19 = vpop.f32.mrf.mxu0  ;;  %v2217_v58 = vpop.f32.mrf.mxu1 }
 0x26a   : > { %v4002_v60 = vrot.slane %v3463_v19, 1  ;;  %v2648_v42 = vrot.slane %v2217_v58, 1 }
 0x26b   : > { %v3467_v32 = vpop.f32.mrf.mxu0  ;;  %v2221_v59 = vpop.f32.mrf.mxu1 }
 0x26c   : > { %v4003_v26 = vsel %vm1245_vm2, %v4001_v50, %v4002_v60  ;;  %v2649_v53 = vsel %vm1245_vm2, %v2647_v48, %v2648_v42 }
 0x26d   : > { %v7037_v62 = vadd.f32 %v4003_v26, %v3457_v40  ;;  %v3468_v1 = vpop.f32.mrf.mxu0  ;;  %v2720_v20 = vadd.f32 %v2649_v53, %v2211_v54  ;;  %v2222_v49 = vpop.f32.mrf.mxu1 }
 0x26e   : > { %v4004_v18 = vrot.slane %v3468_v1, 1  ;;  %v2650_v12 = vrot.slane %v2222_v49, 1 }
 0x26f   : > { %v3470_v52 = vpop.f32.mrf.mxu0  ;;  %v2912_v10 = vadd.f32 %v6881_v6, %v2720_v20  ;;  %v2224_v57 = vpop.f32.mrf.mxu1 }
 0x270   : > { %v4005_v27 = vsel %vm1245_vm2, %v4002_v60, %v4004_v18  ;;  %v2651_v19 = vsel %vm1245_vm2, %v2648_v42, %v2650_v12 }
 0x271   : > { %v7043_v50 = vadd.f32 %v4005_v27, %v3461_v5  ;;  %v3471_v48 = vpop.f32.mrf.mxu0  ;;  %v2721_v40 = vadd.f32 %v2651_v19, %v2215_v17  ;;  %v2225_v58 = vpop.f32.mrf.mxu1  ;;  %v7046_v23 = vadd.f32 %v2912_v10, %v6540_v13  ;;  %v5790_v13 = vld [vmem:[%s7750_s4 + $0x20] sm:$0xff]  }
 0x272   : > { %5619 = vmatpush3.bf16.msra.mxu1 %v5790_v13 }
 0x273   : > { %v3474_v54 = vpop.f32.mrf.mxu0  ;;  %v2913_v32 = vadd.f32 %v6884_v47, %v2721_v40  ;;  %v2228_v26 = vpop.f32.mrf.mxu1  ;;  %5620 = vmatprep.subr.bf16.mxu1 %v5862_v22 }
 0x275   : > { %v3476_v59 = vpop.f32.mrf.mxu0  ;;  %v2230_v53 = vpop.f32.mrf.mxu1  ;;  %v7050_v6 = vadd.f32 %v2913_v32, %v6543_v34 }
 0x276   : > { %v2652_v42 = vrot.slane %v2230_v53, 1  ;;  %v4006_v20 = vrot.slane %v3476_v59, 1 }
 0x277   : > { %v3478_v60 = vpop.f32.mrf.mxu0  ;;  %v2232_v1 = vpop.f32.mrf.mxu1 }
 0x279   : > { %v3480_v5 = vpop.f32.mrf.mxu0  ;;  %v2234_v49 = vpop.f32.mrf.mxu1 }
 0x27a   : > { %v4007_v17 = vrot.slane %v3480_v5, 1  ;;  %v2653_v18 = vrot.slane %v2234_v49, 1 }
 0x27b   : > { %v3484_v12 = vpop.f32.mrf.mxu0  ;;  %v2238_v52 = vpop.f32.mrf.mxu1 }
 0x27c   : > { %v4008_v47 = vsel %vm1245_vm2, %v4006_v20, %v4007_v17  ;;  %v2654_v34 = vsel %vm1245_vm2, %v2652_v42, %v2653_v18 }
 0x27d   : > { %v7057_v10 = vadd.f32 %v4008_v47, %v3474_v54  ;;  %v3485_v27 = vpop.f32.mrf.mxu0  ;;  %v2722_v57 = vadd.f32 %v2654_v34, %v2228_v26  ;;  %v2239_v19 = vpop.f32.mrf.mxu1 }
 0x27e   : > { %v4009_v48 = vrot.slane %v3485_v27, 1  ;;  %v2655_v40 = vrot.slane %v2239_v19, 1 }
 0x27f   : > { %v3487_v58 = vpop.f32.mrf.mxu0  ;;  %v2914_v32 = vadd.f32 %v6897_v7, %v2722_v57  ;;  %v2241_v53 = vpop.f32.mrf.mxu1 }
 0x280   : > { %v4010_v59 = vsel %vm1245_vm2, %v4007_v17, %v4009_v48  ;;  %v2656_v5 = vsel %vm1245_vm2, %v2653_v18, %v2655_v40 }
 0x281   : > { %v7063_v20 = vadd.f32 %v4010_v59, %v3478_v60  ;;  %v3488_v42 = vpop.f32.mrf.mxu0  ;;  %v2723_v54 = vadd.f32 %v2656_v5, %v2232_v1  ;;  %v2242_v49 = vpop.f32.mrf.mxu1  ;;  %v7066_v13 = vadd.f32 %v2914_v32, %v6564_v41  ;;  %v5791_v41 = vld [vmem:[%s7750_s4 + $0x18] sm:$0xff]  }
 0x282   : > { %5621 = vmatpush3.bf16.msra.mxu1 %v5791_v41 }
 0x283   : > { %v3491_v26 = vpop.f32.mrf.mxu0  ;;  %v2915_v12 = vadd.f32 %v6900_v30, %v2723_v54  ;;  %v2245_v47 = vpop.f32.mrf.mxu1  ;;  %5622 = vmatprep.subr.bf16.mxu1 %v5862_v22 }
 0x285   : > { %v3493_v52 = vpop.f32.mrf.mxu0  ;;  %v7070_v7 = vadd.f32 %v2915_v12, %v6567_v39  ;;  %v2247_v17 = vpop.f32.mrf.mxu1 }
 0x286   : > { %v2657_v18 = vrot.slane %v2247_v17, 1  ;;  %v4011_v57 = vrot.slane %v3493_v52, 1 }
 0x287   : > { %v3495_v34 = vpop.f32.mrf.mxu0  ;;  %v2249_v27 = vpop.f32.mrf.mxu1 }
 0x289   : > { %v3497_v60 = vpop.f32.mrf.mxu0  ;;  %v2251_v19 = vpop.f32.mrf.mxu1 }
 0x28a   : > { %v4012_v1 = vrot.slane %v3497_v60, 1  ;;  %v2658_v48 = vrot.slane %v2251_v19, 1 }
 0x28b   : > { %v3501_v40 = vpop.f32.mrf.mxu0  ;;  %v2255_v58 = vpop.f32.mrf.mxu1 }
 0x28c   : > { %v4013_v30 = vsel %vm1245_vm2, %v4011_v57, %v4012_v1  ;;  %v2659_v39 = vsel %vm1245_vm2, %v2657_v18, %v2658_v48 }
 0x28d   : > { %v7077_v32 = vadd.f32 %v4013_v30, %v3491_v26  ;;  %v3502_v59 = vpop.f32.mrf.mxu0  ;;  %v2724_v53 = vadd.f32 %v2659_v39, %v2245_v47  ;;  %v2256_v5 = vpop.f32.mrf.mxu1  ;;  %v7798_v39 = vld [vmem:[#allocation10_spill] sm:$0xff] }
 0x28e   : > { %v4014_v42 = vrot.slane %v3502_v59, 1  ;;  %v2660_v54 = vrot.slane %v2256_v5, 1 }
 0x28f   : > { %v3504_v49 = vpop.f32.mrf.mxu0  ;;  %v2916_v12 = vadd.f32 %v6917_v28, %v2724_v53  ;;  %v2258_v17 = vpop.f32.mrf.mxu1 }
 0x290   : > { %v4015_v52 = vsel %vm1245_vm2, %v4012_v1, %v4014_v42  ;;  %v2661_v60 = vsel %vm1245_vm2, %v2658_v48, %v2660_v54 }
 0x291   : > { %v7083_v57 = vadd.f32 %v4015_v52, %v3495_v34  ;;  %v3505_v18 = vpop.f32.mrf.mxu0  ;;  %v7086_v26 = vadd.f32 %v2916_v12, %v6582_v56  ;;  %v2725_v19 = vadd.f32 %v2661_v60, %v2249_v27  ;;  %v2259_v41 = vpop.f32.mrf.mxu1 }
 0x293   : > { %v3508_v47 = vpop.f32.mrf.mxu0  ;;  %v2917_v40 = vadd.f32 %v6920_v55, %v2725_v19  ;;  %v5550_v30 = vpop.f32.mrf.mxu1  ;;  %v5792_v19 = vld [vmem:[%s7750_s4 + $0x10] sm:$0xff]  }
 0x294   : > { %v4176_v48 = vrot.slane %v5550_v30, 2  ;;  %5623 = vmatpush3.bf16.msra.mxu1 %v5792_v19 }
 0x295   : > { %v3510_v58 = vpop.f32.mrf.mxu0  ;;  %v7090_v28 = vadd.f32 %v2917_v40, %v7798_v39  ;;  %v3694_v1 = vpop.f32.mrf.mxu1  ;;  %5624 = vmatprep.subr.bf16.mxu1 %v5862_v22 }
 0x296   : > { %v4173_v34 = vrot.slane %v3694_v1, 2  ;;  %v4016_v42 = vrot.slane %v3510_v58, 1 }
 0x297   : > { %v3512_v59 = vpop.f32.mrf.mxu0  ;;  %v5551_v53 = vpop.f32.mrf.mxu1 }
 0x299   : > { %v3514_v5 = vpop.f32.mrf.mxu0  ;;  %v3697_v56 = vpop.f32.mrf.mxu1 }
 0x29a   : > { %v4017_v54 = vrot.slane %v3514_v5, 1  ;;  %v4174_v49 = vrot.slane %v3697_v56, 2 }
 0x29b   : > { %v3518_v27 = vpop.f32.mrf.mxu0  ;;  %v5554_v52 = vpop.f32.mrf.mxu1 }
 0x29c   : > { %v4018_v12 = vsel %vm1245_vm2, %v4016_v42, %v4017_v54  ;;  %v4175_v17 = vsel %vm1438_vm3, %v4173_v34, %v4174_v49  ;;  %v4177_v60 = vsel %vm1438_vm3, %v4174_v49, %v4176_v48  ;;  %v4181_v34 = vrot.slane %v5554_v52, 2  ;;  %v7799_v52 = vld [vmem:[#allocation11_spill] sm:$0xff] }
 0x29d   : > { %v7093_v55 = vadd.f32 %v4018_v12, %v3508_v47  ;;  %v3519_v18 = vpop.f32.mrf.mxu0  ;;  %v4285_v41 = vadd.f32 %v4175_v17, %v6936_v24  ;;  %v4286_v40 = vadd.f32 %v4177_v60, %v6943_v25  ;;  %v3709_v58 = vpop.f32.mrf.mxu1 }
 0x29e   : > { %v4019_v30 = vrot.slane %v3519_v18, 1  ;;  %v4178_v24 = vrot.slane %v3709_v58, 2 }
 0x29f   : > { %v3521_v39 = vpop.f32.mrf.mxu0  ;;  %v7103_v47 = vadd.f32 %v4285_v41, %v6636_v38  ;;  %v7106_v1 = vadd.f32 %v4286_v40, %v6639_v31  ;;  %v5555_v48 = vpop.f32.mrf.mxu1 }
 0x2a0   : > { %v4020_v53 = vsel %vm1245_vm2, %v4017_v54, %v4019_v30 }
 0x2a1   : > { %v7110_v5 = vadd.f32 %v4020_v53, %v3512_v59  ;;  %v3522_v25 = vpop.f32.mrf.mxu0  ;;  %v3712_v42 = vpop.f32.mrf.mxu1 }
 0x2a2   : > { %v4179_v56 = vrot.slane %v3712_v42, 2 }
 0x2a3   : > { %v3525_v49 = vpop.f32.mrf.mxu0  ;;  %v5558_v27 = vpop.f32.mrf.mxu1 }
 0x2a4   : > { %v4180_v38 = vsel %vm1438_vm3, %v4178_v24, %v4179_v56  ;;  %v4182_v12 = vsel %vm1438_vm3, %v4179_v56, %v4181_v34  ;;  %v4186_v40 = vrot.slane %v5558_v27, 2 }
 0x2a5   : > { %v3527_v31 = vpop.f32.mrf.mxu0  ;;  %v4287_v17 = vadd.f32 %v4180_v38, %v6963_v21  ;;  %v4288_v54 = vadd.f32 %v4182_v12, %v6970_v8  ;;  %v3724_v60 = vpop.f32.mrf.mxu1 }
 0x2a6   : > { %v4183_v30 = vrot.slane %v3724_v60, 2  ;;  %v4021_v39 = vrot.slane %v3527_v31, 1 }
 0x2a7   : > { %v3529_v18 = vpop.f32.mrf.mxu0  ;;  %v7117_v59 = vadd.f32 %v4287_v17, %v6654_v14  ;;  %v7120_v19 = vadd.f32 %v4288_v54, %v7799_v52  ;;  %v5559_v41 = vpop.f32.mrf.mxu1  ;;  %v7800_v54 = vld [vmem:[#allocation12_spill] sm:$0xff]  ;;  %v7801_v52 = vld [vmem:[#allocation13_spill] sm:$0xff] }
 0x2a9   : > { %v3531_v58 = vpop.f32.mrf.mxu0  ;;  %v3727_v48 = vpop.f32.mrf.mxu1 }
 0x2aa   : > { %v4022_v53 = vrot.slane %v3531_v58, 1  ;;  %v4184_v34 = vrot.slane %v3727_v48, 2 }
 0x2ab   : > { %v3535_v24 = vpop.f32.mrf.mxu0  ;;  %v5562_v8 = vpop.f32.mrf.mxu1 }
 0x2ac   : > { %v4023_v21 = vsel %vm1245_vm2, %v4021_v39, %v4022_v53  ;;  %v4185_v14 = vsel %vm1438_vm3, %v4183_v30, %v4184_v34  ;;  %v4187_v42 = vsel %vm1438_vm3, %v4184_v34, %v4186_v40  ;;  %v4191_v58 = vrot.slane %v5562_v8, 2  ;;  %v5793_v24 = vld [vmem:[%s7750_s4 + $0x8] sm:$0xff]  }
 0x2ad   : > { %v7123_v25 = vadd.f32 %v4023_v21, %v3525_v49  ;;  %v3536_v56 = vpop.f32.mrf.mxu0  ;;  %v4289_v38 = vadd.f32 %v4185_v14, %v6994_v0  ;;  %v4290_v27 = vadd.f32 %v4187_v42, %v7000_v43  ;;  %v3739_v12 = vpop.f32.mrf.mxu1  ;;  %5625 = vmatpush3.bf16.msra.mxu1 %v5793_v24 }
 0x2ae   : > { %v4024_v31 = vrot.slane %v3536_v56, 1  ;;  %v4188_v39 = vrot.slane %v3739_v12, 2  ;;  %5626 = vmatprep.subr.bf16.mxu1 %v5862_v22 }
 0x2af   : > { %v3538_v17 = vpop.f32.mrf.mxu0  ;;  %v7130_v60 = vadd.f32 %v4289_v38, %v7800_v54  ;;  %v7133_v41 = vadd.f32 %v4290_v27, %v7801_v52  ;;  %v5563_v49 = vpop.f32.mrf.mxu1 }
 0x2b0   : > { %v4025_v30 = vsel %vm1245_vm2, %v4022_v53, %v4024_v31 }
 0x2b1   : > { %v3539_v40 = vpop.f32.mrf.mxu0  ;;  %v7136_v48 = vadd.f32 %v4025_v30, %v3529_v18  ;;  %v3742_v0 = vpop.f32.mrf.mxu1  ;;  %v5794_v18 = vld [vmem:[%s7750_s4] sm:$0xff]  }
 0x2b2   : > { %v4189_v34 = vrot.slane %v3742_v0, 2  ;;  %5627 = vmatpush3.bf16.msra.mxu1 %v5794_v18 }
 0x2b3   : > { %v3542_v43 = vpop.f32.mrf.mxu0  ;;  %v5566_v21 = vpop.f32.mrf.mxu1 }
 0x2b4   : > { %v4190_v14 = vsel %vm1438_vm3, %v4188_v39, %v4189_v34  ;;  %v4192_v8 = vsel %vm1438_vm3, %v4189_v34, %v4191_v58  ;;  %v4196_v54 = vrot.slane %v5566_v21, 2 }
 0x2b5   : > { %v3544_v53 = vpop.f32.mrf.mxu0  ;;  %v4291_v42 = vadd.f32 %v4190_v14, %v7017_v16  ;;  %v4292_v56 = vadd.f32 %v4192_v8, %v7023_v2  ;;  %v3754_v38 = vpop.f32.mrf.mxu1  ;;  %v7166_v8 = vld [vmem:[%s7748_s2] ss:$0 sm:$0xff] }
 0x2b6   : > { %v4193_v52 = vrot.slane %v3754_v38, 2  ;;  %v4026_v58 = vrot.slane %v3544_v53, 1 }
 0x2b7   : > { %v3546_v27 = vpop.f32.mrf.mxu0  ;;  %v7151_v12 = vadd.f32 %v4291_v42, %v6709_v29  ;;  %v7154_v31 = vadd.f32 %v4292_v56, %v6725_v44  ;;  %v5567_v17 = vpop.f32.mrf.mxu1 }
 0x2b9   : > { %v3548_v49 = vpop.f32.mrf.mxu0  ;;  %v3757_v16 = vpop.f32.mrf.mxu1 }
 0x2ba   : > { %v4027_v30 = vrot.slane %v3548_v49, 1  ;;  %v4194_v39 = vrot.slane %v3757_v16, 2 }
 0x2bb   : > { %v3552_v2 = vpop.f32.mrf.mxu0  ;;  %v5570_v22 = vpop.f32.mrf.mxu1 }
 0x2bc   : > { %v4028_v40 = vsel %vm1245_vm2, %v4026_v58, %v4027_v30  ;;  %v4195_v29 = vsel %vm1438_vm3, %v4193_v52, %v4194_v39  ;;  %v4197_v44 = vsel %vm1438_vm3, %v4194_v39, %v4196_v54  ;;  %v4201_v38 = vrot.slane %v5570_v22, 2 }
 0x2bd   : > { %v7157_v0 = vadd.f32 %v4028_v40, %v3542_v43  ;;  %v3553_v34 = vpop.f32.mrf.mxu0  ;;  %v4293_v24 = vadd.f32 %v4195_v29, %v7037_v62  ;;  %v4294_v21 = vadd.f32 %v4197_v44, %v7043_v50  ;;  %v3769_v14 = vpop.f32.mrf.mxu1  ;;  %v4452_v54 = vmul.f32 %v7166_v8, %v7103_v47 }
 0x2be   : > { %v4029_v53 = vrot.slane %v3553_v34, 1  ;;  %v4198_v17 = vrot.slane %v3769_v14, 2  ;;  %v4453_v58 = vmul.f32 %v7166_v8, %v7106_v1 }
 0x2bf   : > { %v3555_v18 = vpop.f32.mrf.mxu0  ;;  %v7169_v43 = vadd.f32 %v4293_v24, %v6749_v51  ;;  %v7172_v42 = vadd.f32 %v4294_v21, %v6766_v33  ;;  %v5571_v56 = vpop.f32.mrf.mxu1  ;;  %v7184_v51 = vld [vmem:[%s7749_s3] ss:$0 sm:$0xff] }
 0x2c0   : > { %v4030_v62 = vsel %vm1245_vm2, %v4027_v30, %v4029_v53  ;;  %v4454_v30 = vmul.f32 %v7166_v8, %v7117_v59  ;;  %v7191_v40 = vadd.f32 %v7184_v51, %v4452_v54  ;;  %v7196_v44 = vadd.f32 %v7184_v51, %v4453_v58 }
 0x2c1   : > { %v3556_v50 = vpop.f32.mrf.mxu0  ;;  %v7177_v52 = vadd.f32 %v4030_v62, %v3546_v27  ;;  %v3772_v49 = vpop.f32.mrf.mxu1 }
 0x2c2   : > { %v4199_v33 = vrot.slane %v3772_v49, 2  ;;  %v7207_v14 = vadd.f32 %v7184_v51, %v4454_v30 }
 0x2c3   : > { %v3559_v16 = vpop.f32.mrf.mxu0  ;;  %v5574_v39 = vpop.f32.mrf.mxu1 }
 0x2c4   : > { %v4200_v2 = vsel %vm1438_vm3, %v4198_v17, %v4199_v33  ;;  %v4202_v47 = vsel %vm1438_vm3, %v4199_v33, %v4201_v38  ;;  %v4206_v53 = vrot.slane %v5574_v39, 2  ;;  %v4456_v17 = vmul.f32 %v7166_v8, %v7130_v60 }
 0x2c5   : > { %v3561_v27 = vpop.f32.mrf.mxu0  ;;  %v4295_v1 = vadd.f32 %v4200_v2, %v7057_v10  ;;  %v4296_v22 = vadd.f32 %v4202_v47, %v7063_v20  ;;  %v3784_v29 = vpop.f32.mrf.mxu1  ;;  %v7769_v20 = vmax.f32 %v7191_v40, 0.0  ;;  %v7760_v33 = vmax.f32 %v7207_v14, 0.0 }
 0x2c6   : > { %v4203_v10 = vrot.slane %v3784_v29, 2  ;;  %v4031_v56 = vrot.slane %v3561_v27, 1 }
 0x2c7   : > { %v7198_v34 = vpop.f32.mrf.mxu0  ;;  %v7201_v59 = vadd.f32 %v4295_v1, %v6791_v63  ;;  %v7204_v24 = vadd.f32 %v4296_v22, %v6808_v11  ;;  %v5575_v21 = vpop.f32.mrf.mxu1  ;;  %v7763_v63 = vmax.f32 %v7196_v44, 0.0  ;;  %v4455_v11 = vmul.f32 %v7166_v8, %v7120_v19 }
 0x2c9   : > { %v7209_v18 = vpop.f32.mrf.mxu0  ;;  %v3787_v62 = vpop.f32.mrf.mxu1  ;;  %v4555_v1 = vadd.f32 %v7763_v63, %v7769_v20  ;;  %v7235_v22 = vadd.f32 %v7184_v51, %v4455_v11  ;;  %v4457_v11 = vmul.f32 %v7166_v8, %v7133_v41 }
 0x2ca   : > { %v4032_v38 = vrot.slane %v7209_v18, 1  ;;  %v4204_v50 = vrot.slane %v3787_v62, 2 }
 0x2cb   : > { %v3569_v54 = vpop.f32.mrf.mxu0  ;;  %v5578_v58 = vpop.f32.mrf.mxu1 }
 0x2cc   : > { %v4033_v49 = vsel %vm1245_vm2, %v4031_v56, %v4032_v38  ;;  %v4205_v30 = vsel %vm1438_vm3, %v4203_v10, %v4204_v50  ;;  %v4207_v2 = vsel %vm1438_vm3, %v4204_v50, %v4206_v53  ;;  %v4556_v53 = vadd.f32 %v4555_v1, %v7760_v33 }
 0x2cd   : > { %v7222_v39 = vadd.f32 %v4033_v49, %v3559_v16  ;;  %v7226_v47 = vpop.f32.mrf.mxu0  ;;  %v4297_v19 = vadd.f32 %v4205_v30, %v7077_v32  ;;  %v4298_v60 = vadd.f32 %v4207_v2, %v7083_v57  ;;  %v3799_v27 = vpop.f32.mrf.mxu1  ;;  %v7238_v16 = vadd.f32 %v7184_v51, %v4456_v17 }
 0x2ce   : > { %v4211_v10 = vrot.slane %v5578_v58, 2  ;;  %v4208_v56 = vrot.slane %v3799_v27, 2  ;;  %v4458_v17 = vmul.f32 %v7166_v8, %v7151_v12  ;;  %v7263_v12 = vadd.f32 %v7184_v51, %v4457_v11  ;;  %v7802_v11 = vld [vmem:[#allocation14_spill] sm:$0xff] }
 0x2cf   : > { %v3572_v29 = vpop.f32.mrf.mxu0  ;;  %v7241_v21 = vadd.f32 %v4297_v19, %v6833_v46  ;;  %v7244_v32 = vadd.f32 %v4298_v60, %v6850_v37  ;;  %v5579_v57 = vpop.f32.mrf.mxu1  ;;  %v7759_v46 = vmax.f32 %v7235_v22, 0.0  ;;  %v7756_v54 = vmax.f32 %v7238_v16, 0.0 }
 0x2d0   : > { %v7266_v60 = vadd.f32 %v7184_v51, %v4458_v17 }
 0x2d1   : > { %v3573_v62 = vpop.f32.mrf.mxu0  ;;  %v3802_v50 = vpop.f32.mrf.mxu1  ;;  %v4557_v58 = vadd.f32 %v4556_v53, %v7759_v46 }
 0x2d2   : > { %v4209_v37 = vrot.slane %v3802_v50, 2 }
 0x2d3   : > { %v7254_v49 = vpop.f32.mrf.mxu0  ;;  %v5582_v30 = vpop.f32.mrf.mxu1  ;;  %v4558_v57 = vadd.f32 %v4557_v58, %v7756_v54  ;;  %v7757_v58 = vmax.f32 %v7263_v12, 0.0 }
 0x2d4   : > { %v4210_v2 = vsel %vm1438_vm3, %v4208_v56, %v4209_v37  ;;  %v4212_v19 = vsel %vm1438_vm3, %v4209_v37, %v4211_v10  ;;  %v4459_v10 = vmul.f32 %v7166_v8, %v7154_v31  ;;  %v4460_v56 = vmul.f32 %v7166_v8, %v7169_v43 }
 0x2d5   : > { %v7260_v41 = vpop.f32.mrf.mxu0  ;;  %v4299_v27 = vadd.f32 %v4210_v2, %v7093_v55  ;;  %v4300_v1 = vadd.f32 %v4212_v19, %v7110_v5  ;;  %v3814_v29 = vpop.f32.mrf.mxu1  ;;  %v4216_v5 = vrot.slane %v5582_v30, 2  ;;  %v7758_v2 = vmax.f32 %v7266_v60, 0.0 }
 0x2d6   : > { %v4213_v50 = vrot.slane %v3814_v29, 2  ;;  %v4559_v43 = vadd.f32 %v4558_v57, %v7757_v58 }
 0x2d7   : > { %v7272_v53 = vpop.f32.mrf.mxu0  ;;  %v7279_v62 = vadd.f32 %v4299_v27, %v6875_v35  ;;  %v7282_v17 = vadd.f32 %v4300_v1, %v7802_v11  ;;  %v5583_v55 = vpop.f32.mrf.mxu1  ;;  %v7291_v35 = vadd.f32 %v7184_v51, %v4459_v10  ;;  %v7294_v27 = vadd.f32 %v7184_v51, %v4460_v56 }
 0x2d8   : > { %v4560_v55 = vadd.f32 %v4559_v43, %v7758_v2  ;;  %v4462_v56 = vmul.f32 %v7166_v8, %v7201_v59 }
 0x2d9   : > { %v7284_v37 = vpop.f32.mrf.mxu0  ;;  %v3817_v19 = vpop.f32.mrf.mxu1 }
 0x2da   : > { %v4214_v31 = vrot.slane %v3817_v19, 2 }
 0x2db   : > { %v3586_v54 = vpop.f32.mrf.mxu0  ;;  %v5586_v30 = vpop.f32.mrf.mxu1 }
 0x2dc   : > { %v4215_v1 = vsel %vm1438_vm3, %v4213_v50, %v4214_v31  ;;  %v4217_v29 = vsel %vm1438_vm3, %v4214_v31, %v4216_v5  ;;  %v4461_v54 = vmul.f32 %v7166_v8, %v7172_v42  ;;  %v7762_v50 = vmax.f32 %v7291_v35, 0.0 }
 0x2dd   : > { %v7298_v11 = vpop.f32.mrf.mxu0  ;;  %v4301_v57 = vadd.f32 %v4215_v1, %v7123_v25  ;;  %v4302_v10 = vadd.f32 %v4217_v29, %v7136_v48  ;;  %v3829_v19 = vpop.f32.mrf.mxu1  ;;  %v7761_v5 = vmax.f32 %v7294_v27, 0.0  ;;  %v4221_v42 = vrot.slane %v5586_v30, 2 }
 0x2de   : > { %v4218_v46 = vrot.slane %v3829_v19, 2  ;;  %v4561_v48 = vadd.f32 %v4560_v55, %v7762_v50  ;;  %v7317_v1 = vadd.f32 %v7184_v51, %v4461_v54  ;;  %v4034_v30 = vrot.slane %v7226_v47, 1 }
 0x2df   : > { %v3589_v58 = vpop.f32.mrf.mxu0  ;;  %v4365_v31 = vadd.f32 %v4301_v57, %v6912_v61  ;;  %v7312_v43 = vadd.f32 %v4302_v10, %v6928_v3  ;;  %v5587_v2 = vpop.f32.mrf.mxu1  ;;  %v4464_v19 = vmul.f32 %v7166_v8, %v7241_v21 }
 0x2e0   : > { %v7320_v58 = vadd.f32 %v7184_v51, %v4462_v56  ;;  %v4562_v61 = vadd.f32 %v4561_v48, %v7761_v5  ;;  %v4463_v2 = vmul.f32 %v7166_v8, %v7204_v24  ;;  %v7765_v10 = vmax.f32 %v7317_v1, 0.0 }
 0x2e1   : > { %v3590_v25 = vpop.f32.mrf.mxu0  ;;  %v3832_v59 = vpop.f32.mrf.mxu1  ;;  %v7356_v63 = vadd.f32 %v7184_v51, %v4464_v19 }
 0x2e2   : > { %7803 = vst [vmem:[#allocation9_spill] sm:$0xff] %v7320_v58  ;;  %v4219_v29 = vrot.slane %v3832_v59, 2  ;;  %v7764_v24 = vmax.f32 %v7320_v58, 0.0  ;;  %v4563_v47 = vadd.f32 %v4562_v61, %v7765_v10  ;;  %v7348_v21 = vadd.f32 %v7184_v51, %v4463_v2 }
 0x2e3   : > { %v7322_v33 = vpop.f32.mrf.mxu0  ;;  %v5590_v3 = vpop.f32.mrf.mxu1  ;;  %7807 = vst [vmem:[#allocation11_spill] sm:$0xff] %v7356_v63  ;;  %v4465_v2 = vmul.f32 %v7166_v8, %v7244_v32 }
 0x2e4   : > { %v4220_v55 = vsel %vm1438_vm3, %v4218_v46, %v4219_v29  ;;  %v4222_v54 = vsel %vm1438_vm3, %v4219_v29, %v4221_v42  ;;  %v7804_v46 = vld [vmem:[#allocation6_spill] sm:$0xff]  ;;  %v7805_v29 = vld [vmem:[#allocation7_spill] sm:$0xff]  ;;  %7806 = vst [vmem:[#allocation10_spill] sm:$0xff] %v7348_v21 }
 0x2e5   : > { %v7331_v57 = vpop.f32.mrf.mxu0  ;;  %v4303_v56 = vadd.f32 %v4220_v55, %v7157_v0  ;;  %v4304_v25 = vadd.f32 %v4222_v54, %v7177_v52  ;;  %v3844_v48 = vpop.f32.mrf.mxu1  ;;  %v4035_v0 = vsel %vm1245_vm2, %v4032_v38, %v4034_v30  ;;  %v4226_v52 = vrot.slane %v5590_v3, 2 }
 0x2e6   : > { %v4223_v55 = vrot.slane %v3844_v48, 2  ;;  %v4114_v18 = vadd.f32 %v4035_v0, %v7198_v34  ;;  %v4466_v38 = vmul.f32 %v7166_v8, %v7279_v62  ;;  %v7768_v30 = vmax.f32 %v7348_v21, 0.0 }
 0x2e7   : > { %v7339_v59 = vpop.f32.mrf.mxu0  ;;  %v4367_v42 = vadd.f32 %v4303_v56, %v7804_v46  ;;  %v7345_v5 = vadd.f32 %v4304_v25, %v7805_v29  ;;  %v5591_v50 = vpop.f32.mrf.mxu1  ;;  %v4564_v56 = vadd.f32 %v4563_v47, %v7764_v24  ;;  %v7766_v47 = vmax.f32 %v7356_v63, 0.0 }
 0x2e8   : > { %v7377_v0 = vadd.f32 %v7184_v51, %v4465_v2 }
 0x2e9   : > { %v7353_v54 = vpop.f32.mrf.mxu0  ;;  %v3847_v61 = vpop.f32.mrf.mxu1  ;;  %v4565_v34 = vadd.f32 %v4564_v56, %v7768_v30  ;;  %v4467_v56 = vmul.f32 %v7166_v8, %v7282_v17  ;;  %v4037_v17 = vrot.slane %v7284_v37, 1 }
 0x2ea   : > { %v4224_v25 = vrot.slane %v3847_v61, 2  ;;  %7808 = vst [vmem:[#allocation12_spill] sm:$0xff] %v7377_v0 }
 0x2eb   : > { %v3603_v50 = vpop.f32.mrf.mxu0  ;;  %v7365_v3 = vpop.f32.mrf.mxu1 }
 0x2ec   : > { %v4225_v19 = vsel %vm1438_vm3, %v4223_v55, %v4224_v25  ;;  %v4227_v48 = vsel %vm1438_vm3, %v4224_v25, %v4226_v52  ;;  %v7380_v50 = vadd.f32 %v7184_v51, %v4466_v38  ;;  %v7810_v55 = vld [vmem:[#allocation8_spill] sm:$0xff]  ;;  %v7767_v38 = vmax.f32 %v7377_v0, 0.0 }
 0x2ed   : > { %v7370_v46 = vpop.f32.mrf.mxu0  ;;  %v4305_v29 = vadd.f32 %v4225_v19, %v7222_v39  ;;  %v4306_v32 = vadd.f32 %v4227_v48, %v4114_v18  ;;  %v3859_v61 = vpop.f32.mrf.mxu1  ;;  %v4566_v39 = vadd.f32 %v4565_v34, %v7766_v47  ;;  %v4468_v18 = vmul.f32 %v7166_v8, %v4365_v31 }
 0x2ee   : > { %7809 = vst [vmem:[#allocation13_spill] sm:$0xff] %v7380_v50  ;;  %v4036_v34 = vrot.slane %v7260_v41, 1 }
 0x2ef   : > { %v3606_v62 = vpop.f32.mrf.mxu0  ;;  %v4369_v52 = vadd.f32 %v4305_v29, %v6974_v36  ;;  %v7384_v25 = vadd.f32 %v4306_v32, %v7810_v55  ;;  %v5595_v24 = vpop.f32.mrf.mxu1  ;;  %v7772_v36 = vmax.f32 %v7380_v50, 0.0  ;;  %v7406_v31 = vadd.f32 %v7184_v51, %v4468_v18 }
 0x2f0   : > { %v7402_v24 = vadd.f32 %v7184_v51, %v4467_v56  ;;  %v4469_v62 = vmul.f32 %v7166_v8, %v7312_v43  ;;  %v4228_v56 = vrot.slane %v3859_v61, 2  ;;  %v4038_v20 = vsel %vm1245_vm2, %v4036_v34, %v4037_v17 }
 0x2f1   : > { %v3607_v10 = vpop.f32.mrf.mxu0  ;;  %v3862_v2 = vpop.f32.mrf.mxu1  ;;  %v4039_v50 = vrot.slane %v7298_v11, 1  ;;  %v4041_v11 = vrot.slane %v7331_v57, 1 }
 0x2f2   : > { %v4567_v10 = vadd.f32 %v4566_v39, %v7767_v38  ;;  %7811 = vst [vmem:[#allocation14_spill] sm:$0xff] %v7402_v24  ;;  %v4470_v39 = vmul.f32 %v7166_v8, %v4367_v42  ;;  %v4229_v38 = vrot.slane %v3862_v2, 2  ;;  %v7773_v18 = vmax.f32 %v7402_v24, 0.0 }
 0x2f3   : > { %v7391_v19 = vpop.f32.mrf.mxu0  ;;  %v7395_v48 = vpop.f32.mrf.mxu1  ;;  %v7422_v43 = vadd.f32 %v7184_v51, %v4469_v62  ;;  %v4471_v62 = vmul.f32 %v7166_v8, %v7345_v5 }
 0x2f4   : > { %v4568_v47 = vadd.f32 %v4567_v10, %v7772_v36  ;;  %v4042_v10 = vrot.slane %v7353_v54, 1  ;;  %v7429_v61 = vadd.f32 %v7184_v51, %v4470_v39  ;;  %v4230_v2 = vsel %vm1438_vm3, %v4228_v56, %v4229_v38 }
 0x2f5   : > { %v7397_v29 = vpop.f32.mrf.mxu0  ;;  %v3874_v32 = vpop.f32.mrf.mxu1  ;;  %v4115_v36 = vadd.f32 %v4038_v20, %v7254_v49  ;;  %v7812_v54 = vmax.f32 %v7406_v31, 0.0  ;;  %v4540_v39 = vmax.f32 %v7422_v43, 0.0  ;;  %v4231_v49 = vrot.slane %v7365_v3, 2 }
 0x2f6   : > { %v4043_v56 = vsel %vm1245_vm2, %v4041_v11, %v4042_v10  ;;  %v7778_v20 = vmax.f32 %v7429_v61, 0.0  ;;  %v4233_v5 = vrot.slane %v3874_v32, 2  ;;  %v7448_v58 = vadd.f32 %v7184_v51, %v4471_v62 }
 0x2f7   : > { %v7411_v55 = vpop.f32.mrf.mxu0  ;;  %v5599_v30 = vpop.f32.mrf.mxu1  ;;  %v4307_v24 = vadd.f32 %v4230_v2, %v4115_v36  ;;  %v4117_v3 = vadd.f32 %v4043_v56, %v7322_v33 }
 0x2f8   : > { %v4569_v30 = vadd.f32 %v4568_v47, %v7773_v18  ;;  %v4040_v18 = vsel %vm1245_vm2, %v4037_v17, %v4039_v50  ;;  %v4044_v17 = vrot.slane %v7370_v46, 1  ;;  %v4542_v46 = vmax.f32 %v7448_v58, 0.0 }
 0x2f9   : > { %v7416_v37 = vpop.f32.mrf.mxu0  ;;  %v3877_v0 = vpop.f32.mrf.mxu1 }
 0x2fa   : > { %v4234_v57 = vrot.slane %v3877_v0, 2  ;;  %v4371_v0 = vadd.f32 %v4307_v24, %v7003_v9  ;;  %v4047_v2 = vrot.slane %v7416_v37, 1  ;;  %v4236_v9 = vrot.slane %v7395_v48, 2 }
 0x2fb   : > { %v3620_v42 = vpop.f32.mrf.mxu0  ;;  %v7432_v34 = vpop.f32.mrf.mxu1 }
 0x2fc   : > { %v4570_v42 = vadd.f32 %v4569_v30, %v7812_v54  ;;  %v4472_v30 = vmul.f32 %v7166_v8, %v4369_v52  ;;  %v4232_v52 = vsel %vm1438_vm3, %v4229_v38, %v4231_v49  ;;  %v4235_v62 = vsel %vm1438_vm3, %v4233_v5, %v4234_v57 }
 0x2fd   : > { %v7438_v41 = vpop.f32.mrf.mxu0  ;;  %v3889_v47 = vpop.f32.mrf.mxu1  ;;  %v4046_v38 = vrot.slane %v7397_v29, 1  ;;  %v4474_v5 = vmul.f32 %v7166_v8, %v4371_v0 }
 0x2fe   : > { %v4571_v50 = vadd.f32 %v4570_v42, %v4540_v39  ;;  %v7470_v33 = vadd.f32 %v7184_v51, %v4472_v30  ;;  %v4238_v37 = vrot.slane %v3889_v47, 2  ;;  %v4237_v47 = vsel %vm1438_vm3, %v4234_v57, %v4236_v9 }
 0x2ff   : > { %v3623_v63 = vpop.f32.mrf.mxu0  ;;  %v5603_v21 = vpop.f32.mrf.mxu1  ;;  %v4048_v30 = vsel %vm1245_vm2, %v4046_v38, %v4047_v2  ;;  %v4241_v57 = vrot.slane %v7432_v34, 2 }
 0x300   : > { %v4116_v63 = vadd.f32 %v4040_v18, %v7272_v53  ;;  %v4572_v32 = vadd.f32 %v4571_v50, %v7778_v20  ;;  %v4473_v53 = vmul.f32 %v7166_v8, %v7384_v25  ;;  %v4045_v18 = vsel %vm1245_vm2, %v4042_v10, %v4044_v17 }
 0x301   : > { %v3624_v54 = vpop.f32.mrf.mxu0  ;;  %v7454_v36 = vpop.f32.mrf.mxu1  ;;  %v4543_v29 = vmax.f32 %v7470_v33, 0.0  ;;  %v4118_v10 = vadd.f32 %v4045_v18, %v7339_v59 }
 0x302   : > { %v4239_v42 = vrot.slane %v7454_v36, 2  ;;  %v4308_v49 = vadd.f32 %v4232_v52, %v4116_v63  ;;  %v4309_v54 = vadd.f32 %v4235_v62, %v4117_v3  ;;  %v4573_v25 = vadd.f32 %v4572_v32, %v4542_v46 }
 0x303   : > { %v3627_v21 = vpop.f32.mrf.mxu0  ;;  %v7464_v11 = vpop.f32.mrf.mxu1  ;;  %v7481_v20 = vadd.f32 %v7184_v51, %v4473_v53  ;;  %v4049_v36 = vrot.slane %v7438_v41, 1  ;;  %v7490_v62 = vadd.f32 %v7184_v51, %v4474_v5  ;;  %v4119_v53 = vadd.f32 %v4048_v30, %v7391_v19 }
 0x304   : > { %v4240_v63 = vsel %vm1438_vm3, %v4238_v37, %v4239_v42  ;;  %v4372_v52 = vadd.f32 %v4308_v49, %v7009_v4  ;;  %v4373_v38 = vadd.f32 %v4309_v54, %v7026_v45  ;;  %v4574_v4 = vadd.f32 %v4573_v25, %v4543_v29 }
 0x305   : > { %v3629_v24 = vpop.f32.mrf.mxu0  ;;  %v3904_v56 = vpop.f32.mrf.mxu1  ;;  %v4050_v49 = vsel %vm1245_vm2, %v4047_v2, %v4049_v36  ;;  %v4246_v19 = vrot.slane %v7464_v11, 2  ;;  %v4544_v34 = vmax.f32 %v7481_v20, 0.0 }
 0x306   : > { %v4051_v3 = vrot.slane %v3629_v24, 1  ;;  %v4243_v9 = vrot.slane %v3904_v56, 2  ;;  %v4310_v24 = vadd.f32 %v4237_v47, %v4118_v10  ;;  %v4475_v56 = vmul.f32 %v7166_v8, %v4372_v52 }
 0x307   : > { %v3631_v50 = vpop.f32.mrf.mxu0  ;;  %v5607_v48 = vpop.f32.mrf.mxu1  ;;  %v4476_v54 = vmul.f32 %v7166_v8, %v4373_v38  ;;  %v4545_v10 = vmax.f32 %v7490_v62, 0.0  ;;  %v4242_v47 = vsel %vm1438_vm3, %v4239_v42, %v4241_v57 }
 0x308   : > { %v4311_v48 = vadd.f32 %v4240_v63, %v4119_v53  ;;  %v4374_v11 = vadd.f32 %v4310_v24, %v7030_v15  ;;  %v4120_v63 = vadd.f32 %v4050_v49, %v7411_v55  ;;  %v7516_v42 = vadd.f32 %v7184_v51, %v4475_v56 }
 0x309   : > { %v3633_v17 = vpop.f32.mrf.mxu0  ;;  %v3907_v32 = vpop.f32.mrf.mxu1 }
 0x30a   : > { %v4052_v0 = vrot.slane %v3633_v17, 1  ;;  %v4244_v18 = vrot.slane %v3907_v32, 2  ;;  %v4375_v32 = vadd.f32 %v4311_v48, %v7046_v23  ;;  %v4477_v23 = vmul.f32 %v7166_v8, %v4374_v11 }
 0x30b   : > { %v3637_v59 = vpop.f32.mrf.mxu0  ;;  %v7496_v37 = vpop.f32.mrf.mxu1 }
 0x30c   : > { %v4053_v41 = vsel %vm1245_vm2, %v4051_v3, %v4052_v0  ;;  %v4245_v25 = vsel %vm1438_vm3, %v4243_v9, %v4244_v18  ;;  %v4247_v38 = vsel %vm1438_vm3, %v4244_v18, %v4246_v19  ;;  %v7519_v59 = vadd.f32 %v7184_v51, %v4476_v54 }
 0x30d   : > { %v3638_v17 = vpop.f32.mrf.mxu0  ;;  %v3919_v5 = vpop.f32.mrf.mxu1  ;;  %v4121_v30 = vadd.f32 %v4053_v41, %v3627_v21  ;;  %v4575_v21 = vadd.f32 %v4574_v4, %v4544_v34  ;;  %v4546_v18 = vmax.f32 %v7516_v42, 0.0 }
 0x30e   : > { %v4054_v45 = vrot.slane %v3638_v17, 1  ;;  %v4547_v24 = vmax.f32 %v7519_v59, 0.0 }
 0x30f   : > { %v3640_v3 = vpop.f32.mrf.mxu0  ;;  %v5611_v36 = vpop.f32.mrf.mxu1  ;;  %v4313_v57 = vadd.f32 %v4245_v25, %v4121_v30  ;;  %v4576_v55 = vadd.f32 %v4575_v21, %v4545_v10  ;;  %v4251_v21 = vrot.slane %v7496_v37, 2 }
 0x310   : > { %v4055_v2 = vsel %vm1245_vm2, %v4052_v0, %v4054_v45  ;;  %v4312_v0 = vadd.f32 %v4242_v47, %v4120_v63  ;;  %v7532_v45 = vadd.f32 %v7184_v51, %v4477_v23  ;;  %v4248_v3 = vrot.slane %v3919_v5, 2 }
 0x311   : > { %v4122_v52 = vadd.f32 %v4055_v2, %v3631_v50  ;;  %v3641_v53 = vpop.f32.mrf.mxu0  ;;  %v4478_v50 = vmul.f32 %v7166_v8, %v4375_v32  ;;  %v4377_v17 = vadd.f32 %v4313_v57, %v7066_v13  ;;  %v3922_v49 = vpop.f32.mrf.mxu1  ;;  %v4577_v19 = vadd.f32 %v4576_v55, %v4546_v18 }
 0x312   : > { %v4376_v48 = vadd.f32 %v4312_v0, %v7050_v6  ;;  %v4249_v25 = vrot.slane %v3922_v49, 2  ;;  %v4548_v32 = vmax.f32 %v7532_v45, 0.0 }
 0x313   : > { %v3644_v15 = vpop.f32.mrf.mxu0  ;;  %v4314_v9 = vadd.f32 %v4247_v38, %v4122_v52  ;;  %v7535_v56 = vadd.f32 %v7184_v51, %v4478_v50  ;;  %v4578_v13 = vadd.f32 %v4577_v19, %v4547_v24  ;;  %v4480_v36 = vmul.f32 %v7166_v8, %v4377_v17 }
 0x314   : > { %v4479_v2 = vmul.f32 %v7166_v8, %v4376_v48  ;;  %v4250_v38 = vsel %vm1438_vm3, %v4248_v3, %v4249_v25  ;;  %v4252_v19 = vsel %vm1438_vm3, %v4249_v25, %v4251_v21 }
 0x315   : > { %v3646_v41 = vpop.f32.mrf.mxu0  ;;  %v4378_v54 = vadd.f32 %v4314_v9, %v7070_v7  ;;  %v4549_v52 = vmax.f32 %v7535_v56, 0.0  ;;  %v4579_v57 = vadd.f32 %v4578_v13, %v4548_v32  ;;  %v7554_v23 = vadd.f32 %v7184_v51, %v4480_v36 }
 0x316   : > { %v4056_v47 = vrot.slane %v3646_v41, 1  ;;  %v7551_v55 = vadd.f32 %v7184_v51, %v4479_v2 }
 0x317   : > { %v3648_v4 = vpop.f32.mrf.mxu0  ;;  %v4481_v7 = vmul.f32 %v7166_v8, %v4378_v54 }
 0x318   : > { %v4550_v54 = vmax.f32 %v7551_v55, 0.0 }
 0x319   : > { %v3650_v30 = vpop.f32.mrf.mxu0  ;;  %v7560_v37 = vadd.f32 %v7184_v51, %v4481_v7 }
 0x31a   : > { %v4057_v6 = vrot.slane %v3650_v30, 1  ;;  %v4551_v30 = vmax.f32 %v7554_v23, 0.0 }
 0x31b   : > { %v3654_v11 = vpop.f32.mrf.mxu0  ;;  %v4552_v13 = vmax.f32 %v7560_v37, 0.0 }
 0x31c   : > { %v4058_v63 = vsel %vm1245_vm2, %v4056_v47, %v4057_v6 }
 0x31d   : > { %v4123_v5 = vadd.f32 %v4058_v63, %v3644_v15  ;;  %v3655_v53 = vpop.f32.mrf.mxu0  ;;  %v4580_v15 = vadd.f32 %v4579_v57, %v4549_v52 }
 0x31e   : > { %v4059_v0 = vrot.slane %v3655_v53, 1 }
 0x31f   : > { %v4315_v50 = vadd.f32 %v4250_v38, %v4123_v5  ;;  %v3657_v9 = vpop.f32.mrf.mxu0 }
 0x320   : > { %v4060_v41 = vsel %vm1245_vm2, %v4057_v6, %v4059_v0  ;;  %v4581_v6 = vadd.f32 %v4580_v15, %v4550_v54  ;;  %v4700_v15 = vld [vmem:[%s7752_s6] sm:$0x1] }
 0x321   : > { %v4379_v48 = vadd.f32 %v4315_v50, %v7086_v26  ;;  %v4124_v17 = vadd.f32 %v4060_v41, %v3648_v4  ;;  %v3658_v49 = vpop.f32.mrf.mxu0 }
 0x322   : > { %v4582_v4 = vadd.f32 %v4581_v6, %v4551_v30 }
 0x323   : > { %v4482_v3 = vmul.f32 %v7166_v8, %v4379_v48  ;;  %v4316_v47 = vadd.f32 %v4252_v19, %v4124_v17 }
 0x324   : > { %v4583_v11 = vadd.f32 %v4582_v4, %v4552_v13 }
 0x325   : > { %v7571_v2 = vadd.f32 %v7184_v51, %v4482_v3  ;;  %v4380_v26 = vadd.f32 %v4316_v47, %v7090_v28 }
 0x327   : > { %v4553_v25 = vmax.f32 %v7571_v2, 0.0  ;;  %v4483_v36 = vmul.f32 %v7166_v8, %v4380_v26 }
 0x329   : > { %v7581_v63 = vadd.f32 %v7184_v51, %v4483_v36  ;;  %v4584_v7 = vadd.f32 %v4583_v11, %v4553_v25  ;;  %v4698_v51 = vld [vmem:[%s7751_s5] sm:$0x1]  ;;  %v4708_v36 = vlaneseq }
 0x32b   : > { %v4554_v5 = vmax.f32 %v7581_v63, 0.0  ;;  %v4709_v11 = vshrl.u32 %v4708_v36, 7 }
 0x32d   : > { %v4585_v28 = vadd.f32 %v4584_v7, %v4554_v5  ;;  %v4710_v7 = vsub.s32 0, %v4709_v11 }
 0x32f   : > { %v4586_v53 = vrot.slane %v4585_v28, 4 }
 0x331   : > { %v4587_v21 = vadd.f32 %v4586_v53, %v4585_v28 }
 0x333   : > { %v4588_v38 = vrot.slane %v4587_v21, 2 }
 0x335   : > { %v4589_v0 = vadd.f32 %v4588_v38, %v4587_v21  ;;  %v7813_v21 = vmax.f32 %v7191_v40, 0.0  ;;  %v7820_v40 = vmax.f32 %v7291_v35, 0.0 }
 0x337   : > { %v4590_v57 = vrot.slane %v4589_v0, 1 }
 0x339   : > { %v4591_v8 = vadd.f32 %v4590_v57, %v4589_v0  ;;  %v7814_v0 = vmax.f32 %v7196_v44, 0.0  ;;  %v7821_v44 = vmax.f32 %v7294_v27, 0.0 }
 0x33b   : > { %v4592_v50 = vmul.f32 0.00390625, %v4591_v8  ;;  %v7815_v8 = vmax.f32 %v7207_v14, 0.0  ;;  %v7822_v14 = vmax.f32 %v7317_v1, 0.0  ;;  %v7829_v1 = vld [vmem:[#allocation12_spill] sm:$0xff] }
 0x33c   : > { %v7830_v11 = vmax.f32 %v7829_v1, 0.0 }
 0x33d   : > { %v4593_v9 = vpack.c.bf16 %v4592_v50, %v4592_v50 }
 0x33f   : > { %5629 = vmatmul.mubr.bf16.vlgmr.msra.gmra.mxu1 %v4593_v9  ;;  %v7816_v9 = vmax.f32 %v7235_v22, 0.0  ;;  %v7823_v22 = vld [vmem:[#allocation9_spill] sm:$0xff] }
 0x3ff   : > { %v4692_v41 = vpop.f32.mrf.mxu1 }
 0x400   : > { %v4699_v48 = vmul.f32 %v4698_v51, %v4692_v41  ;;  %v7817_v41 = vmax.f32 %v7238_v16, 0.0 }
 0x401   : > { %v5630_v17 = vpop.f32.mrf.mxu1 }
 0x402   : > { %v4701_v49 = vadd.f32 %v4700_v15, %v4699_v48  ;;  %v7818_v48 = vmax.f32 %v7263_v12, 0.0 }
 0x403   : > { %v4695_v19 = vpop.f32.mrf.mxu1 }
 0x404   : > { %v4702_v3 = vsub.f32 0.0, %v4701_v49  ;;  %v7819_v49 = vmax.f32 %v7266_v60, 0.0  ;;  %v7827_v60 = vld [vmem:[#allocation11_spill] sm:$0xff] }
 0x405   : > { %v5631_v47 = vpop.f32.mrf.mxu1  ;;  %v7828_v35 = vmax.f32 %v7827_v60, 0.0 }
 0x406   : > { %v4703_v6 = vmul.f32 1.442695, %v4702_v3 }
 0x408   : > { %5795 = vpow2.f32 %v4703_v6 }
 0x415   : > { %v5796_v26 = vpop.eup %5795 }
 0x416   : > { %v4705_v4 = vadd.f32 1.0, %v5796_v26  ;;  %v7824_v26 = vmax.f32 %v7823_v22, 0.0 }
 0x418   : > { %5797 = vrcp.f32 %v4705_v4  ;;  %v7825_v4 = vld [vmem:[#allocation10_spill] sm:$0xff] }
 0x419   : > { %v7826_v36 = vmax.f32 %v7825_v4, 0.0 }
 0x425   : > { %v5798_v28 = vpop.eup %5797 }
 0x426   : > { %v4711_v53 = vrot.slane %v5798_v28, %v4710_v7  ;;  %v7831_v28 = vld [vmem:[#allocation13_spill] sm:$0xff] }
 0x428   : > { %v4712_v38 = vmul.f32 %v4711_v53, %v7813_v21  ;;  %v4713_v57 = vmul.f32 %v4711_v53, %v7814_v0  ;;  %v4714_v50 = vmul.f32 %v4711_v53, %v7815_v8  ;;  %v4715_v51 = vmul.f32 %v4711_v53, %v7816_v9  ;;  %v7833_v8 = vld [vmem:[#allocation14_spill] sm:$0xff] }
 0x429   : > { %v4716_v15 = vmul.f32 %v4711_v53, %v7817_v41  ;;  %v4717_v17 = vmul.f32 %v4711_v53, %v7818_v48  ;;  %v4718_v19 = vmul.f32 %v4711_v53, %v7819_v49  ;;  %v4719_v3 = vmul.f32 %v4711_v53, %v7820_v40 }
 0x42a   : > { %v4720_v47 = vmul.f32 %v4711_v53, %v7821_v44  ;;  %v4721_v6 = vmul.f32 %v4711_v53, %v7822_v14  ;;  %v4722_v16 = vmul.f32 %v4711_v53, %v7824_v26  ;;  %v4723_v12 = vmul.f32 %v4711_v53, %v7826_v36  ;;  %4744 = vst [vmem:[%s7621_s14] sm:$0xff] %v4712_v38 }
 0x42b   : > { %4745 = vst [vmem:[%s7621_s14 + $0x8] sm:$0xff] %v4713_v57  ;;  %4746 = vst [vmem:[%s7621_s14 + $0x10] sm:$0xff] %v4714_v50  ;;  %v4724_v27 = vmul.f32 %v4711_v53, %v7828_v35  ;;  %v4725_v7 = vmul.f32 %v4711_v53, %v7830_v11  ;;  %v7832_v21 = vmax.f32 %v7831_v28, 0.0  ;;  %v7834_v9 = vmax.f32 %v7833_v8, 0.0 }
 0x42c   : > { %4747 = vst [vmem:[%s7621_s14 + $0x18] sm:$0xff] %v4715_v51  ;;  %4748 = vst [vmem:[%s7621_s14 + $0x20] sm:$0xff] %v4716_v15  ;;  %v7835_v38 = vmax.f32 %v7406_v31, 0.0  ;;  %v4729_v50 = vmul.f32 %v4711_v53, %v4540_v39  ;;  %v7836_v51 = vmax.f32 %v7429_v61, 0.0  ;;  %v4731_v15 = vmul.f32 %v4711_v53, %v4542_v46 }
 0x42d   : > { %v4726_v0 = vmul.f32 %v4711_v53, %v7832_v21  ;;  %v4727_v41 = vmul.f32 %v4711_v53, %v7834_v9  ;;  %4749 = vst [vmem:[%s7621_s14 + $0x28] sm:$0xff] %v4717_v17  ;;  %4750 = vst [vmem:[%s7621_s14 + $0x30] sm:$0xff] %v4718_v19  ;;  %v4732_v31 = vmul.f32 %v4711_v53, %v4543_v29 }
 0x42e   : > { %4751 = vst [vmem:[%s7621_s14 + $0x38] sm:$0xff] %v4719_v3  ;;  %v4728_v57 = vmul.f32 %v4711_v53, %v7835_v38  ;;  %v4730_v48 = vmul.f32 %v4711_v53, %v7836_v51  ;;  %4752 = vst [vmem:[%s7621_s14 + $0x40] sm:$0xff] %v4720_v47  ;;  %v4733_v43 = vmul.f32 %v4711_v53, %v4544_v34 }
 0x42f   : > { %4753 = vst [vmem:[%s7621_s14 + $0x48] sm:$0xff] %v4721_v6  ;;  %4754 = vst [vmem:[%s7621_s14 + $0x50] sm:$0xff] %v4722_v16  ;;  %v4734_v61 = vmul.f32 %v4711_v53, %v4545_v10  ;;  %v4735_v58 = vmul.f32 %v4711_v53, %v4546_v18  ;;  %v4736_v39 = vmul.f32 %v4711_v53, %v4547_v24 }
 0x430   : > { %4755 = vst [vmem:[%s7621_s14 + $0x58] sm:$0xff] %v4723_v12  ;;  %4756 = vst [vmem:[%s7621_s14 + $0x60] sm:$0xff] %v4724_v27  ;;  %v4737_v20 = vmul.f32 %v4711_v53, %v4548_v32  ;;  %v4738_v46 = vmul.f32 %v4711_v53, %v4549_v52  ;;  %v4739_v33 = vmul.f32 %v4711_v53, %v4550_v54 }
 0x431   : > { %4757 = vst [vmem:[%s7621_s14 + $0x68] sm:$0xff] %v4725_v7  ;;  %4758 = vst [vmem:[%s7621_s14 + $0x70] sm:$0xff] %v4726_v0  ;;  %v4740_v29 = vmul.f32 %v4711_v53, %v4551_v30  ;;  %v4741_v62 = vmul.f32 %v4711_v53, %v4552_v13  ;;  %v4742_v34 = vmul.f32 %v4711_v53, %v4553_v25 }
 0x432   : > { %4759 = vst [vmem:[%s7621_s14 + $0x78] sm:$0xff] %v4727_v41  ;;  %4760 = vst [vmem:[%s7621_s14 + $0x80] sm:$0xff] %v4728_v57  ;;  %v4743_v10 = vmul.f32 %v4711_v53, %v4554_v5 }
 0x433   : > { %4761 = vst [vmem:[%s7621_s14 + $0x88] sm:$0xff] %v4729_v50  ;;  %4762 = vst [vmem:[%s7621_s14 + $0x90] sm:$0xff] %v4730_v48 }
 0x434   : > { %4763 = vst [vmem:[%s7621_s14 + $0x98] sm:$0xff] %v4731_v15  ;;  %4764 = vst [vmem:[%s7621_s14 + $0xa0] sm:$0xff] %v4732_v31 }
 0x435   : > { %4765 = vst [vmem:[%s7621_s14 + $0xa8] sm:$0xff] %v4733_v43  ;;  %4766 = vst [vmem:[%s7621_s14 + $0xb0] sm:$0xff] %v4734_v61 }
 0x436   : > { %4767 = vst [vmem:[%s7621_s14 + $0xb8] sm:$0xff] %v4735_v58  ;;  %4768 = vst [vmem:[%s7621_s14 + $0xc0] sm:$0xff] %v4736_v39 }
 0x437   : > { %4769 = vst [vmem:[%s7621_s14 + $0xc8] sm:$0xff] %v4737_v20  ;;  %4770 = vst [vmem:[%s7621_s14 + $0xd0] sm:$0xff] %v4738_v46 }
 0x438   : > { %4771 = vst [vmem:[%s7621_s14 + $0xd8] sm:$0xff] %v4739_v33  ;;  %4772 = vst [vmem:[%s7621_s14 + $0xe0] sm:$0xff] %v4740_v29 }
 0x439   : > { %4773 = vst [vmem:[%s7621_s14 + $0xe8] sm:$0xff] %v4741_v62  ;;  %4774 = vst [vmem:[%s7621_s14 + $0xf0] sm:$0xff] %v4742_v34 }
 0x43a   : > { %4775 = vst [vmem:[%s7621_s14 + $0xf8] sm:$0xff] %v4743_v10 }
 0x43b   : > { %5812 = shalt.err (!%p5809_p3)
}
 0x43c   : > { %s5813_s29 = scalar_lea.hbm %s7680_s18, 4096  ;;  %s5817_s13 = scalar_lea.hbm %s7753_s7, 8192 }
 0x43d   : > { %p5814_p4 = scmp.ne.s32.totalorder %s7680_s18, %s5813_s29  ;;  %p5818_p9 = scmp.lt.s32.totalorder %s7680_s18, %s7753_s7 }
 0x43e   : > { %p5819_p10 = scmp.lt.s32.totalorder %s5817_s13, %s5813_s29 }
 0x43f   : > { %p5815_p7 = pnand %p5814_p4, %p5945_p5 }
 0x440   : > { %p5820_p11 = por %p5819_p10, %p5818_p9 }
 0x441   : > { %p5816_p8 = pneg %p5815_p7 }
 0x443   : > { %p5821_p12 = pnand %p5820_p11, %p5816_p8 }
 0x445   : > { %5824 = shalt.err (!%p5821_p12)
}
 0x446   : > { %s5865_s28 = smov 128   ;;  %s5866_s17 = smov 8  }
 0x447   : > { %5638 = dma.vmem_to_hbm [thread:$0]  (%p5945_p5), %s7682_s16, 4096, %s7680_s18, %s7706_s19, %s5865_s28, %s5865_s28, %s5866_s17  }
 0x448 PF: > { %p5644_p13 = scmp.ge.s32.totalorder %s5859_s27, 2  ;;  %s4805_s20 = sand.u32 1, %s5847_s24  }
 0x449   : > { %s4806_s21 = scalar_lea.sflag [#allocation4], %s4805_s20 }
 0x44a   : > { %p5641_p0 = pnand %p5644_p13, %p5949_p6 }
 0x44c   : > { %p5642_p1 = pneg %p5641_p0 }
 0x44e   : > { %5842 = dma.done.wait (%p5642_p1), %s4806_s21, 4096  }
 0x44f   : > { %5844 = vsyncadd (%p5642_p1), %s4806_s21, 4294963200  ;;  %p17_p2 = scmp.ge.s32.totalorder %s5932_s30, 4   ;;  %s7837_s24 = smov %s5851_s25 }
 0x450   : > { %s7838_s25 = smov %s5855_s26  ;;  %s7839_s26 = smov %s5943_s10 }
 0x451   : > { %s7840_s27 = smov %s5932_s30  ;;  %19 = sbr.rel (!%p17_p2) target bundleno = 3 (0x3), region = 87 }
 0x456   :  { %4811 = vsyncpa [#allocation4], 1 }
 0x457   :  { %4813 = vsyncpa [#allocation4 + $0x1], 1 }

</bundles_post_ra>
